<compile_context>
chip_gen: v7x
topology: tpu7x:2x2x1
jax: 0.10.0
libtpu: 0.0.40
codegen_flags: <defaults>
</compile_context>

<pallas_src>
import functools

import jax
import jax.numpy as jnp
from jax import lax
from jax.experimental import pallas as pl
from jax.experimental.pallas import tpu as pltpu

M_MARGIN = 0.35
S_SCALE = 30.0


def _am_softmax_kernel(emb_ref, ker_ref, lab_ref, out_ref, inv_norm_ref, *,
                       precision):
    """One (tm, tn) output tile.

    Grid = (C // tn  [outer, parallel],  B // tm  [inner, arbitrary]).

    emb_ref:      (tm, E)  embeddings row tile (re-streamed per column tile)
    ker_ref:      (E, tn)  un-normalized weight column tile (outer-axis only)
    lab_ref:      (tm, 1)  int32 labels for this row tile
    out_ref:      (tm, tn) output tile
    inv_norm_ref: (1, tn)  f32 VMEM scratch, per-column inverse L2 norm
    """
    row_step = pl.program_id(1)  # inner (row) grid position

    # The weight tile's index_map ignores the inner axis, so it is resident
    # across the whole inner row loop: compute its per-column inverse norm
    # exactly once per column tile and cache it in scratch.  Accumulate in f32
    # even for bf16 weights.  No epsilon, matching the PyTorch reference
    # (a zero-norm column is degenerate there too).
    @pl.when(row_step == 0)
    def _():
        k32 = ker_ref[...].astype(jnp.float32)
        inv_norm_ref[...] = lax.rsqrt(jnp.sum(k32 * k32, axis=0, keepdims=True))

    # emb @ W with f32 accumulation on the MXU; scaling by inv_norm afterwards
    # is algebraically identical to emb @ l2_norm(W, axis=0).
    logits = jnp.dot(
        emb_ref[...],
        ker_ref[...],
        preferred_element_type=jnp.float32,
        precision=precision,
    )
    cos = jnp.clip(logits * inv_norm_ref[...], -1.0, 1.0)

    # Additive margin on each row's target class.  Global column ids are
    # generated in-kernel (outer grid axis == column-tile index).
    tn = out_ref.shape[-1]
    cols = pl.program_id(0) * tn + lax.broadcasted_iota(jnp.int32, (1, tn), 1)
    is_target = cols == lab_ref[...]              # (1,tn) vs (tm,1) -> (tm,tn)
    out = jnp.where(is_target, cos - M_MARGIN, cos) * S_SCALE
    out_ref[...] = out.astype(out_ref.dtype)


def am_softmax(embeddings, kernel, label, *, tm=None, tn=None,
               precision=lax.Precision.DEFAULT, out_dtype=jnp.float32):
    """AM-Softmax forward: s * (clamp(emb @ l2norm(W, axis=0), -1, 1) - m*onehot).

    `precision` controls the MXU path (DEFAULT = fast single pass; HIGHEST =
    exact-f32 multi-pass emulation).  bf16 embeddings/weights are accepted; the
    column norm is always computed in f32.
    """
    B, E = embeddings.shape
    E2, C = kernel.shape
    assert E == E2, (E, E2)

    if tm is None:                        # row tile (only VMEM / step-overhead)
        tm = B if B <= 256 else 256
    if tn is None:                        # lane-dense, MXU-friendly column tile
        tn = C if C <= 1024 else 1024
    # TODO(synk): non-divisible batch/classnum (e.g. the module default
    # classnum=51332) would need input padding or a masked edge tile.
    assert B % tm == 0, f"batch {B} must be divisible by tm={tm}"
    assert C % tn == 0, f"classnum {C} must be divisible by tn={tn}"

    emb_b = embeddings.dtype.itemsize
    ker_b = kernel.dtype.itemsize
    out_b = jnp.dtype(out_dtype).itemsize

    def footprint(tm_, tn_):
        # double-buffered input/output blocks + (1, tn) f32 norm scratch
        return (2 * (tm_ * E * emb_b + E * tn_ * ker_b
                     + tm_ * tn_ * out_b + tm_ * 4) + 4 * tn_)

    # Keep the per-step footprint comfortably inside v7x's 64 MiB VMEM
    # (v5e/v6e have 128 MiB but v5e's *default scoped* limit is only 16 MiB,
    # so we always pass vmem_limit_bytes explicitly).
    # NOTE: for extremely large E a K grid axis + f32 accumulator would be the
    # right fix instead of shrinking tiles further.
    budget = 44 << 20
    while footprint(tm, tn) > budget and tn > 256 and C % (tn // 2) == 0:
        tn //= 2
    while footprint(tm, tn) > budget and tm > 8 and B % (tm // 2) == 0:
        tm //= 2
    vmem_limit = int(min(max(footprint(tm, tn) * 3 // 2, 32 << 20), 56 << 20))

    label2d = label.reshape(B, 1).astype(jnp.int32)

    # Columns on the OUTER axis: the big (E, C) weight matrix is read from HBM
    # exactly once; the (tm, E) embedding tile is the operand that is
    # re-streamed (B*E*C/tn bytes, << E*C for realistic B/tn).
    grid = (C // tn, B // tm)

    return pl.pallas_call(
        functools.partial(_am_softmax_kernel, precision=precision),
        out_shape=jax.ShapeDtypeStruct((B, C), out_dtype),
        grid=grid,
        in_specs=[
            pl.BlockSpec((tm, E), lambda j, i: (i, 0)),   # embeddings (re-streamed)
            pl.BlockSpec((E, tn), lambda j, i: (0, j)),   # weights (outer axis only)
            pl.BlockSpec((tm, 1), lambda j, i: (i, 0)),   # labels
        ],
        out_specs=pl.BlockSpec((tm, tn), lambda j, i: (i, j)),
        scratch_shapes=[pltpu.VMEM((1, tn), jnp.float32)],  # per-column 1/||w||
        compiler_params=pltpu.CompilerParams(
            dimension_semantics=("parallel", "arbitrary"),
            vmem_limit_bytes=vmem_limit,
        ),
    )(embeddings, kernel, label2d)


def _reference(embeddings, kernel, label):
    col_norm = jnp.sqrt(jnp.sum(kernel * kernel, axis=0, keepdims=True))
    kernel_norm = kernel / col_norm
    cos = jnp.clip(
        jnp.matmul(embeddings, kernel_norm, precision=lax.Precision.HIGHEST),
        -1.0, 1.0,
    )
    onehot = jax.nn.one_hot(label, kernel.shape[1], dtype=jnp.bool_)
    return jnp.where(onehot, cos - M_MARGIN, cos) * S_SCALE


if __name__ == "__main__":
    # Small synthetic shapes consistent with the module (embedding_size, classnum).
    B, E, C = 8, 128, 2048

    key = jax.random.PRNGKey(0)
    k_emb, k_ker, k_lab = jax.random.split(key, 3)

    # Parameter init mimicking: uniform_(-1,1).renorm_(2, 1, 1e-5).mul_(1e5)
    # -> (approximately) unit-norm columns.
    w = jax.random.uniform(k_ker, (E, C), jnp.float32, minval=-1.0, maxval=1.0)
    col_norm = jnp.linalg.norm(w, axis=0, keepdims=True)
    w = w * jnp.minimum(1.0, 1e-5 / col_norm) * 1e5

    embeddings = jax.random.normal(k_emb, (B, E), jnp.float32)
    label = jax.random.randint(k_lab, (B,), 0, C, dtype=jnp.int32)

    ref = _reference(embeddings, w, label)

    # 1) Exact-precision path (f32 MXU emulation): tight tolerance.
    out_hi = jax.block_until_ready(
        am_softmax(embeddings, w, label, precision=lax.Precision.HIGHEST))
    assert out_hi.shape == (B, C)
    err_hi = float(jnp.max(jnp.abs(out_hi - ref)))
    assert err_hi < 2e-3, f"HIGHEST max err {err_hi}"

    # 2) Default fast path (single-pass MXU): s=30 amplifies bf16 input
    #    rounding, so compare with a correspondingly relaxed tolerance.
    out_fast = jax.block_until_ready(am_softmax(embeddings, w, label))
    err_fast = float(jnp.max(jnp.abs(out_fast - ref)))
    assert err_fast < 0.6, f"DEFAULT max err {err_fast}"

    # 3) bf16-streamed operands (halves the dominant HBM weight traffic);
    #    norm is still accumulated in f32 inside the kernel.
    emb_bf16 = embeddings.astype(jnp.bfloat16)
    w_bf16 = w.astype(jnp.bfloat16)
    ref_bf16 = _reference(emb_bf16.astype(jnp.float32),
                          w_bf16.astype(jnp.float32), label)
    out_bf16 = jax.block_until_ready(am_softmax(emb_bf16, w_bf16, label))
    err_bf16 = float(jnp.max(jnp.abs(out_bf16 - ref_bf16)))
    assert err_bf16 < 0.5, f"bf16 max err {err_bf16}"

    print("KERNEL_OK")
</pallas_src>

<mosaic_0001>
module attributes {stable_mosaic.version = 11 : i64} {
  func.func @_am_softmax_kernel(%arg0: i32, %arg1: i32, %arg2: memref<8x128xf32, #tpu.memory_space<vmem>>, %arg3: memref<128x1024xf32, #tpu.memory_space<vmem>>, %arg4: memref<8x1xi32, #tpu.memory_space<vmem>>, %arg5: memref<8x1024xf32, #tpu.memory_space<vmem>>, %arg6: memref<1x1024xf32, #tpu.memory_space<vmem>>) attributes {dimension_semantics = [#tpu.dimension_semantics<parallel>, #tpu.dimension_semantics<arbitrary>], iteration_bounds = array<i64: 2, 1>, scalar_prefetch = 0 : i64, scratch_operands = 1 : i64, tpu.core_type = #tpu.core_type<tc>, window_params = [{transform_indices = @transform_0, window_bounds = array<i64: 8, 128>}, {transform_indices = @transform_1, window_bounds = array<i64: 128, 1024>}, {transform_indices = @transform_2, window_bounds = array<i64: 8, 1>}, {transform_indices = @transform_3, window_bounds = array<i64: 8, 1024>}]} {
    %c0_i32 = arith.constant 0 : i32
    %0 = arith.cmpi eq, %arg1, %c0_i32 : i32
    %1 = arith.extui %0 : i1 to i32
    %c0_i32_0 = arith.constant 0 : i32
    %2 = arith.cmpi ne, %1, %c0_i32_0 : i32
    scf.if %2 {
      %c0_14 = arith.constant 0 : index
      %c0_15 = arith.constant 0 : index
      %27 = vector.load %arg3[%c0_14, %c0_15] : memref<128x1024xf32, #tpu.memory_space<vmem>>, vector<128x1024xf32>
      %28 = arith.mulf %27, %27 : vector<128x1024xf32>
      %cst_16 = arith.constant dense<0.000000e+00> : vector<1024xf32>
      %29 = vector.multi_reduction <add>, %28, %cst_16 [0] : vector<128x1024xf32> to vector<1024xf32>
      %30 = vector.shape_cast %29 : vector<1024xf32> to vector<1x1024xf32>
      %31 = math.rsqrt %30 : vector<1x1024xf32>
      %c0_17 = arith.constant 0 : index
      %c0_18 = arith.constant 0 : index
      %32 = vector.load %arg6[%c0_17, %c0_18] : memref<1x1024xf32, #tpu.memory_space<vmem>>, vector<1x1024xf32>
      tpu.vector_store %arg6[%c0_17, %c0_18], %31 {strides = array<i32>} : memref<1x1024xf32, #tpu.memory_space<vmem>>, vector<1x1024xf32>,
    } else {
    }
    %c0 = arith.constant 0 : index
    %c0_1 = arith.constant 0 : index
    %3 = vector.load %arg2[%c0, %c0_1] : memref<8x128xf32, #tpu.memory_space<vmem>>, vector<8x128xf32>
    %c0_2 = arith.constant 0 : index
    %c0_3 = arith.constant 0 : index
    %4 = vector.load %arg3[%c0_2, %c0_3] : memref<128x1024xf32, #tpu.memory_space<vmem>>, vector<128x1024xf32>
    %cst = arith.constant dense<0.000000e+00> : vector<8x1024xf32>
    %5 = tpu.matmul %3, %4, %cst {dimension_numbers = #tpu.dot_dimension_numbers<[1], [0], [0], [1], [0, 0, 1, 1], [], []>, precision = #tpu.contract_precision<fp32>} : vector<8x128xf32>, vector<128x1024xf32>, vector<8x1024xf32> -> vector<8x1024xf32>
    %c0_4 = arith.constant 0 : index
    %c0_5 = arith.constant 0 : index
    %6 = vector.load %arg6[%c0_4, %c0_5] : memref<1x1024xf32, #tpu.memory_space<vmem>>, vector<1x1024xf32>
    %7 = vector.broadcast %6 : vector<1x1024xf32> to vector<8x1024xf32>
    %8 = arith.mulf %5, %7 : vector<8x1024xf32>
    %cst_6 = arith.constant -1.000000e+00 : f32
    %cst_7 = arith.constant 1.000000e+00 : f32
    %9 = vector.broadcast %cst_6 : f32 to vector<8x1024xf32>
    %10 = arith.maximumf %9, %8 : vector<8x1024xf32>
    %11 = vector.broadcast %cst_7 : f32 to vector<8x1024xf32>
    %12 = arith.minimumf %11, %10 : vector<8x1024xf32>
    %c1024_i32 = arith.constant 1024 : i32
    %13 = arith.muli %arg0, %c1024_i32 : i32
    %14 = tpu.iota {dimensions = array<i32: 1>} : vector<1x1024xi32>
    %15 = vector.broadcast %13 : i32 to vector<1x1024xi32>
    %16 = arith.addi %15, %14 : vector<1x1024xi32>
    %c0_8 = arith.constant 0 : index
    %c0_9 = arith.constant 0 : index
    %17 = vector.load %arg4[%c0_8, %c0_9] : memref<8x1xi32, #tpu.memory_space<vmem>>, vector<8x1xi32>
    %18 = vector.broadcast %16 : vector<1x1024xi32> to vector<8x1024xi32>
    %19 = vector.broadcast %17 : vector<8x1xi32> to vector<8x1024xi32>
    %20 = arith.cmpi eq, %18, %19 : vector<8x1024xi32>
    %cst_10 = arith.constant 3.500000e-01 : f32
    %21 = vector.broadcast %cst_10 : f32 to vector<8x1024xf32>
    %22 = arith.subf %12, %21 : vector<8x1024xf32>
    %23 = arith.select %20, %22, %12 : vector<8x1024xi1>, vector<8x1024xf32>
    %cst_11 = arith.constant 3.000000e+01 : f32
    %24 = vector.broadcast %cst_11 : f32 to vector<8x1024xf32>
    %25 = arith.mulf %23, %24 : vector<8x1024xf32>
    %c0_12 = arith.constant 0 : index
    %c0_13 = arith.constant 0 : index
    %26 = vector.load %arg5[%c0_12, %c0_13] : memref<8x1024xf32, #tpu.memory_space<vmem>>, vector<8x1024xf32>
    tpu.vector_store %arg5[%c0_12, %c0_13], %25 {strides = array<i32>} : memref<8x1024xf32, #tpu.memory_space<vmem>>, vector<8x1024xf32>,
    return
  }
  func.func @transform_0(%arg0: i32, %arg1: i32) -> (i32, i32) {
    %c0_i32 = arith.constant 0 : i32
    %c0_i32_0 = arith.constant 0 : i32
    return %arg1, %c0_i32 : i32, i32
  }
  func.func @transform_1(%arg0: i32, %arg1: i32) -> (i32, i32) {
    %c0_i32 = arith.constant 0 : i32
    %c0_i32_0 = arith.constant 0 : i32
    return %c0_i32, %arg0 : i32, i32
  }
  func.func @transform_2(%arg0: i32, %arg1: i32) -> (i32, i32) {
    %c0_i32 = arith.constant 0 : i32
    %c0_i32_0 = arith.constant 0 : i32
    return %arg1, %c0_i32 : i32, i32
  }
  func.func @transform_3(%arg0: i32, %arg1: i32) -> (i32, i32) {
    %c0_i32 = arith.constant 0 : i32
    return %arg1, %arg0 : i32, i32
  }
}

</mosaic_0001>

<bundles_post_ra>
// kernel: tpu_custom_call.1
= control target key start
LH: loop header
LB: loop body
LE: loop exit
PB: predicated region body
PF: predicated region fallthrough
CT: control target
= control target key end

     0   :  { %8 = vsyncpa [#allocation4], 0  ;;  %s8169_s0 = inlined_call_operand.vmem [shape: f32[8,128], index: 0, kind: input, shape index: {}]   ;;  %s8170_s1 = inlined_call_operand.hbm [shape: f32[128,2048], index: 1, kind: input, shape index: {}]   ;;  %s8171_s2 = inlined_call_operand.vmem [shape: s32[8,1], index: 2, kind: input, shape index: {}]   ;;  %s8172_s3 = inlined_call_operand.hbm [shape: f32[8,2048], index: 3, kind: output, shape index: {}]  }
   0x1   :  { %10 = vsyncpa [#allocation4 + $0x1], 0 }
   0x2   :  { %11 = vsyncpa [#allocation5], 0 }
   0x3   :  { %13 = vsyncpa [#allocation5 + $0x1], 0  ;;  %s5611_s12 = smov 0   ;;  %s5613_s13 = smov 0  }
   0x4   :  { %s5615_s14 = smov 0   ;;  %s5617_s15 = smov 0  }
   0x5   :  { %s5619_s16 = smov 0   ;;  %s5621_s17 = smov 0  }
   0x6 LB: > { %s4540_s18 = sadd.s32 4294967295, %s5581_s17   ;;  %s4541_s19 = sadd.s32 4294967294, %s5581_s17   ;;  %s5581_s17 = sphi %s5621_s17, %s19_s17   ;;  %s5577_s16 = sphi %s5619_s16, %s9248_s16   ;;  %s5573_s15 = sphi %s5617_s15, %s9247_s15   ;;  %s5569_s14 = sphi %s5615_s14, %s9246_s14   ;;  %s5565_s13 = sphi %s5613_s13, %s9245_s13   ;;  %s5561_s12 = sphi %s5611_s12, %s9244_s12  }
   0x7   : > { %s31_s20 = sadd.s32 1, %s5577_s16  ;;  %s64_s21 = sadd.s32 1, %s5569_s14 }
   0x8   : > { %p33_p0 = scmp.ge.s32.totalorder %s31_s20, 2  ;;  %p71_p1 = scmp.ne.s32.totalorder %s5569_s14, %s5565_s13 }
   0x9   : > { %p72_p2 = scmp.eq.s32.totalorder %s5581_s17, 0  ;;  %p77_p3 = scmp.ne.s32.totalorder %s5565_s13, %s5561_s12 }
   0xa   : > { %s9250_s20 = smov (%p33_p0, %s31_s20), 0  ;;  %p78_p5 = scmp.eq.s32.totalorder %s4540_s18, 0 }
   0xb   : > { %p5652_p4 = por %p72_p2, %p71_p1  ;;  %s61_s23 = ssub.s32 %s5577_s16, %s9250_s20 }
   0xc   : > { %p129_p6 = scmp.eq.s32.totalorder %s4540_s18, 1  ;;  %p62_p7 = scmp.eq.s32.totalorder %s61_s23, 0 }
   0xd   : > { %p5658_p8 = por %p78_p5, %p77_p3  ;;  %p135_p10 = scmp.eq.s32.totalorder %s4541_s19, 1 }
   0xe   : > { %p5662_p9 = por %p129_p6, %p71_p1  ;;  %p5396_p13 = scmp.lt.s32.totalorder %s5581_s17, 2 }
   0xf   : > { %s5667_s26 = scalar_select %p62_p7, %s5569_s14, %s64_s21  }
  0x10   : > { %s8519_s25 = scalar_select %p5662_p9, 1, 0 }
  0x11   : > { %p5669_p11 = por %p135_p10, %p77_p3  ;;  %s169_s28 = sand.u32 1, %s5569_s14  }
  0x12   : > { %s4546_s29 = sshll.u32 %s169_s28, 10  ;;  %s4574_s30 = sshll.u32 %s5577_s16, 10 }
  0x13   : > { %s8520_s27 = scalar_select %p5669_p11, 1, 0 }
  0x14   : > { %s5680_s6 = scalar_lea.hbm %s8170_s1, %s4574_s30  ;;  %s173_s7 = scalar_lea.vmem [#allocation3], %s4546_s29 }
  0x15   : > { %s180_s8 = sshll.u32 %s173_s7, 4  ;;  %p5686_p0 = pnand %p5396_p13, %p5652_p4  ;;  %s5682_s8 = int_to_ptr.vmem [resolvable:$true] %s180_s8 }
  0x16   : > { %s5690_s10 = scalar_lea.sflag [#allocation4], %s169_s28  ;;  %s5469_s11 = scalar_lea.hbm %s5680_s6, 16384 }
  0x17   : > { %p5470_p1 = scmp.ne.s32.totalorder %s5680_s6, %s5469_s11  ;;  %p5471_p2 = pneg %p5686_p0 }
  0x18   : > { %s5474_s21 = scalar_lea.hbm %s8170_s1, 32768  ;;  %p5475_p4 = scmp.lt.u32.totalorder %s5680_s6, %s8170_s1 }
  0x19   : > { %p5472_p3 = pnand %p5471_p2, %p5470_p1  ;;  %p5476_p6 = scmp.lt.u32.totalorder %s5474_s21, %s5469_s11 }
  0x1a   : > { %p5478_p10 = scmp.lt.u32.totalorder %s5469_s11, %s5680_s6 }
  0x1b   : > { %p5473_p5 = pneg %p5472_p3  ;;  %p5477_p7 = por %p5476_p6, %p5475_p4 }
  0x1d   : > { %p5479_p13 = por %p5478_p10, %p5477_p7 }
  0x1f   : > { %p5480_p12 = pnand %p5479_p13, %p5473_p5 }
  0x21   : > { %5483 = shalt.err (!%p5480_p12)
}
  0x22   : > { %s5484_s28 = scalar_lea.vmem %s5682_s8, 16384  ;;  %s5583_s29 = smov [#allocation3]  }
  0x23   : > { %p5485_p1 = scmp.ne.s32.totalorder %s5682_s8, %s5484_s28  ;;  %s5489_s30 = sshll.u32 %s5583_s29, 4  ;;  %s5490_s30 = int_to_ptr.vmem [resolvable:$false] %s5489_s30 }
  0x24   : > { %s5491_s4 = scalar_lea.vmem %s5490_s30, 32768  ;;  %p5492_p9 = scmp.lt.s32.totalorder %s5682_s8, %s5490_s30 }
  0x25   : > { %p5487_p3 = pnand %p5485_p1, %p5471_p2  ;;  %p5493_p4 = scmp.lt.s32.totalorder %s5491_s4, %s5484_s28 }
  0x27   : > { %p5488_p11 = pneg %p5487_p3  ;;  %p5494_p6 = por %p5493_p4, %p5492_p9 }
  0x29   : > { %p5495_p7 = pnand %p5494_p6, %p5488_p11 }
  0x2b   : > { %5498 = shalt.err (!%p5495_p7)
}
  0x2c   : > { %s5584_s5 = smov 2048   ;;  %s5585_s7 = smov 1024  }
  0x2d   : > { %s5586_s11 = smov 64   ;;  %p4549_p12 = scmp.ge.s32.totalorder %s5581_s17, 1 }
  0x2e   : > { %5391 = dma.hbm_to_vmem [thread:$0]  (!%p5686_p0), %s5680_s6, 16384, %s5682_s8, %s5690_s10, %s5584_s5, %s5585_s7, %s5586_s11  }
  0x2f   : > { %p188_p2 = scmp.lt.s32.totalorder %s5581_s17, 3 }
  0x31   : > { %p189_p5 = pnand %p4549_p12, %p188_p2 }
  0x33   : > { %192 = sbr.rel (%p189_p5) target bundleno = 757 (0x2f5), region = 32 }
  0x3a   : > { %s5721_s18 = sand.u32 1, %s5565_s13  }
  0x3b   : > { %s4550_s19 = sshll.u32 %s5721_s18, 10  ;;  %s195_s21 = scalar_lea.sflag [#allocation4], %s5721_s18 }
  0x3c   : > { %s5725_s22 = scalar_lea.vmem [#allocation3], %s4550_s19 }
  0x3d   : > { %5552 = dma.done.wait (%p5658_p8), %s195_s21, 16384  }
  0x3e   : > { %5554 = vsyncadd (%p5658_p8), %s195_s21, 4294950912  ;;  %v8174_v0 = vmov 0.0   ;;  %v736_v1 = vld [vmem:[%s5725_s22 + $0x8] sm:$0xff]  ;;  %v738_v3 = vld [vmem:[%s5725_s22 + $0x18] sm:$0xff]  ;;  %s4560_s10 = sshll.u32 %s5573_s15, 10  ;;  %s4551_s23 = sshll.u32 %s5721_s18, 6 }
  0x3f   : > { %959 = vmatprep.mubr.f32.mxu0 %v8174_v0  ;;  %1814 = vmatprep.mubr.f32.mxu1 %v8174_v0  ;;  %v744_v2 = vld [vmem:[%s5725_s22 + $0x48] sm:$0xff]  ;;  %v863_v4 = vand.u32 4294901760, %v736_v1  ;;  %v746_v6 = vld [vmem:[%s5725_s22 + $0x58] sm:$0xff]  ;;  %v1718_v7 = vand.u32 4294901760, %v738_v3  ;;  %v735_v8 = vld [vmem:[%s5725_s22] sm:$0xff]  ;;  %s8084_s28 = scalar_lea.vmem [#allocation6], %s4551_s23  ;;  %s8118_s5 = scalar_lea.hbm %s8172_s3, %s4560_s10 }
  0x40   : > { %v867_v5 = vand.u32 4294901760, %v744_v2  ;;  %v743_v9 = vld [vmem:[%s5725_s22 + $0x40] sm:$0xff]  ;;  %v1722_v10 = vand.u32 4294901760, %v746_v6  ;;  %v865_v11 = vand.u32 4294901760, %v735_v8  ;;  %v737_v13 = vld [vmem:[%s5725_s22 + $0x10] sm:$0xff]  ;;  %v752_v15 = vld [vmem:[%s5725_s22 + $0x88] sm:$0xff] }
  0x41   : > { %v869_v12 = vand.u32 4294901760, %v743_v9  ;;  %v745_v14 = vld [vmem:[%s5725_s22 + $0x50] sm:$0xff]  ;;  %v5744_v17 = vsub.f32 %v736_v1, %v863_v4  ;;  %v5748_v19 = vsub.f32 %v738_v3, %v1718_v7  ;;  %v760_v20 = vld [vmem:[%s5725_s22 + $0xc8] sm:$0xff]  ;;  %v754_v21 = vld [vmem:[%s5725_s22 + $0x98] sm:$0xff]  ;;  %v1720_v29 = vand.u32 4294901760, %v737_v13  ;;  %s4429_s29 = sshll.u32 %s8084_s28, 4  ;;  %s8120_s29 = int_to_ptr.vmem [resolvable:$true] %s4429_s29 }
  0x42   : > { %v5742_v16 = vpack.c.bf16 %v867_v5, %v863_v4  ;;  %v5746_v18 = vsub.f32 %v744_v2, %v867_v5  ;;  %v762_v22 = vld [vmem:[%s5725_s22 + $0xd8] sm:$0xff]  ;;  %v5753_v23 = vpack.c.bf16 %v1722_v10, %v1718_v7  ;;  %v5755_v24 = vsub.f32 %v746_v6, %v1722_v10  ;;  %v751_v27 = vld [vmem:[%s5725_s22 + $0x80] sm:$0xff]  ;;  %v753_v37 = vld [vmem:[%s5725_s22 + $0x90] sm:$0xff]  ;;  %s4413_s7 = scalar_lea.sflag [#allocation5], %s5721_s18  ;;  %s5499_s11 = scalar_lea.vmem %s8120_s29, 1024 }
  0x43   : > { %8523 = vst [vmem:[#allocation10_spill] sm:$0xff] %v5744_v17  ;;  %8525 = vst [vmem:[#allocation12_spill] sm:$0xff] %v5748_v19  ;;  %v5757_v25 = vpack.c.bf16 %v869_v12, %v865_v11  ;;  %v5759_v26 = vsub.f32 %v735_v8, %v865_v11  ;;  %v5763_v28 = vsub.f32 %v743_v9, %v869_v12  ;;  %v1724_v30 = vand.u32 4294901760, %v745_v14  ;;  %v759_v32 = vld [vmem:[%s5725_s22 + $0xc0] sm:$0xff]  ;;  %v761_v38 = vld [vmem:[%s5725_s22 + $0xd0] sm:$0xff]  ;;  %p5500_p8 = scmp.ne.s32.totalorder %s8120_s29, %s5499_s11  ;;  %p9241_p9 = scmp.ne.s32.totalorder %s8519_s25, 0 }
  0x44   : > { %8522 = vst [vmem:[#allocation9_spill] sm:$0xff] %v5742_v16  ;;  %8524 = vst [vmem:[#allocation11_spill] sm:$0xff] %v5746_v18  ;;  %4577 = vmatprep.subr.bf16.mxu0 %v5742_v16  ;;  %v871_v31 = vand.u32 4294901760, %v752_v15  ;;  %4769 = vmatprep.subr.bf16.mxu1 %v5753_v23  ;;  %v875_v33 = vand.u32 4294901760, %v760_v20  ;;  %v1726_v34 = vand.u32 4294901760, %v754_v21  ;;  %v1730_v35 = vand.u32 4294901760, %v762_v22 }
  0x45   : > { %8526 = vst [vmem:[#allocation13_spill] sm:$0xff] %v5753_v23  ;;  %8527 = vst [vmem:[#allocation14_spill] sm:$0xff] %v5755_v24  ;;  %4579 = vmatpush1.bf16.msra.mxu0 %v5757_v25  ;;  %v873_v36 = vand.u32 4294901760, %v751_v27  ;;  %v5770_v39 = vpack.c.bf16 %v1724_v30, %v1720_v29  ;;  %v5772_v40 = vsub.f32 %v737_v13, %v1720_v29  ;;  %v768_v43 = vld [vmem:[%s5725_s22 + $0x108] sm:$0xff]  ;;  %v770_v45 = vld [vmem:[%s5725_s22 + $0x118] sm:$0xff]  ;;  %v877_v52 = vand.u32 4294901760, %v759_v32  ;;  %p5501_p11 = pnand %p5500_p8, %p9241_p9 }
  0x46   : > { %8528 = vst [vmem:[#allocation15_spill] sm:$0xff] %v5757_v25  ;;  %8529 = vst [vmem:[#allocation16_spill] sm:$0xff] %v5763_v28  ;;  %v5774_v41 = vsub.f32 %v745_v14, %v1724_v30  ;;  %v5776_v42 = vsub.f32 %v752_v15, %v871_v31  ;;  %v776_v44 = vld [vmem:[%s5725_s22 + $0x148] sm:$0xff]  ;;  %v5781_v46 = vpack.c.bf16 %v875_v33, %v871_v31  ;;  %v778_v50 = vld [vmem:[%s5725_s22 + $0x158] sm:$0xff]  ;;  %v1728_v54 = vand.u32 4294901760, %v753_v37  ;;  %s5590_s19 = smov [#allocation6]  }
  0x47   : > { %8530 = vst [vmem:[#allocation17_spill] sm:$0xff] %v5770_v39  ;;  %v5783_v47 = vsub.f32 %v760_v20, %v875_v33  ;;  %v5785_v48 = vpack.c.bf16 %v1730_v35, %v1726_v34  ;;  %v5787_v49 = vsub.f32 %v754_v21, %v1726_v34  ;;  %4771 = vmatpush1.bf16.msra.mxu1 %v5770_v39  ;;  %v1732_v55 = vand.u32 4294901760, %v761_v38  ;;  %v767_v59 = vld [vmem:[%s5725_s22 + $0x100] sm:$0xff]  ;;  %v769_v2 = vld [vmem:[%s5725_s22 + $0x110] sm:$0xff]  ;;  %v784_v4 = vld [vmem:[%s5725_s22 + $0x188] sm:$0xff]  ;;  %p5502_p0 = pneg %p5501_p11  ;;  %s5503_s15 = sshll.u32 %s5590_s19, 4  ;;  %s5504_s15 = int_to_ptr.vmem [resolvable:$false] %s5503_s15 }
  0x48   : > { %8531 = vst [vmem:[#allocation18_spill] sm:$0xff] %v5781_v46  ;;  %v5791_v51 = vsub.f32 %v762_v22, %v1730_v35  ;;  %v5793_v53 = vsub.f32 %v751_v27, %v873_v36  ;;  %4581 = vmatprep.subr.bf16.mxu0 %v5781_v46  ;;  %v879_v56 = vand.u32 4294901760, %v768_v43  ;;  %v883_v57 = vand.u32 4294901760, %v776_v44  ;;  %v775_v60 = vld [vmem:[%s5725_s22 + $0x140] sm:$0xff]  ;;  %v777_v3 = vld [vmem:[%s5725_s22 + $0x150] sm:$0xff]  ;;  %v792_v9 = vld [vmem:[%s5725_s22 + $0x1c8] sm:$0xff]  ;;  %p5506_p10 = scmp.lt.s32.totalorder %s8120_s29, %s5504_s15 }
  0x49   : > { %8532 = vst [vmem:[#allocation19_spill] sm:$0xff] %v5785_v48  ;;  %4773 = vmatprep.subr.bf16.mxu1 %v5785_v48  ;;  %v1734_v58 = vand.u32 4294901760, %v770_v45  ;;  %v5799_v61 = vpack.c.bf16 %v877_v52, %v873_v36  ;;  %v5801_v62 = vsub.f32 %v759_v32, %v877_v52  ;;  %v5803_v63 = vsub.f32 %v753_v37, %v1728_v54  ;;  %v786_v10 = vld [vmem:[%s5725_s22 + $0x198] sm:$0xff]  ;;  %v783_v33 = vld [vmem:[%s5725_s22 + $0x180] sm:$0xff]  ;;  %v825_v16 = vld [vmem:[%s5725_s22 + $0x2d0] sm:$0xff]  ;;  %s5505_s21 = scalar_lea.vmem %s5504_s15, 2048 }
  0x4a   : > { %v1738_v1 = vand.u32 4294901760, %v778_v50  ;;  %v5808_v5 = vpack.c.bf16 %v1732_v55, %v1728_v54  ;;  %v5810_v6 = vsub.f32 %v761_v38, %v1732_v55  ;;  %v5812_v7 = vpack.c.bf16 %v883_v57, %v879_v56  ;;  %v794_v11 = vld [vmem:[%s5725_s22 + $0x1d8] sm:$0xff]  ;;  %v791_v38 = vld [vmem:[%s5725_s22 + $0x1c0] sm:$0xff]  ;;  %v800_v55 = vld [vmem:[%s5725_s22 + $0x208] sm:$0xff]  ;;  %p5507_p13 = scmp.lt.s32.totalorder %s5505_s21, %s5499_s11 }
  0x4b   : > { %8533 = vst [vmem:[#allocation20_spill] sm:$0xff] %v5799_v61  ;;  %v5814_v8 = vsub.f32 %v768_v43, %v879_v56  ;;  %4583 = vmatpush1.bf16.msra.mxu0 %v5799_v61  ;;  %v5820_v12 = vsub.f32 %v776_v44, %v883_v57  ;;  %v5824_v14 = vsub.f32 %v770_v45, %v1734_v58  ;;  %v881_v20 = vand.u32 4294901760, %v767_v59  ;;  %v785_v43 = vld [vmem:[%s5725_s22 + $0x190] sm:$0xff]  ;;  %v808_v56 = vld [vmem:[%s5725_s22 + $0x248] sm:$0xff]  ;;  %v802_v57 = vld [vmem:[%s5725_s22 + $0x218] sm:$0xff] }
  0x4c   : > { %8534 = vst [vmem:[#allocation21_spill] sm:$0xff] %v5808_v5  ;;  %8535 = vst [vmem:[#allocation22_spill] sm:$0xff] %v5812_v7  ;;  %v5822_v13 = vpack.c.bf16 %v1738_v1, %v1734_v58  ;;  %v5826_v15 = vsub.f32 %v778_v50, %v1738_v1  ;;  %4775 = vmatpush1.bf16.msra.mxu1 %v5808_v5  ;;  %4585 = vmatprep.subr.bf16.mxu0 %v5812_v7  ;;  %v885_v21 = vand.u32 4294901760, %v775_v60  ;;  %v793_v44 = vld [vmem:[%s5725_s22 + $0x1d0] sm:$0xff]  ;;  %v815_v61 = vld [vmem:[%s5725_s22 + $0x280] sm:$0xff]  ;;  %p5508_p1 = por %p5507_p13, %p5506_p10 }
  0x4d   : > { %v1736_v22 = vand.u32 4294901760, %v769_v2  ;;  %v1740_v27 = vand.u32 4294901760, %v777_v3  ;;  %v887_v29 = vand.u32 4294901760, %v784_v4  ;;  %v891_v30 = vand.u32 4294901760, %v792_v9  ;;  %v823_v48 = vld [vmem:[%s5725_s22 + $0x2c0] sm:$0xff] }
  0x4e   : > { %8536 = vst [vmem:[#allocation23_spill] sm:$0xff] %v5822_v13  ;;  %4777 = vmatprep.subr.bf16.mxu1 %v5822_v13  ;;  %v1742_v31 = vand.u32 4294901760, %v786_v10  ;;  %v1746_v32 = vand.u32 4294901760, %v794_v11  ;;  %v5832_v34 = vpack.c.bf16 %v885_v21, %v881_v20  ;;  %v5834_v35 = vsub.f32 %v767_v59, %v881_v20  ;;  %v824_v13 = vld [vmem:[%s5725_s22 + $0x2c8] sm:$0xff]  ;;  %p5509_p3 = pnand %p5508_p1, %p5502_p0 }
  0x4f   : > { %v5836_v36 = vsub.f32 %v775_v60, %v885_v21  ;;  %v5838_v37 = vpack.c.bf16 %v1740_v27, %v1736_v22  ;;  %v5843_v45 = vsub.f32 %v769_v2, %v1736_v22  ;;  %v5845_v50 = vsub.f32 %v777_v3, %v1740_v27  ;;  %v810_v21 = vld [vmem:[%s5725_s22 + $0x258] sm:$0xff] }
  0x50   : > { %8537 = vst [vmem:[#allocation24_spill] sm:$0xff] %v5832_v34  ;;  %v5847_v52 = vpack.c.bf16 %v891_v30, %v887_v29  ;;  %v5849_v54 = vsub.f32 %v784_v4, %v887_v29  ;;  %4587 = vmatpush1.bf16.msra.mxu0 %v5832_v34  ;;  %v5856_v58 = vsub.f32 %v792_v9, %v891_v30  ;;  %v889_v1 = vand.u32 4294901760, %v783_v33  ;;  %v799_v29 = vld [vmem:[%s5725_s22 + $0x200] sm:$0xff]  ;;  %v816_v34 = vld [vmem:[%s5725_s22 + $0x288] sm:$0xff] }
  0x51   : > { %8538 = vst [vmem:[#allocation25_spill] sm:$0xff] %v5838_v37  ;;  %4779 = vmatpush1.bf16.msra.mxu1 %v5838_v37  ;;  %v5858_v59 = vpack.c.bf16 %v1746_v32, %v1742_v31  ;;  %v5860_v60 = vsub.f32 %v786_v10, %v1742_v31  ;;  %v5863_v2 = vsub.f32 %v794_v11, %v1746_v32  ;;  %v893_v3 = vand.u32 4294901760, %v791_v38  ;;  %v807_v30 = vld [vmem:[%s5725_s22 + $0x240] sm:$0xff]  ;;  %v801_v31 = vld [vmem:[%s5725_s22 + $0x210] sm:$0xff] }
  0x52   : > { %8539 = vst [vmem:[#allocation26_spill] sm:$0xff] %v5847_v52  ;;  %4589 = vmatprep.subr.bf16.mxu0 %v5847_v52  ;;  %v1744_v4 = vand.u32 4294901760, %v785_v43  ;;  %v1748_v20 = vand.u32 4294901760, %v793_v44  ;;  %v5867_v9 = vsub.f32 %v783_v33, %v889_v1  ;;  %v895_v22 = vand.u32 4294901760, %v800_v55  ;;  %v809_v52 = vld [vmem:[%s5725_s22 + $0x250] sm:$0xff] }
  0x53   : > { %8540 = vst [vmem:[#allocation27_spill] sm:$0xff] %v5858_v59  ;;  %4781 = vmatprep.subr.bf16.mxu1 %v5858_v59  ;;  %v899_v27 = vand.u32 4294901760, %v808_v56  ;;  %v1750_v10 = vand.u32 4294901760, %v802_v57  ;;  %v5872_v0 = vpack.c.bf16 %v893_v3, %v889_v1  ;;  %v5874_v11 = vsub.f32 %v791_v38, %v893_v3 }
  0x54   : > { %v5876_v32 = vpack.c.bf16 %v1748_v20, %v1744_v4  ;;  %v5878_v37 = vsub.f32 %v785_v43, %v1744_v4  ;;  %v5883_v33 = vsub.f32 %v793_v44, %v1748_v20  ;;  %v5887_v5 = vsub.f32 %v800_v55, %v895_v22  ;;  %v818_v20 = vld [vmem:[%s5725_s22 + $0x298] sm:$0xff] }
  0x55   : > { %8541 = vst [vmem:[#allocation28_spill] sm:$0xff] %v5872_v0  ;;  %v5885_v59 = vpack.c.bf16 %v899_v27, %v895_v22  ;;  %v5889_v7 = vsub.f32 %v808_v56, %v899_v27  ;;  %4591 = vmatpush1.bf16.msra.mxu0 %v5872_v0  ;;  %v1754_v38 = vand.u32 4294901760, %v810_v21  ;;  %v5893_v43 = vsub.f32 %v802_v57, %v1750_v10  ;;  %v826_v22 = vld [vmem:[%s5725_s22 + $0x2d8] sm:$0xff] }
  0x56   : > { %8542 = vst [vmem:[#allocation29_spill] sm:$0xff] %v5876_v32  ;;  %8543 = vst [vmem:[#allocation30_spill] sm:$0xff] %v5878_v37  ;;  %4783 = vmatpush1.bf16.msra.mxu1 %v5876_v32  ;;  %v897_v1 = vand.u32 4294901760, %v799_v29  ;;  %v901_v44 = vand.u32 4294901760, %v807_v30  ;;  %v1752_v3 = vand.u32 4294901760, %v801_v31  ;;  %v1756_v4 = vand.u32 4294901760, %v809_v52 }
  0x57   : > { %8544 = vst [vmem:[#allocation31_spill] sm:$0xff] %v5883_v33  ;;  %8545 = vst [vmem:[#allocation32_spill] sm:$0xff] %v5885_v59  ;;  %4593 = vmatprep.subr.bf16.mxu0 %v5885_v59  ;;  %v903_v55 = vand.u32 4294901760, %v816_v34  ;;  %v907_v56 = vand.u32 4294901760, %v824_v13  ;;  %v5898_v27 = vpack.c.bf16 %v1754_v38, %v1750_v10  ;;  %v5900_v32 = vsub.f32 %v810_v21, %v1754_v38  ;;  %v817_v59 = vld [vmem:[%s5725_s22 + $0x290] sm:$0xff]  ;;  %v832_v10 = vld [vmem:[%s5725_s22 + $0x308] sm:$0xff] }
  0x58   : > { %8546 = vst [vmem:[#allocation33_spill] sm:$0xff] %v5887_v5  ;;  %8547 = vst [vmem:[#allocation34_spill] sm:$0xff] %v5889_v7  ;;  %v5902_v57 = vpack.c.bf16 %v901_v44, %v897_v1  ;;  %v5904_v0 = vsub.f32 %v799_v29, %v897_v1  ;;  %v5909_v39 = vsub.f32 %v807_v30, %v901_v44  ;;  %v1758_v38 = vand.u32 4294901760, %v818_v20 }
  0x59   : > { %8548 = vst [vmem:[#allocation35_spill] sm:$0xff] %v5893_v43  ;;  %8549 = vst [vmem:[#allocation36_spill] sm:$0xff] %v5898_v27  ;;  %v5911_v46 = vpack.c.bf16 %v1756_v4, %v1752_v3  ;;  %v5913_v25 = vsub.f32 %v801_v31, %v1752_v3  ;;  %v5915_v23 = vsub.f32 %v809_v52, %v1756_v4  ;;  %v840_v43 = vld [vmem:[%s5725_s22 + $0x348] sm:$0xff]  ;;  %4785 = vmatprep.subr.bf16.mxu1 %v5898_v27 }
  0x5a   : > { %8550 = vst [vmem:[#allocation37_spill] sm:$0xff] %v5900_v32  ;;  %8551 = vst [vmem:[#allocation38_spill] sm:$0xff] %v5902_v57  ;;  %4595 = vmatpush1.bf16.msra.mxu0 %v5902_v57  ;;  %v5922_v21 = vpack.c.bf16 %v907_v56, %v903_v55  ;;  %v5924_v29 = vsub.f32 %v816_v34, %v903_v55  ;;  %v5926_v30 = vsub.f32 %v824_v13, %v907_v56  ;;  %v834_v55 = vld [vmem:[%s5725_s22 + $0x318] sm:$0xff]  ;;  %v856_v32 = vld [vmem:[%s5725_s22 + $0x3c8] sm:$0xff] }
  0x5b   : > { %8552 = vst [vmem:[#allocation39_spill] sm:$0xff] %v5904_v0  ;;  %8553 = vst [vmem:[#allocation40_spill] sm:$0xff] %v5909_v39  ;;  %4787 = vmatpush1.bf16.msra.mxu1 %v5911_v46  ;;  %v1762_v52 = vand.u32 4294901760, %v826_v22  ;;  %v905_v31 = vand.u32 4294901760, %v815_v61  ;;  %v909_v1 = vand.u32 4294901760, %v823_v48  ;;  %v1760_v44 = vand.u32 4294901760, %v817_v59 }
  0x5c   : > { %8554 = vst [vmem:[#allocation41_spill] sm:$0xff] %v5911_v46  ;;  %8555 = vst [vmem:[#allocation42_spill] sm:$0xff] %v5913_v25  ;;  %4597 = vmatprep.subr.bf16.mxu0 %v5922_v21  ;;  %v5930_v3 = vsub.f32 %v818_v20, %v1758_v38  ;;  %v1764_v4 = vand.u32 4294901760, %v825_v16  ;;  %v911_v34 = vand.u32 4294901760, %v832_v10  ;;  %v915_v13 = vand.u32 4294901760, %v840_v43  ;;  %v842_v56 = vld [vmem:[%s5725_s22 + $0x358] sm:$0xff] }
  0x5d   : > { %8556 = vst [vmem:[#allocation43_spill] sm:$0xff] %v5915_v23  ;;  %8557 = vst [vmem:[#allocation44_spill] sm:$0xff] %v5922_v21  ;;  %v5934_v46 = vpack.c.bf16 %v1762_v52, %v1758_v38  ;;  %v5936_v57 = vsub.f32 %v826_v22, %v1762_v52  ;;  %v5938_v27 = vpack.c.bf16 %v909_v1, %v905_v31  ;;  %v839_v21 = vld [vmem:[%s5725_s22 + $0x340] sm:$0xff]  ;;  %v833_v20 = vld [vmem:[%s5725_s22 + $0x310] sm:$0xff]  ;;  %v1766_v52 = vand.u32 4294901760, %v834_v55 }
  0x5e   : > { %8558 = vst [vmem:[#allocation45_spill] sm:$0xff] %v5924_v29  ;;  %8559 = vst [vmem:[#allocation46_spill] sm:$0xff] %v5926_v30  ;;  %v5940_v30 = vsub.f32 %v815_v61, %v905_v31  ;;  %v831_v29 = vld [vmem:[%s5725_s22 + $0x300] sm:$0xff]  ;;  %v5947_v23 = vpack.c.bf16 %v1764_v4, %v1760_v44  ;;  %v5949_v25 = vsub.f32 %v817_v59, %v1760_v44  ;;  %v841_v0 = vld [vmem:[%s5725_s22 + $0x350] sm:$0xff]  ;;  %v917_v31 = vand.u32 4294901760, %v839_v21 }
  0x5f   : > { %8560 = vst [vmem:[#allocation47_spill] sm:$0xff] %v5930_v3  ;;  %8561 = vst [vmem:[#allocation48_spill] sm:$0xff] %v5934_v46  ;;  %v5945_v3 = vsub.f32 %v823_v48, %v909_v1  ;;  %v5951_v39 = vsub.f32 %v825_v16, %v1764_v4  ;;  %v848_v38 = vld [vmem:[%s5725_s22 + $0x388] sm:$0xff]  ;;  %4789 = vmatprep.subr.bf16.mxu1 %v5934_v46  ;;  %4599 = vmatpush1.bf16.msra.mxu0 %v5938_v27  ;;  %v1770_v16 = vand.u32 4294901760, %v842_v56 }
  0x60   : > { %8562 = vst [vmem:[#allocation49_spill] sm:$0xff] %v5936_v57  ;;  %8563 = vst [vmem:[#allocation50_spill] sm:$0xff] %v5938_v27  ;;  %v5958_v61 = vpack.c.bf16 %v915_v13, %v911_v34  ;;  %v5960_v22 = vsub.f32 %v832_v10, %v911_v34  ;;  %v5962_v48 = vsub.f32 %v840_v43, %v915_v13  ;;  %4791 = vmatpush1.bf16.msra.mxu1 %v5947_v23  ;;  %v850_v43 = vld [vmem:[%s5725_s22 + $0x398] sm:$0xff] }
  0x61   : > { %8564 = vst [vmem:[#allocation51_spill] sm:$0xff] %v5940_v30  ;;  %8565 = vst [vmem:[#allocation52_spill] sm:$0xff] %v5945_v3  ;;  %v913_v59 = vand.u32 4294901760, %v831_v29  ;;  %v1768_v1 = vand.u32 4294901760, %v833_v20  ;;  %v5966_v44 = vsub.f32 %v834_v55, %v1766_v52  ;;  %v1772_v4 = vand.u32 4294901760, %v841_v0  ;;  %v858_v13 = vld [vmem:[%s5725_s22 + $0x3d8] sm:$0xff] }
  0x62   : > { %8566 = vst [vmem:[#allocation53_spill] sm:$0xff] %v5947_v23  ;;  %8567 = vst [vmem:[#allocation54_spill] sm:$0xff] %v5949_v25  ;;  %4601 = vmatprep.subr.bf16.mxu0 %v5958_v61  ;;  %v919_v10 = vand.u32 4294901760, %v848_v38  ;;  %v923_v34 = vand.u32 4294901760, %v856_v32  ;;  %v5970_v27 = vpack.c.bf16 %v1770_v16, %v1766_v52  ;;  %v5972_v23 = vsub.f32 %v842_v56, %v1770_v16  ;;  %v849_v25 = vld [vmem:[%s5725_s22 + $0x390] sm:$0xff] }
  0x63   : > { %8568 = vst [vmem:[#allocation55_spill] sm:$0xff] %v5951_v39  ;;  %8569 = vst [vmem:[#allocation56_spill] sm:$0xff] %v5958_v61  ;;  %v5974_v46 = vpack.c.bf16 %v917_v31, %v913_v59  ;;  %v855_v39 = vld [vmem:[%s5725_s22 + $0x3c0] sm:$0xff]  ;;  %v5981_v61 = vsub.f32 %v839_v21, %v917_v31  ;;  %v5983_v55 = vpack.c.bf16 %v1772_v4, %v1768_v1  ;;  %v857_v30 = vld [vmem:[%s5725_s22 + $0x3d0] sm:$0xff]  ;;  %v1774_v16 = vand.u32 4294901760, %v850_v43 }
  0x64   : > { %8570 = vst [vmem:[#allocation57_spill] sm:$0xff] %v5960_v22  ;;  %8571 = vst [vmem:[#allocation58_spill] sm:$0xff] %v5962_v48  ;;  %v5976_v48 = vsub.f32 %v831_v29, %v913_v59  ;;  %v847_v22 = vld [vmem:[%s5725_s22 + $0x380] sm:$0xff]  ;;  %v5987_v3 = vsub.f32 %v841_v0, %v1772_v4  ;;  %4793 = vmatprep.subr.bf16.mxu1 %v5970_v27  ;;  %v5992_v56 = vpack.c.bf16 %v923_v34, %v919_v10 }
  0x65   : > { %8572 = vst [vmem:[#allocation59_spill] sm:$0xff] %v5966_v44  ;;  %8573 = vst [vmem:[#allocation60_spill] sm:$0xff] %v5970_v27  ;;  %v5985_v44 = vsub.f32 %v833_v20, %v1768_v1  ;;  %4603 = vmatpush1.bf16.msra.mxu0 %v5974_v46  ;;  %v5994_v29 = vsub.f32 %v848_v38, %v919_v10  ;;  %v5996_v52 = vsub.f32 %v856_v32, %v923_v34 }
  0x66   : > { %8574 = vst [vmem:[#allocation61_spill] sm:$0xff] %v5974_v46  ;;  %8575 = vst [vmem:[#allocation62_spill] sm:$0xff] %v5983_v55  ;;  %4795 = vmatpush1.bf16.msra.mxu1 %v5983_v55  ;;  %v1778_v21 = vand.u32 4294901760, %v858_v13  ;;  %v921_v59 = vand.u32 4294901760, %v847_v22  ;;  %v925_v20 = vand.u32 4294901760, %v855_v39  ;;  %v1776_v31 = vand.u32 4294901760, %v849_v25  ;;  %4605 = vmatprep.subr.bf16.mxu0 %v5992_v56 }
  0x67   : > { %8576 = vst [vmem:[#allocation63_spill] sm:$0xff] %v5992_v56  ;;  %8577 = vst [vmem:[#allocation64_spill] sm:$0xff] %v5996_v52  ;;  %v6000_v0 = vsub.f32 %v850_v43, %v1774_v16  ;;  %v1780_v1 = vand.u32 4294901760, %v857_v30  ;;  %v8250_v46 = vand.u32 4294901760, %v5746_v18  ;;  %v734_v55 = vld [vmem:[%s8169_s0] sm:$0xff] }
  0x68   : > { %v6004_v38 = vpack.c.bf16 %v1778_v21, %v1774_v16  ;;  %v6006_v32 = vsub.f32 %v858_v13, %v1778_v21  ;;  %v6008_v10 = vpack.c.bf16 %v925_v20, %v921_v59  ;;  %v6010_v34 = vsub.f32 %v847_v22, %v921_v59 }
  0x69   : > { %8578 = vst [vmem:[#allocation65_spill] sm:$0xff] %v6000_v0  ;;  %v6015_v56 = vsub.f32 %v855_v39, %v925_v20  ;;  %v6017_v43 = vpack.c.bf16 %v1780_v1, %v1776_v31  ;;  %v6019_v27 = vsub.f32 %v849_v25, %v1776_v31  ;;  %v6021_v4 = vsub.f32 %v857_v30, %v1780_v1 }
  0x6a   : > { %8579 = vst [vmem:[#allocation66_spill] sm:$0xff] %v6004_v38  ;;  %8580 = vst [vmem:[#allocation67_spill] sm:$0xff] %v6006_v32  ;;  %4797 = vmatprep.subr.bf16.mxu1 %v6004_v38  ;;  %4607 = vmatpush1.bf16.msra.mxu0 %v6008_v10  ;;  %v8587_v13 = vand.u32 4294901760, %v5744_v17  ;;  %v986_v16 = vsub.f32 %v5746_v18, %v8250_v46  ;;  %v8255_v39 = vand.u32 4294901760, %v5748_v19  ;;  %v8260_v21 = vand.u32 4294901760, %v5755_v24 }
  0x6b   : > { %8581 = vst [vmem:[#allocation68_spill] sm:$0xff] %v6008_v10  ;;  %8582 = vst [vmem:[#allocation69_spill] sm:$0xff] %v6010_v34  ;;  %4799 = vmatpush1.bf16.msra.mxu1 %v6017_v43  ;;  %v6034_v25 = vand.u32 4294901760, %v734_v55  ;;  %v8267_v30 = vand.u32 4294901760, %v5759_v26  ;;  %v8268_v59 = vand.u32 4294901760, %v5763_v28  ;;  %v8274_v20 = vand.u32 4294901760, %v5772_v40 }
  0x6c   : > { %8583 = vst [vmem:[#allocation70_spill] sm:$0xff] %v6015_v56  ;;  %8584 = vst [vmem:[#allocation71_spill] sm:$0xff] %v6017_v43  ;;  %v974_v22 = vsub.f32 %v5744_v17, %v8587_v13  ;;  %v987_v1 = vand.u32 4294901760, %v986_v16  ;;  %v1829_v13 = vsub.f32 %v5748_v19, %v8255_v39  ;;  %v1841_v46 = vsub.f32 %v5755_v24, %v8260_v21 }
  0x6d   : > { %8585 = vst [vmem:[#allocation72_spill] sm:$0xff] %v6019_v27  ;;  %8586 = vst [vmem:[#allocation73_spill] sm:$0xff] %v6021_v4  ;;  %v6046_v43 = vsub.f32 %v734_v55, %v6034_v25  ;;  %v980_v10 = vsub.f32 %v5759_v26, %v8267_v30  ;;  %v1835_v16 = vsub.f32 %v5772_v40, %v8274_v20  ;;  %v8272_v21 = vand.u32 4294901760, %v5774_v41 }
  0x6e   : > { %8588 = vst [vmem:[#allocation74_spill] sm:$0xff] %v6034_v25  ;;  %v975_v31 = vand.u32 4294901760, %v974_v22  ;;  %v992_v22 = vsub.f32 %v5763_v28, %v8268_v59  ;;  %v1830_v38 = vand.u32 4294901760, %v1829_v13  ;;  %v1842_v19 = vand.u32 4294901760, %v1841_v46 }
  0x6f   : > { %8589 = vst [vmem:[#allocation75_spill] sm:$0xff] %v6046_v43  ;;  %v6059_v55 = vand.u32 4294901760, %v6046_v43  ;;  %v981_v25 = vand.u32 4294901760, %v980_v10  ;;  %v1836_v18 = vand.u32 4294901760, %v1835_v16  ;;  %v1847_v59 = vsub.f32 %v5774_v41, %v8272_v21 }
  0x70   : > { %v4608_v39 = vpack.c.bf16 %v987_v1, %v975_v31  ;;  %v993_v24 = vand.u32 4294901760, %v992_v22  ;;  %v4800_v30 = vpack.c.bf16 %v1842_v19, %v1830_v38  ;;  %v8271_v28 = vand.u32 4294901760, %v5776_v42 }
  0x71   : > { %8590 = vst [vmem:[#allocation76_spill] sm:$0xff] %v6059_v55  ;;  %v8273_v31 = vand.u32 4294901760, %v5783_v47  ;;  %v963_v46 = vsub.f32 %v6046_v43, %v6059_v55  ;;  %v8275_v13 = vand.u32 4294901760, %v5787_v49  ;;  %v8276_v10 = vand.u32 4294901760, %v5791_v51 }
  0x72   : > { %4609 = vmatprep.subr.bf16.mxu0 %v4608_v39  ;;  %v4610_v1 = vpack.c.bf16 %v993_v24, %v981_v25  ;;  %4801 = vmatprep.subr.bf16.mxu1 %v4800_v30  ;;  %v1848_v22 = vand.u32 4294901760, %v1847_v59  ;;  %v998_v19 = vsub.f32 %v5776_v42, %v8271_v28  ;;  %v8277_v39 = vand.u32 4294901760, %v5793_v53 }
  0x73   : > { %v1010_v38 = vsub.f32 %v5783_v47, %v8273_v31  ;;  %v6077_v16 = vand.u32 4294901760, %v963_v46  ;;  %v1853_v24 = vsub.f32 %v5787_v49, %v8275_v13  ;;  %v1865_v25 = vsub.f32 %v5791_v51, %v8276_v10 }
  0x74   : > { %v8286_v30 = vand.u32 4294901760, %v5801_v62  ;;  %v4802_v59 = vpack.c.bf16 %v1848_v22, %v1836_v18  ;;  %v999_v28 = vand.u32 4294901760, %v998_v19  ;;  %v1004_v31 = vsub.f32 %v5793_v53, %v8277_v39 }
  0x75   : > { %8591 = vst [vmem:[#allocation77_spill] sm:$0xff] %v6077_v16  ;;  %v1011_v21 = vand.u32 4294901760, %v1010_v38  ;;  %965 = vmatmul.mubr.f32.vlgmr.msra.gmra.mrb[0].mxu0 %v6077_v16  ;;  %1820 = vmatmul.mubr.f32.vlgmr.msra.gmra.mrb[0].mxu1 %v6077_v16  ;;  %v1854_v46 = vand.u32 4294901760, %v1853_v24  ;;  %v1866_v20 = vand.u32 4294901760, %v1865_v25  ;;  %v8282_v10 = vand.u32 4294901760, %v5803_v63 }
  0x76   : > { %v1016_v13 = vsub.f32 %v5801_v62, %v8286_v30  ;;  %4611 = vmatpush1.bf16.msra.mxu0 %v4610_v1  ;;  %4803 = vmatpush1.bf16.msra.mxu1 %v4802_v59  ;;  %v1005_v22 = vand.u32 4294901760, %v1004_v31  ;;  %v8283_v19 = vand.u32 4294901760, %v5810_v6  ;;  %v8284_v38 = vand.u32 4294901760, %v5814_v8 }
  0x77   : > { %v4612_v18 = vpack.c.bf16 %v1011_v21, %v999_v28  ;;  %v4804_v39 = vpack.c.bf16 %v1866_v20, %v1854_v46  ;;  %v1859_v24 = vsub.f32 %v5803_v63, %v8282_v10  ;;  %v8285_v25 = vand.u32 4294901760, %v5820_v12 }
  0x78   : > { %v1017_v55 = vand.u32 4294901760, %v1016_v13  ;;  %v8592_v16 = vmov 0.0   ;;  %v1871_v28 = vsub.f32 %v5810_v6, %v8283_v19  ;;  %v1022_v21 = vsub.f32 %v5814_v8, %v8284_v38 }
  0x79   : > { %1195 = vmatprep.mubr.f32.mxu0 %v8592_v16  ;;  %2050 = vmatprep.mubr.f32.mxu1 %v8592_v16  ;;  %v8287_v20 = vand.u32 4294901760, %v5824_v14  ;;  %v8298_v31 = vand.u32 4294901760, %v5826_v15  ;;  %v1860_v13 = vand.u32 4294901760, %v1859_v24  ;;  %v1034_v59 = vsub.f32 %v5820_v12, %v8285_v25 }
  0x7a   : > { %4613 = vmatprep.subr.bf16.mxu0 %v4612_v18  ;;  %4805 = vmatprep.subr.bf16.mxu1 %v4804_v39  ;;  %v4614_v1 = vpack.c.bf16 %v1017_v55, %v1005_v22  ;;  %v8290_v46 = vand.u32 4294901760, %v5834_v35  ;;  %v1872_v18 = vand.u32 4294901760, %v1871_v28  ;;  %v1023_v10 = vand.u32 4294901760, %v1022_v21 }
  0x7b   : > { %v1877_v19 = vsub.f32 %v5824_v14, %v8287_v20  ;;  %v1889_v38 = vsub.f32 %v5826_v15, %v8298_v31  ;;  %v1035_v39 = vand.u32 4294901760, %v1034_v59  ;;  %v8291_v22 = vand.u32 4294901760, %v5836_v36 }
  0x7c   : > { %4615 = vmatpush1.bf16.msra.mxu0 %v4614_v1  ;;  %v1028_v55 = vsub.f32 %v5834_v35, %v8290_v46  ;;  %v8295_v24 = vand.u32 4294901760, %v5843_v45  ;;  %v4806_v28 = vpack.c.bf16 %v1872_v18, %v1860_v13  ;;  %v8292_v30 = vand.u32 4294901760, %v5845_v50 }
  0x7d   : > { %v1878_v21 = vand.u32 4294901760, %v1877_v19  ;;  %v1890_v25 = vand.u32 4294901760, %v1889_v38  ;;  %v4616_v20 = vpack.c.bf16 %v1035_v39, %v1023_v10  ;;  %v1040_v1 = vsub.f32 %v5836_v36, %v8291_v22 }
  0x7e   : > { %v1029_v43 = vand.u32 4294901760, %v1028_v55  ;;  %v1883_v59 = vsub.f32 %v5843_v45, %v8295_v24  ;;  %4807 = vmatpush1.bf16.msra.mxu1 %v4806_v28  ;;  %v1895_v13 = vsub.f32 %v5845_v50, %v8292_v30  ;;  %v8293_v19 = vand.u32 4294901760, %v5849_v54 }
  0x7f   : > { %v4808_v46 = vpack.c.bf16 %v1890_v25, %v1878_v21  ;;  %v8294_v38 = vand.u32 4294901760, %v5856_v58  ;;  %4617 = vmatprep.subr.bf16.mxu0 %v4616_v20  ;;  %v1041_v10 = vand.u32 4294901760, %v1040_v1  ;;  %v8296_v39 = vand.u32 4294901760, %v5860_v60 }
  0x80   : > { %v1884_v18 = vand.u32 4294901760, %v1883_v59  ;;  %v8297_v55 = vand.u32 4294901760, %v5863_v2  ;;  %v1896_v22 = vand.u32 4294901760, %v1895_v13  ;;  %v1046_v25 = vsub.f32 %v5849_v54, %v8293_v19 }
  0x81   : > { %4809 = vmatprep.subr.bf16.mxu1 %v4808_v46  ;;  %v1058_v28 = vsub.f32 %v5856_v58, %v8294_v38  ;;  %v8301_v21 = vand.u32 4294901760, %v5867_v9  ;;  %v4618_v30 = vpack.c.bf16 %v1041_v10, %v1029_v43  ;;  %v1901_v20 = vsub.f32 %v5860_v60, %v8296_v39 }
  0x82   : > { %v1913_v46 = vsub.f32 %v5863_v2, %v8297_v55  ;;  %v8300_v1 = vand.u32 4294901760, %v5874_v11  ;;  %v4810_v59 = vpack.c.bf16 %v1896_v22, %v1884_v18  ;;  %v1047_v13 = vand.u32 4294901760, %v1046_v25 }
  0x83   : > { %v1059_v19 = vand.u32 4294901760, %v1058_v28  ;;  %v1052_v38 = vsub.f32 %v5867_v9, %v8301_v21  ;;  %4619 = vmatpush1.bf16.msra.mxu0 %v4618_v30  ;;  %v1902_v24 = vand.u32 4294901760, %v1901_v20  ;;  %v8299_v39 = vand.u32 4294901760, %v5878_v37 }
  0x84   : > { %v1914_v43 = vand.u32 4294901760, %v1913_v46  ;;  %v1064_v10 = vsub.f32 %v5874_v11, %v8300_v1  ;;  %4811 = vmatpush1.bf16.msra.mxu1 %v4810_v59  ;;  %v8304_v22 = vand.u32 4294901760, %v5883_v33  ;;  %v8305_v18 = vand.u32 4294901760, %v5887_v5 }
  0x85   : > { %v4620_v55 = vpack.c.bf16 %v1059_v19, %v1047_v13  ;;  %v1053_v31 = vand.u32 4294901760, %v1052_v38  ;;  %v1907_v30 = vsub.f32 %v5878_v37, %v8299_v39  ;;  %v8306_v20 = vand.u32 4294901760, %v5889_v7  ;;  %v8593_v38 = vld [vmem:[#allocation35_spill] sm:$0xff]  ;;  %v8594_v13 = vld [vmem:[#allocation37_spill] sm:$0xff] }
  0x86   : > { %v4812_v25 = vpack.c.bf16 %v1914_v43, %v1902_v24  ;;  %v1065_v28 = vand.u32 4294901760, %v1064_v10  ;;  %v1919_v46 = vsub.f32 %v5883_v33, %v8304_v22  ;;  %v1070_v19 = vsub.f32 %v5887_v5, %v8305_v18 }
  0x87   : > { %4621 = vmatprep.subr.bf16.mxu0 %v4620_v55  ;;  %v8314_v59 = vand.u32 4294901760, %v8593_v38  ;;  %v8317_v24 = vand.u32 4294901760, %v8594_v13  ;;  %v1908_v10 = vand.u32 4294901760, %v1907_v30  ;;  %v1082_v39 = vsub.f32 %v5889_v7, %v8306_v20  ;;  %v8595_v55 = vld [vmem:[#allocation39_spill] sm:$0xff]  ;;  %v8597_v20 = vld [vmem:[#allocation42_spill] sm:$0xff] }
  0x88   : > { %4813 = vmatprep.subr.bf16.mxu1 %v4812_v25  ;;  %v4622_v43 = vpack.c.bf16 %v1065_v28, %v1053_v31  ;;  %v8316_v1 = vand.u32 4294901760, %v8595_v55  ;;  %v1920_v21 = vand.u32 4294901760, %v1919_v46  ;;  %v1071_v37 = vand.u32 4294901760, %v1070_v19  ;;  %v8596_v28 = vld [vmem:[#allocation40_spill] sm:$0xff]  ;;  %v8598_v7 = vld [vmem:[#allocation43_spill] sm:$0xff] }
  0x89   : > { %v1925_v22 = vsub.f32 %v8593_v38, %v8314_v59  ;;  %v1937_v18 = vsub.f32 %v8594_v13, %v8317_v24  ;;  %v1083_v25 = vand.u32 4294901760, %v1082_v39  ;;  %v8319_v30 = vand.u32 4294901760, %v8596_v28 }
  0x8a   : > { %4623 = vmatpush1.bf16.msra.mxu0 %v4622_v43  ;;  %v1076_v31 = vsub.f32 %v8595_v55, %v8316_v1  ;;  %v8322_v33 = vand.u32 4294901760, %v8597_v20  ;;  %v4814_v46 = vpack.c.bf16 %v1920_v21, %v1908_v10  ;;  %v8321_v5 = vand.u32 4294901760, %v8598_v7  ;;  %v8600_v10 = vld [vmem:[#allocation46_spill] sm:$0xff] }
  0x8b   : > { %v1926_v19 = vand.u32 4294901760, %v1925_v22  ;;  %v1938_v16 = vand.u32 4294901760, %v1937_v18  ;;  %v4624_v59 = vpack.c.bf16 %v1083_v25, %v1071_v37  ;;  %v1088_v43 = vsub.f32 %v8596_v28, %v8319_v30  ;;  %v8599_v22 = vld [vmem:[#allocation45_spill] sm:$0xff] }
  0x8c   : > { %v1077_v38 = vand.u32 4294901760, %v1076_v31  ;;  %v1931_v39 = vsub.f32 %v8597_v20, %v8322_v33  ;;  %4815 = vmatpush1.bf16.msra.mxu1 %v4814_v46  ;;  %v1943_v21 = vsub.f32 %v8598_v7, %v8321_v5  ;;  %v8324_v18 = vand.u32 4294901760, %v8599_v22  ;;  %v8601_v31 = vld [vmem:[#allocation47_spill] sm:$0xff] }
  0x8d   : > { %v4816_v1 = vpack.c.bf16 %v1938_v16, %v1926_v19  ;;  %v8325_v24 = vand.u32 4294901760, %v8600_v10  ;;  %4625 = vmatprep.subr.bf16.mxu0 %v4624_v59  ;;  %v1089_v37 = vand.u32 4294901760, %v1088_v43  ;;  %v8327_v55 = vand.u32 4294901760, %v8601_v31  ;;  %v8602_v19 = vld [vmem:[#allocation51_spill] sm:$0xff]  ;;  %v8603_v43 = vld [vmem:[#allocation52_spill] sm:$0xff] }
  0x8e   : > { %v1932_v25 = vand.u32 4294901760, %v1931_v39  ;;  %v8329_v30 = vand.u32 4294901760, %v5936_v57  ;;  %v1944_v28 = vand.u32 4294901760, %v1943_v21  ;;  %v1094_v16 = vsub.f32 %v8599_v22, %v8324_v18  ;;  %v8605_v22 = vld [vmem:[#allocation55_spill] sm:$0xff] }
  0x8f   : > { %4817 = vmatprep.subr.bf16.mxu1 %v4816_v1  ;;  %v1106_v46 = vsub.f32 %v8600_v10, %v8325_v24  ;;  %v8336_v5 = vand.u32 4294901760, %v8602_v19  ;;  %v4626_v33 = vpack.c.bf16 %v1089_v37, %v1077_v38  ;;  %v1949_v59 = vsub.f32 %v8601_v31, %v8327_v55  ;;  %v8604_v55 = vld [vmem:[#allocation54_spill] sm:$0xff] }
  0x90   : > { %v1961_v1 = vsub.f32 %v5936_v57, %v8329_v30  ;;  %v8334_v39 = vand.u32 4294901760, %v8603_v43  ;;  %v4818_v21 = vpack.c.bf16 %v1944_v28, %v1932_v25  ;;  %v1095_v7 = vand.u32 4294901760, %v1094_v16  ;;  %v8606_v25 = vld [vmem:[#allocation57_spill] sm:$0xff] }
  0x91   : > { %v1107_v18 = vand.u32 4294901760, %v1106_v46  ;;  %v1100_v24 = vsub.f32 %v8602_v19, %v8336_v5  ;;  %4627 = vmatpush1.bf16.msra.mxu0 %v4626_v33  ;;  %v1950_v10 = vand.u32 4294901760, %v1949_v59  ;;  %v8335_v31 = vand.u32 4294901760, %v8604_v55  ;;  %v8607_v59 = vld [vmem:[#allocation58_spill] sm:$0xff] }
  0x92   : > { %v1962_v38 = vand.u32 4294901760, %v1961_v1  ;;  %v1112_v37 = vsub.f32 %v8603_v43, %v8334_v39  ;;  %4819 = vmatpush1.bf16.msra.mxu1 %v4818_v21  ;;  %v8337_v28 = vand.u32 4294901760, %v8605_v22  ;;  %v8338_v16 = vand.u32 4294901760, %v8606_v25 }
  0x93   : > { %v4628_v30 = vpack.c.bf16 %v1107_v18, %v1095_v7  ;;  %v1101_v57 = vand.u32 4294901760, %v1100_v24  ;;  %v1955_v33 = vsub.f32 %v8604_v55, %v8335_v31  ;;  %v8339_v1 = vand.u32 4294901760, %v8607_v59  ;;  %v8608_v24 = vld [vmem:[#allocation59_spill] sm:$0xff] }
  0x94   : > { %v4820_v46 = vpack.c.bf16 %v1962_v38, %v1950_v10  ;;  %v1113_v20 = vand.u32 4294901760, %v1112_v37  ;;  %v1967_v39 = vsub.f32 %v8605_v22, %v8337_v28  ;;  %v1118_v7 = vsub.f32 %v8606_v25, %v8338_v16 }
  0x95   : > { %4629 = vmatprep.subr.bf16.mxu0 %v4628_v30  ;;  %v8341_v18 = vand.u32 4294901760, %v8608_v24  ;;  %v8351_v10 = vand.u32 4294901760, %v5972_v23  ;;  %v1956_v38 = vand.u32 4294901760, %v1955_v33  ;;  %v1130_v37 = vsub.f32 %v8607_v59, %v8339_v1 }
  0x96   : > { %4821 = vmatprep.subr.bf16.mxu1 %v4820_v46  ;;  %v4630_v21 = vpack.c.bf16 %v1113_v20, %v1101_v57  ;;  %v8343_v30 = vand.u32 4294901760, %v5976_v48  ;;  %v1968_v31 = vand.u32 4294901760, %v1967_v39  ;;  %v1119_v5 = vand.u32 4294901760, %v1118_v7 }
  0x97   : > { %v1973_v28 = vsub.f32 %v8608_v24, %v8341_v18  ;;  %v1985_v16 = vsub.f32 %v5972_v23, %v8351_v10  ;;  %v1131_v46 = vand.u32 4294901760, %v1130_v37  ;;  %v8344_v20 = vand.u32 4294901760, %v5981_v61 }
  0x98   : > { %4631 = vmatpush1.bf16.msra.mxu0 %v4630_v21  ;;  %v1124_v57 = vsub.f32 %v5976_v48, %v8343_v30  ;;  %v8348_v33 = vand.u32 4294901760, %v5985_v44  ;;  %v4822_v39 = vpack.c.bf16 %v1968_v31, %v1956_v38  ;;  %v8345_v59 = vand.u32 4294901760, %v5987_v3 }
  0x99   : > { %v1974_v7 = vand.u32 4294901760, %v1973_v28  ;;  %v1986_v1 = vand.u32 4294901760, %v1985_v16  ;;  %v4632_v18 = vpack.c.bf16 %v1131_v46, %v1119_v5  ;;  %v1136_v21 = vsub.f32 %v5981_v61, %v8344_v20 }
  0x9a   : > { %v1125_v24 = vand.u32 4294901760, %v1124_v57  ;;  %v1979_v37 = vsub.f32 %v5985_v44, %v8348_v33  ;;  %4823 = vmatpush1.bf16.msra.mxu1 %v4822_v39  ;;  %v1991_v31 = vsub.f32 %v5987_v3, %v8345_v59  ;;  %v8346_v28 = vand.u32 4294901760, %v5994_v29 }
  0x9b   : > { %v4824_v30 = vpack.c.bf16 %v1986_v1, %v1974_v7  ;;  %v8347_v16 = vand.u32 4294901760, %v5996_v52  ;;  %4633 = vmatprep.subr.bf16.mxu0 %v4632_v18  ;;  %v1137_v5 = vand.u32 4294901760, %v1136_v21  ;;  %v8349_v46 = vand.u32 4294901760, %v6000_v0 }
  0x9c   : > { %v1980_v38 = vand.u32 4294901760, %v1979_v37  ;;  %v8350_v57 = vand.u32 4294901760, %v6006_v32  ;;  %v1992_v20 = vand.u32 4294901760, %v1991_v31  ;;  %v1142_v1 = vsub.f32 %v5994_v29, %v8346_v28 }
  0x9d   : > { %4825 = vmatprep.subr.bf16.mxu1 %v4824_v30  ;;  %v1154_v39 = vsub.f32 %v5996_v52, %v8347_v16  ;;  %v8355_v7 = vand.u32 4294901760, %v6010_v34  ;;  %v4634_v59 = vpack.c.bf16 %v1137_v5, %v1125_v24  ;;  %v1997_v18 = vsub.f32 %v6000_v0, %v8349_v46 }
  0x9e   : > { %v2009_v30 = vsub.f32 %v6006_v32, %v8350_v57  ;;  %v8352_v21 = vand.u32 4294901760, %v6015_v56  ;;  %v4826_v37 = vpack.c.bf16 %v1992_v20, %v1980_v38  ;;  %v1143_v31 = vand.u32 4294901760, %v1142_v1 }
  0x9f   : > { %v1155_v28 = vand.u32 4294901760, %v1154_v39  ;;  %v1148_v16 = vsub.f32 %v6010_v34, %v8355_v7  ;;  %4635 = vmatpush1.bf16.msra.mxu0 %v4634_v59  ;;  %v1998_v33 = vand.u32 4294901760, %v1997_v18  ;;  %v8353_v46 = vand.u32 4294901760, %v6019_v27  ;;  %v8609_v18 = vld [vmem:[#allocation11_spill] sm:$0xff]  ;;  %v8615_v7 = vld [vmem:[#allocation34_spill] sm:$0xff] }
  0xa0   : > { %v2010_v24 = vand.u32 4294901760, %v2009_v30  ;;  %v1160_v5 = vsub.f32 %v6015_v56, %v8352_v21  ;;  %4827 = vmatpush1.bf16.msra.mxu1 %v4826_v37  ;;  %v8354_v20 = vand.u32 4294901760, %v6021_v4  ;;  %v4640_v30 = vpack.c.bf16 %v8609_v18, %v5744_v17 }
  0xa1   : > { %v4636_v57 = vpack.c.bf16 %v1155_v28, %v1143_v31  ;;  %v1149_v10 = vand.u32 4294901760, %v1148_v16  ;;  %v2003_v39 = vsub.f32 %v6019_v27, %v8353_v46  ;;  %v8610_v31 = vld [vmem:[#allocation12_spill] sm:$0xff]  ;;  %v8616_v18 = vmov 0.0  }
  0xa2   : > { %v4828_v38 = vpack.c.bf16 %v2010_v24, %v1998_v33  ;;  %v1161_v1 = vand.u32 4294901760, %v1160_v5  ;;  %v2015_v59 = vsub.f32 %v6021_v4, %v8354_v20  ;;  %v8611_v33 = vld [vmem:[#allocation14_spill] sm:$0xff]  ;;  %v8612_v5 = vld [vmem:[#allocation16_spill] sm:$0xff]  ;;  %v8617_v17 = vand.u32 4294901760, %v8610_v31 }
  0xa3   : > { %4637 = vmatprep.subr.bf16.mxu0 %v4636_v57  ;;  %v2004_v28 = vand.u32 4294901760, %v2003_v39  ;;  %v4832_v24 = vpack.c.bf16 %v8611_v33, %v8610_v31  ;;  %v4642_v21 = vpack.c.bf16 %v8612_v5, %v5759_v26  ;;  %v4644_v57 = vpack.c.bf16 %v5783_v47, %v5776_v42  ;;  %v8613_v20 = vld [vmem:[#allocation74_spill] sm:$0xff] }
  0xa4   : > { %4829 = vmatprep.subr.bf16.mxu1 %v4828_v38  ;;  %v4638_v37 = vpack.c.bf16 %v1161_v1, %v1149_v10  ;;  %v2016_v16 = vand.u32 4294901760, %v2015_v59  ;;  %v4834_v10 = vpack.c.bf16 %v5774_v41, %v5772_v40  ;;  %v4836_v38 = vpack.c.bf16 %v5791_v51, %v5787_v49 }
  0xa5   : > { %v4646_v1 = vpack.c.bf16 %v5801_v62, %v5793_v53  ;;  %v4838_v39 = vpack.c.bf16 %v5810_v6, %v5803_v63  ;;  %v4648_v59 = vpack.c.bf16 %v5820_v12, %v5814_v8  ;;  %v8618_v4 = vand.u32 4294901760, %v8611_v33 }
  0xa6   : > { %4639 = vmatpush1.bf16.msra.mxu0 %v4638_v37  ;;  %v4830_v46 = vpack.c.bf16 %v2016_v16, %v2004_v28  ;;  %v4842_v37 = vpack.c.bf16 %v5845_v50, %v5843_v45  ;;  %v4652_v28 = vpack.c.bf16 %v5856_v58, %v5849_v54  ;;  %v4654_v16 = vpack.c.bf16 %v5874_v11, %v5867_v9 }
  0xa7   : > { %4641 = vmatprep.subr.bf16.mxu0 %v4640_v30  ;;  %v4650_v30 = vpack.c.bf16 %v5836_v36, %v5834_v35  ;;  %v6335_v27 = vpack.c.bf16 %v8618_v4, %v8617_v17  ;;  %v8619_v56 = vand.u32 4294901760, %v5759_v26  ;;  %v8621_v32 = vand.u32 4294901760, %v5772_v40 }
  0xa8   : > { %4831 = vmatpush1.bf16.msra.mxu1 %v4830_v46  ;;  %v4840_v46 = vpack.c.bf16 %v5826_v15, %v5824_v14  ;;  %v8622_v0 = vand.u32 4294901760, %v5774_v41  ;;  %v8623_v31 = vand.u32 4294901760, %v5776_v42  ;;  %v8624_v17 = vand.u32 4294901760, %v5783_v47 }
  0xa9   : > { %1197 = vmatmul.mubr.f32.vlgmr.msra.gmra.mrb[0].mxu0 %v8613_v20  ;;  %4833 = vmatprep.subr.bf16.mxu1 %v4832_v24  ;;  %v8614_v24 = vld [vmem:[#allocation33_spill] sm:$0xff]  ;;  %v8625_v26 = vand.u32 4294901760, %v5787_v49  ;;  %v8626_v33 = vand.u32 4294901760, %v5791_v51  ;;  %v8627_v40 = vand.u32 4294901760, %v5793_v53  ;;  %v8628_v41 = vand.u32 4294901760, %v5801_v62 }
  0xaa   : > { %4643 = vmatpush1.bf16.msra.mxu0 %v4642_v21  ;;  %v4844_v21 = vpack.c.bf16 %v5863_v2, %v5860_v60  ;;  %1331 = vmatprep.mubr.f32.mxu0 %v8616_v18  ;;  %v6348_v52 = vpack.c.bf16 %v8622_v0, %v8621_v32  ;;  %v6354_v4 = vpack.c.bf16 %v8624_v17, %v8623_v31  ;;  %v8629_v42 = vand.u32 4294901760, %v5803_v63 }
  0xab   : > { %4645 = vmatprep.subr.bf16.mxu0 %v4644_v57  ;;  %2052 = vmatmul.mubr.f32.vlgmr.msra.gmra.mrb[0].mxu1 %v8613_v20  ;;  %v4656_v57 = vpack.c.bf16 %v8615_v7, %v8614_v24  ;;  %v8620_v20 = vand.u32 4294901760, %v8612_v5  ;;  %v6366_v0 = vpack.c.bf16 %v8628_v41, %v8627_v40  ;;  %v8630_v47 = vand.u32 4294901760, %v5810_v6  ;;  %v8651_v41 = vld [vmem:[#allocation35_spill] sm:$0xff] }
  0xac   : > { %4835 = vmatpush1.bf16.msra.mxu1 %v4834_v10  ;;  %2186 = vmatprep.mubr.f32.mxu1 %v8616_v18  ;;  %v8632_v49 = vand.u32 4294901760, %v5820_v12  ;;  %v8633_v5 = vand.u32 4294901760, %v5824_v14  ;;  %v8634_v53 = vand.u32 4294901760, %v5826_v15  ;;  %v8635_v10 = vand.u32 4294901760, %v5834_v35 }
  0xad   : > { %v6342_v34 = vpack.c.bf16 %v8620_v20, %v8619_v56  ;;  %4837 = vmatprep.subr.bf16.mxu1 %v4836_v38  ;;  %v6360_v56 = vpack.c.bf16 %v8626_v33, %v8625_v26  ;;  %v6372_v32 = vpack.c.bf16 %v8630_v47, %v8629_v42  ;;  %v8631_v20 = vand.u32 4294901760, %v5814_v8  ;;  %v8647_v33 = vld [vmem:[#allocation31_spill] sm:$0xff] }
  0xae   : > { %4647 = vmatpush1.bf16.msra.mxu0 %v4646_v1  ;;  %v6384_v62 = vpack.c.bf16 %v8634_v53, %v8633_v5  ;;  %v8636_v63 = vand.u32 4294901760, %v5836_v36  ;;  %v8637_v38 = vand.u32 4294901760, %v5843_v45  ;;  %v8638_v8 = vand.u32 4294901760, %v5845_v50  ;;  %v8645_v50 = vld [vmem:[#allocation30_spill] sm:$0xff]  ;;  %v8654_v47 = vld [vmem:[#allocation39_spill] sm:$0xff] }
  0xaf   : > { %4649 = vmatprep.subr.bf16.mxu0 %v4648_v59  ;;  %v6378_v51 = vpack.c.bf16 %v8632_v49, %v8631_v20  ;;  %v8639_v12 = vand.u32 4294901760, %v5849_v54  ;;  %v8640_v14 = vand.u32 4294901760, %v5856_v58  ;;  %v8641_v15 = vand.u32 4294901760, %v5860_v60  ;;  %v8656_v49 = vld [vmem:[#allocation40_spill] sm:$0xff] }
  0xb0   : > { %v6390_v6 = vpack.c.bf16 %v8636_v63, %v8635_v10  ;;  %v6396_v1 = vpack.c.bf16 %v8638_v8, %v8637_v38  ;;  %v8642_v35 = vand.u32 4294901760, %v5863_v2  ;;  %v8643_v36 = vand.u32 4294901760, %v5867_v9  ;;  %4839 = vmatpush1.bf16.msra.mxu1 %v4838_v39  ;;  %v8659_v10 = vld [vmem:[#allocation42_spill] sm:$0xff]  ;;  %v8661_v63 = vld [vmem:[#allocation43_spill] sm:$0xff] }
  0xb1   : > { %v6402_v59 = vpack.c.bf16 %v8640_v14, %v8639_v12  ;;  %v8644_v45 = vand.u32 4294901760, %v5874_v11  ;;  %v8646_v26 = vand.u32 4294901760, %v8645_v50  ;;  %v8648_v54 = vand.u32 4294901760, %v8647_v33  ;;  %4841 = vmatprep.subr.bf16.mxu1 %v4840_v46  ;;  %v8666_v12 = vld [vmem:[#allocation46_spill] sm:$0xff] }
  0xb2   : > { %v6408_v31 = vpack.c.bf16 %v8642_v35, %v8641_v15  ;;  %v8649_v58 = vand.u32 4294901760, %v8614_v24  ;;  %v8650_v60 = vand.u32 4294901760, %v8615_v7  ;;  %v8652_v42 = vand.u32 4294901760, %v8651_v41  ;;  %4651 = vmatpush1.bf16.msra.mxu0 %v4650_v30  ;;  %v8664_v7 = vld [vmem:[#allocation45_spill] sm:$0xff]  ;;  %v8669_v35 = vld [vmem:[#allocation47_spill] sm:$0xff] }
  0xb3   : > { %v6414_v17 = vpack.c.bf16 %v8644_v45, %v8643_v36  ;;  %v6420_v40 = vpack.c.bf16 %v8648_v54, %v8646_v26  ;;  %v8653_v9 = vand.u32 4294901760, %v8594_v13  ;;  %v8655_v20 = vand.u32 4294901760, %v8654_v47  ;;  %v8671_v45 = vld [vmem:[#allocation49_spill] sm:$0xff]  ;;  %4653 = vmatprep.subr.bf16.mxu0 %v4652_v28 }
  0xb4   : > { %v6426_v2 = vpack.c.bf16 %v8650_v60, %v8649_v58  ;;  %v8657_v5 = vand.u32 4294901760, %v8656_v49  ;;  %v8660_v39 = vand.u32 4294901760, %v8659_v10  ;;  %v8662_v24 = vand.u32 4294901760, %v8661_v63  ;;  %4843 = vmatpush1.bf16.msra.mxu1 %v4842_v37 }
  0xb5   : > { %v6432_v11 = vpack.c.bf16 %v8653_v9, %v8652_v42  ;;  %v8665_v8 = vand.u32 4294901760, %v8664_v7  ;;  %v8667_v14 = vand.u32 4294901760, %v8666_v12  ;;  %v8670_v36 = vand.u32 4294901760, %v8669_v35  ;;  %4845 = vmatprep.subr.bf16.mxu1 %v4844_v21 }
  0xb6   : > { %v6438_v53 = vpack.c.bf16 %v8657_v5, %v8655_v20  ;;  %v6444_v38 = vpack.c.bf16 %v8662_v24, %v8660_v39  ;;  %v8672_v26 = vand.u32 4294901760, %v8671_v45  ;;  %v8674_v58 = vand.u32 4294901760, %v8602_v19  ;;  %v8681_v5 = vld [vmem:[#allocation58_spill] sm:$0xff]  ;;  %4655 = vmatpush1.bf16.msra.mxu0 %v4654_v16 }
  0xb7   : > { %v6450_v15 = vpack.c.bf16 %v8667_v14, %v8665_v8  ;;  %v8675_v60 = vand.u32 4294901760, %v8603_v43  ;;  %v8677_v46 = vand.u32 4294901760, %v8604_v55  ;;  %v8678_v30 = vand.u32 4294901760, %v8605_v22  ;;  %v8684_v8 = vld [vmem:[#allocation59_spill] sm:$0xff]  ;;  %4657 = vmatprep.subr.bf16.mxu0 %v4656_v57 }
  0xb8   : > { %8658 = vst [vmem:[#allocation37_spill] sm:$0xff] %v6438_v53  ;;  %8663 = vst [vmem:[#allocation51_spill] sm:$0xff] %v6444_v38  ;;  %v6456_v54 = vpack.c.bf16 %v8672_v26, %v8670_v36  ;;  %v8680_v20 = vand.u32 4294901760, %v8606_v25  ;;  %v8682_v39 = vand.u32 4294901760, %v8681_v5  ;;  %v8685_v14 = vand.u32 4294901760, %v8684_v8 }
  0xb9   : > { %8668 = vst [vmem:[#allocation52_spill] sm:$0xff] %v6450_v15  ;;  %v6462_v42 = vpack.c.bf16 %v8675_v60, %v8674_v58  ;;  %v6468_v9 = vpack.c.bf16 %v8678_v30, %v8677_v46  ;;  %v8686_v36 = vand.u32 4294901760, %v5972_v23  ;;  %v8688_v28 = vand.u32 4294901760, %v5976_v48 }
  0xba   : > { %8673 = vst [vmem:[#allocation54_spill] sm:$0xff] %v6456_v54  ;;  %v6474_v24 = vpack.c.bf16 %v8682_v39, %v8680_v20  ;;  %v8689_v58 = vand.u32 4294901760, %v5981_v61  ;;  %v8691_v46 = vand.u32 4294901760, %v5985_v44  ;;  %v8692_v30 = vand.u32 4294901760, %v5987_v3  ;;  %v8695_v39 = vld [vmem:[#allocation64_spill] sm:$0xff] }
  0xbb   : > { %8676 = vst [vmem:[#allocation55_spill] sm:$0xff] %v6462_v42  ;;  %8679 = vst [vmem:[#allocation57_spill] sm:$0xff] %v6468_v9  ;;  %v6480_v26 = vpack.c.bf16 %v8686_v36, %v8685_v14  ;;  %v8694_v20 = vand.u32 4294901760, %v5994_v29  ;;  %v8698_v14 = vld [vmem:[#allocation65_spill] sm:$0xff]  ;;  %v4660_v37 = vpack.c.bf16 %v8666_v12, %v8664_v7  ;;  %v4852_v21 = vpack.c.bf16 %v8671_v45, %v8669_v35  ;;  %v8720_v7 = vld [vmem:[#allocation23_spill] sm:$0xff] }
  0xbc   : > { %8683 = vst [vmem:[#allocation12_spill] sm:$0xff] %v6474_v24  ;;  %v6486_v60 = vpack.c.bf16 %v8689_v58, %v8688_v28  ;;  %v6492_v9 = vpack.c.bf16 %v8692_v30, %v8691_v46  ;;  %v8696_v24 = vand.u32 4294901760, %v8695_v39  ;;  %v8699_v36 = vand.u32 4294901760, %v8698_v14  ;;  %v8702_v28 = vld [vmem:[#allocation69_spill] sm:$0xff]  ;;  %v8706_v30 = vld [vmem:[#allocation72_spill] sm:$0xff]  ;;  %v8724_v45 = vld [vmem:[#allocation27_spill] sm:$0xff] }
  0xbd   : > { %8687 = vst [vmem:[#allocation14_spill] sm:$0xff] %v6480_v26  ;;  %v8700_v26 = vld [vmem:[#allocation67_spill] sm:$0xff]  ;;  %v8703_v58 = vand.u32 4294901760, %v8702_v28  ;;  %v4846_v46 = vpack.c.bf16 %v8647_v33, %v8645_v50  ;;  %v4850_v50 = vpack.c.bf16 %v8661_v63, %v8659_v10  ;;  %v4662_v16 = vpack.c.bf16 %v8603_v43, %v8602_v19  ;;  %v8718_v10 = vld [vmem:[#allocation22_spill] sm:$0xff]  ;;  %v8719_v63 = vld [vmem:[#allocation21_spill] sm:$0xff] }
  0xbe   : > { %8690 = vst [vmem:[#allocation16_spill] sm:$0xff] %v6486_v60  ;;  %8693 = vst [vmem:[#allocation33_spill] sm:$0xff] %v6492_v9  ;;  %v6498_v42 = vpack.c.bf16 %v8696_v24, %v8694_v20  ;;  %v8701_v54 = vand.u32 4294901760, %v8700_v26  ;;  %v8704_v60 = vld [vmem:[#allocation70_spill] sm:$0xff]  ;;  %v8707_v9 = vand.u32 4294901760, %v8706_v30  ;;  %v8708_v24 = vld [vmem:[#allocation73_spill] sm:$0xff]  ;;  %v4854_v57 = vpack.c.bf16 %v8605_v22, %v8604_v55 }
  0xbf   : > { %v8705_v15 = vand.u32 4294901760, %v8704_v60  ;;  %v8709_v20 = vand.u32 4294901760, %v8708_v24  ;;  %4847 = vmatpush1.bf16.msra.mxu1 %v4846_v46  ;;  %v4856_v33 = vpack.c.bf16 %v5972_v23, %v8684_v8  ;;  %v4668_v19 = vpack.c.bf16 %v8695_v39, %v5994_v29  ;;  %v8714_v29 = vld [vmem:[#allocation18_spill] sm:$0xff]  ;;  %v8721_v12 = vld [vmem:[#allocation24_spill] sm:$0xff]  ;;  %v8723_v35 = vld [vmem:[#allocation25_spill] sm:$0xff] }
  0xc0   : > { %8697 = vst [vmem:[#allocation34_spill] sm:$0xff] %v6498_v42  ;;  %v6504_v38 = vpack.c.bf16 %v8701_v54, %v8699_v36  ;;  %v4848_v54 = vpack.c.bf16 %v8594_v13, %v8651_v41  ;;  %v4658_v36 = vpack.c.bf16 %v8656_v49, %v8654_v47  ;;  %v4664_v13 = vpack.c.bf16 %v8681_v5, %v8606_v25  ;;  %v8715_v25 = vld [vmem:[#allocation17_spill] sm:$0xff]  ;;  %v8716_v47 = vld [vmem:[#allocation19_spill] sm:$0xff]  ;;  %v8717_v49 = vld [vmem:[#allocation20_spill] sm:$0xff] }
  0xc1   : > { %v6510_v53 = vpack.c.bf16 %v8705_v15, %v8703_v58  ;;  %v6518_v42 = vpack.c.bf16 %v8709_v20, %v8707_v9  ;;  %v4666_v41 = vpack.c.bf16 %v5981_v61, %v5976_v48  ;;  %v4858_v43 = vpack.c.bf16 %v5987_v3, %v5985_v44  ;;  %v8710_v61 = vld [vmem:[#allocation9_spill] sm:$0xff]  ;;  %v8711_v48 = vld [vmem:[#allocation75_spill] sm:$0xff]  ;;  %v8722_v15 = vld [vmem:[#allocation26_spill] sm:$0xff] }
  0xc2   : > { %4849 = vmatprep.subr.bf16.mxu1 %v4848_v54  ;;  %4659 = vmatpush1.bf16.msra.mxu0 %v4658_v36  ;;  %v4860_v55 = vpack.c.bf16 %v8700_v26, %v8698_v14  ;;  %v4670_v22 = vpack.c.bf16 %v8704_v60, %v8702_v28  ;;  %v4862_v23 = vpack.c.bf16 %v8708_v24, %v8706_v30  ;;  %v8712_v3 = vld [vmem:[#allocation13_spill] sm:$0xff]  ;;  %v8713_v44 = vld [vmem:[#allocation15_spill] sm:$0xff]  ;;  %v8725_v9 = vld [vmem:[#allocation28_spill] sm:$0xff] }
  0xc3   : > { %4661 = vmatprep.subr.bf16.mxu0 %v4660_v37  ;;  %4851 = vmatpush1.bf16.msra.mxu1 %v4850_v50  ;;  %v8726_v5 = vld [vmem:[#allocation32_spill] sm:$0xff]  ;;  %v8727_v8 = vld [vmem:[#allocation29_spill] sm:$0xff]  ;;  %v8729_v60 = vld [vmem:[#allocation38_spill] sm:$0xff] }
  0xc4   : > { %4853 = vmatprep.subr.bf16.mxu1 %v4852_v21  ;;  %v8728_v26 = vld [vmem:[#allocation36_spill] sm:$0xff]  ;;  %v8731_v14 = vld [vmem:[#allocation41_spill] sm:$0xff]  ;;  %v8733_v58 = vld [vmem:[#allocation50_spill] sm:$0xff] }
  0xc5   : > { %v8730_v39 = vld [vmem:[#allocation44_spill] sm:$0xff]  ;;  %v8735_v30 = vld [vmem:[#allocation53_spill] sm:$0xff]  ;;  %v8738_v54 = vld [vmem:[#allocation63_spill] sm:$0xff] }
  0xc6   : > { %4663 = vmatpush1.bf16.msra.mxu0 %v4662_v16  ;;  %v8732_v28 = vld [vmem:[#allocation48_spill] sm:$0xff]  ;;  %v8737_v20 = vld [vmem:[#allocation61_spill] sm:$0xff]  ;;  %v8739_v36 = vld [vmem:[#allocation10_spill] sm:$0xff] }
  0xc7   : > { %4665 = vmatprep.subr.bf16.mxu0 %v4664_v13  ;;  %4855 = vmatpush1.bf16.msra.mxu1 %v4854_v57  ;;  %v8734_v46 = vld [vmem:[#allocation56_spill] sm:$0xff]  ;;  %v8740_v37 = vand.u32 4294901760, %v8739_v36  ;;  %v8741_v50 = vld [vmem:[#allocation11_spill] sm:$0xff]  ;;  %v8743_v13 = vld [vmem:[#allocation62_spill] sm:$0xff] }
  0xc8   : > { %4857 = vmatprep.subr.bf16.mxu1 %v4856_v33  ;;  %v8736_v24 = vld [vmem:[#allocation60_spill] sm:$0xff]  ;;  %v8742_v21 = vand.u32 4294901760, %v8741_v50  ;;  %v8744_v57 = vld [vmem:[#allocation66_spill] sm:$0xff] }
  0xc9   : > { %v8745_v33 = vld [vmem:[#allocation68_spill] sm:$0xff] }
  0xca   : > { %4667 = vmatpush1.bf16.msra.mxu0 %v4666_v41  ;;  %v4704_v16 = vpack.c.bf16 %v8742_v21, %v8740_v37  ;;  %v8746_v41 = vld [vmem:[#allocation71_spill] sm:$0xff]  ;;  %v758_v37 = vld [vmem:[%s5725_s22 + $0xb8] sm:$0xff] }
  0xcb   : > { %4669 = vmatprep.subr.bf16.mxu0 %v4668_v19  ;;  %4859 = vmatpush1.bf16.msra.mxu1 %v4858_v43  ;;  %v8747_v19 = vld [vmem:[#allocation76_spill] sm:$0xff] }
  0xcc   : > { %4861 = vmatprep.subr.bf16.mxu1 %v4860_v55  ;;  %v764_v55 = vld [vmem:[%s5725_s22 + $0xe8] sm:$0xff]  ;;  %v766_v50 = vld [vmem:[%s5725_s22 + $0xf8] sm:$0xff] }
  0xce   : > { %4671 = vmatpush1.bf16.msra.mxu0 %v4670_v22  ;;  %v8749_v22 = vld [vmem:[#allocation52_spill] sm:$0xff] }
  0xcf   : > { %4673 = vmatprep.subr.bf16.mxu0 %v8710_v61  ;;  %4863 = vmatpush1.bf16.msra.mxu1 %v4862_v23 }
  0xd0   : > { %4865 = vmatprep.subr.bf16.mxu1 %v8712_v3 }
  0xd1   : > { %1334 = vmatmul.mubr.f32.vlgmr.msra.gmra.mrb[0].mxu0 %v8711_v48 }
  0xd2   : > { %4675 = vmatpush1.bf16.msra.mxu0 %v8713_v44  ;;  %1436 = vmatprep.mubr.f32.mxu0 %v8616_v18 }
  0xd3   : > { %4677 = vmatprep.subr.bf16.mxu0 %v8714_v29  ;;  %2189 = vmatmul.mubr.f32.vlgmr.msra.gmra.mrb[0].mxu1 %v8711_v48 }
  0xd4   : > { %4867 = vmatpush1.bf16.msra.mxu1 %v8715_v25  ;;  %2291 = vmatprep.mubr.f32.mxu1 %v8616_v18 }
  0xd5   : > { %4869 = vmatprep.subr.bf16.mxu1 %v8716_v47 }
  0xd6   : > { %4679 = vmatpush1.bf16.msra.mxu0 %v8717_v49 }
  0xd7   : > { %4681 = vmatprep.subr.bf16.mxu0 %v8718_v10 }
  0xd8   : > { %4871 = vmatpush1.bf16.msra.mxu1 %v8719_v63 }
  0xd9   : > { %4873 = vmatprep.subr.bf16.mxu1 %v8720_v7 }
  0xda   : > { %4683 = vmatpush1.bf16.msra.mxu0 %v8721_v12 }
  0xdb   : > { %4685 = vmatprep.subr.bf16.mxu0 %v8722_v15 }
  0xdc   : > { %4875 = vmatpush1.bf16.msra.mxu1 %v8723_v35 }
  0xdd   : > { %4877 = vmatprep.subr.bf16.mxu1 %v8724_v45 }
  0xde   : > { %4687 = vmatpush1.bf16.msra.mxu0 %v8725_v9 }
  0xdf   : > { %4689 = vmatprep.subr.bf16.mxu0 %v8726_v5 }
  0xe0   : > { %4879 = vmatpush1.bf16.msra.mxu1 %v8727_v8 }
  0xe1   : > { %4881 = vmatprep.subr.bf16.mxu1 %v8728_v26 }
  0xe2   : > { %4691 = vmatpush1.bf16.msra.mxu0 %v8729_v60 }
  0xe3   : > { %4693 = vmatprep.subr.bf16.mxu0 %v8730_v39 }
  0xe4   : > { %4883 = vmatpush1.bf16.msra.mxu1 %v8731_v14 }
  0xe5   : > { %4885 = vmatprep.subr.bf16.mxu1 %v8732_v28 }
  0xe6   : > { %4695 = vmatpush1.bf16.msra.mxu0 %v8733_v58 }
  0xe7   : > { %4697 = vmatprep.subr.bf16.mxu0 %v8734_v46 }
  0xe8   : > { %4887 = vmatpush1.bf16.msra.mxu1 %v8735_v30  ;;  %v8766_v30 = vld [vmem:[#allocation57_spill] sm:$0xff] }
  0xe9   : > { %4889 = vmatprep.subr.bf16.mxu1 %v8736_v24  ;;  %v774_v24 = vld [vmem:[%s5725_s22 + $0x138] sm:$0xff] }
  0xea   : > { %4699 = vmatpush1.bf16.msra.mxu0 %v8737_v20 }
  0xeb   : > { %4701 = vmatprep.subr.bf16.mxu0 %v8738_v54 }
  0xec   : > { %4891 = vmatpush1.bf16.msra.mxu1 %v8743_v13  ;;  %v757_v13 = vld [vmem:[%s5725_s22 + $0xb0] sm:$0xff] }
  0xed   : > { %4893 = vmatprep.subr.bf16.mxu1 %v8744_v57  ;;  %v763_v57 = vld [vmem:[%s5725_s22 + $0xe0] sm:$0xff] }
  0xee   : > { %4703 = vmatpush1.bf16.msra.mxu0 %v8745_v33  ;;  %v2585_v33 = vand.u32 4294901760, %v764_v55 }
  0xef   : > { %4705 = vmatprep.subr.bf16.mxu0 %v4704_v16 }
  0xf0   : > { %4895 = vmatpush1.bf16.msra.mxu1 %v8746_v41 }
  0xf1   : > { %1440 = vmatmul.mubr.f32.vlgmr.msra.gmra.mrb[0].mxu0 %v8747_v19  ;;  %4897 = vmatprep.subr.bf16.mxu1 %v6335_v27  ;;  %v740_v27 = vld [vmem:[%s5725_s22 + $0x28] sm:$0xff] }
  0xf2   : > { %4707 = vmatpush1.bf16.msra.mxu0 %v6342_v34  ;;  %1606 = vmatprep.mubr.f32.mxu0 %v8616_v18  ;;  %v742_v34 = vld [vmem:[%s5725_s22 + $0x38] sm:$0xff] }
  0xf3   : > { %4709 = vmatprep.subr.bf16.mxu0 %v6354_v4  ;;  %2295 = vmatmul.mubr.f32.vlgmr.msra.gmra.mrb[0].mxu1 %v8747_v19  ;;  %v750_v4 = vld [vmem:[%s5725_s22 + $0x78] sm:$0xff]  ;;  %v8754_v19 = vld [vmem:[#allocation51_spill] sm:$0xff] }
  0xf4   : > { %4899 = vmatpush1.bf16.msra.mxu1 %v6348_v52  ;;  %2461 = vmatprep.mubr.f32.mxu1 %v8616_v18  ;;  %v748_v52 = vld [vmem:[%s5725_s22 + $0x68] sm:$0xff] }
  0xf5   : > { %4901 = vmatprep.subr.bf16.mxu1 %v6360_v56  ;;  %v739_v56 = vld [vmem:[%s5725_s22 + $0x20] sm:$0xff] }
  0xf6   : > { %4711 = vmatpush1.bf16.msra.mxu0 %v6366_v0  ;;  %v747_v0 = vld [vmem:[%s5725_s22 + $0x60] sm:$0xff] }
  0xf7   : > { %4713 = vmatprep.subr.bf16.mxu0 %v6378_v51  ;;  %v2577_v51 = vand.u32 4294901760, %v748_v52  ;;  %v2579_v43 = vand.u32 4294901760, %v747_v0 }
  0xf8   : > { %4903 = vmatpush1.bf16.msra.mxu1 %v6372_v32  ;;  %v2573_v32 = vand.u32 4294901760, %v740_v27 }
  0xf9   : > { %4905 = vmatprep.subr.bf16.mxu1 %v6384_v62  ;;  %v3428_v62 = vand.u32 4294901760, %v742_v34 }
  0xfa   : > { %4715 = vmatpush1.bf16.msra.mxu0 %v6390_v6  ;;  %v3432_v6 = vand.u32 4294901760, %v750_v4  ;;  %v6625_v21 = vpack.c.bf16 %v2577_v51, %v2573_v32 }
  0xfb   : > { %4717 = vmatprep.subr.bf16.mxu0 %v6402_v59  ;;  %v749_v59 = vld [vmem:[%s5725_s22 + $0x70] sm:$0xff] }
  0xfc   : > { %4907 = vmatpush1.bf16.msra.mxu1 %v6396_v1  ;;  %v741_v1 = vld [vmem:[%s5725_s22 + $0x30] sm:$0xff]  ;;  %v3434_v36 = vand.u32 4294901760, %v749_v59  ;;  %8750 = vst [vmem:[#allocation30_spill] sm:$0xff] %v6625_v21  ;;  %v6631_v16 = vpack.c.bf16 %v3432_v6, %v3428_v62  ;;  %v6637_v48 = vsub.f32 %v750_v4, %v3432_v6  ;;  %v780_v4 = vld [vmem:[%s5725_s22 + $0x168] sm:$0xff]  ;;  %v8761_v6 = vld [vmem:[#allocation12_spill] sm:$0xff] }
  0xfd   : > { %4909 = vmatprep.subr.bf16.mxu1 %v6408_v31  ;;  %v8748_v31 = vld [vmem:[#allocation37_spill] sm:$0xff]  ;;  %v3430_v23 = vand.u32 4294901760, %v741_v1  ;;  %v765_v21 = vld [vmem:[%s5725_s22 + $0xf0] sm:$0xff] }
  0xfe   : > { %4719 = vmatpush1.bf16.msra.mxu0 %v6414_v17  ;;  %v2575_v17 = vand.u32 4294901760, %v739_v56  ;;  %8753 = vst [vmem:[#allocation39_spill] sm:$0xff] %v6631_v16  ;;  %8756 = vst [vmem:[#allocation42_spill] sm:$0xff] %v6637_v48  ;;  %v6651_v16 = vsub.f32 %v747_v0, %v2579_v43 }
  0xff   : > { %4721 = vmatprep.subr.bf16.mxu0 %v6426_v2  ;;  %v756_v2 = vld [vmem:[%s5725_s22 + $0xa8] sm:$0xff]  ;;  %v6653_v54 = vpack.c.bf16 %v3434_v36, %v3430_v23  ;;  %v6655_v20 = vsub.f32 %v741_v1, %v3430_v23  ;;  %v8770_v23 = vld [vmem:[#allocation16_spill] sm:$0xff] }
 0x100   : > { %4911 = vmatpush1.bf16.msra.mxu1 %v6420_v40  ;;  %v6627_v40 = vsub.f32 %v740_v27, %v2573_v32  ;;  %v2581_v41 = vand.u32 4294901760, %v756_v2  ;;  %v8757_v27 = vld [vmem:[#allocation54_spill] sm:$0xff]  ;;  %v6644_v32 = vpack.c.bf16 %v2579_v43, %v2575_v17  ;;  %8762 = vst [vmem:[#allocation46_spill] sm:$0xff] %v6651_v16  ;;  %v2593_v43 = vand.u32 4294901760, %v780_v4 }
 0x101   : > { %4913 = vmatprep.subr.bf16.mxu1 %v6432_v11  ;;  %v6629_v11 = vsub.f32 %v748_v52, %v2577_v51  ;;  %v8758_v52 = vld [vmem:[#allocation55_spill] sm:$0xff]  ;;  %v6646_v51 = vsub.f32 %v739_v56, %v2575_v17  ;;  %8763 = vst [vmem:[#allocation47_spill] sm:$0xff] %v6653_v54  ;;  %8764 = vst [vmem:[#allocation49_spill] sm:$0xff] %v6655_v20  ;;  %v3438_v56 = vand.u32 4294901760, %v757_v13  ;;  %v3442_v17 = vand.u32 4294901760, %v765_v21 }
 0x102   : > { %4723 = vmatpush1.bf16.msra.mxu0 %v8748_v31  ;;  %8751 = vst [vmem:[#allocation31_spill] sm:$0xff] %v6627_v40  ;;  %v755_v31 = vld [vmem:[%s5725_s22 + $0xa0] sm:$0xff]  ;;  %8759 = vst [vmem:[#allocation43_spill] sm:$0xff] %v6644_v32  ;;  %v2587_v32 = vand.u32 4294901760, %v763_v57  ;;  %v6662_v48 = vpack.c.bf16 %v2585_v33, %v2581_v41  ;;  %v6664_v0 = vsub.f32 %v756_v2, %v2581_v41 }
 0x103   : > { %4725 = vmatprep.subr.bf16.mxu0 %v8749_v22  ;;  %8752 = vst [vmem:[#allocation35_spill] sm:$0xff] %v6629_v11  ;;  %v6635_v22 = vsub.f32 %v742_v34, %v3428_v62  ;;  %8760 = vst [vmem:[#allocation45_spill] sm:$0xff] %v6646_v51  ;;  %v3440_v34 = vand.u32 4294901760, %v766_v50  ;;  %v772_v62 = vld [vmem:[%s5725_s22 + $0x128] sm:$0xff]  ;;  %v782_v51 = vld [vmem:[%s5725_s22 + $0x178] sm:$0xff] }
 0x104   : > { %4915 = vmatpush1.bf16.msra.mxu1 %v8754_v19  ;;  %v3436_v19 = vand.u32 4294901760, %v758_v37  ;;  %8767 = vst [vmem:[#allocation59_spill] sm:$0xff] %v6662_v48  ;;  %8768 = vst [vmem:[#allocation64_spill] sm:$0xff] %v6664_v0  ;;  %v2589_v1 = vand.u32 4294901760, %v772_v62  ;;  %v779_v48 = vld [vmem:[%s5725_s22 + $0x160] sm:$0xff] }
 0x105   : > { %8755 = vst [vmem:[#allocation40_spill] sm:$0xff] %v6635_v22  ;;  %4917 = vmatprep.subr.bf16.mxu1 %v8757_v27  ;;  %v6657_v27 = vsub.f32 %v749_v59, %v3434_v36  ;;  %v8769_v59 = vld [vmem:[#allocation14_spill] sm:$0xff]  ;;  %v6668_v36 = vsub.f32 %v764_v55, %v2585_v33  ;;  %v6677_v41 = vsub.f32 %v766_v50, %v3440_v34  ;;  %v773_v33 = vld [vmem:[%s5725_s22 + $0x130] sm:$0xff] }
 0x106   : > { %4727 = vmatpush1.bf16.msra.mxu0 %v8758_v52  ;;  %v2583_v52 = vand.u32 4294901760, %v755_v31  ;;  %v6672_v54 = vsub.f32 %v758_v37, %v3436_v19  ;;  %v781_v55 = vld [vmem:[%s5725_s22 + $0x170] sm:$0xff]  ;;  %v6687_v37 = vpack.c.bf16 %v3442_v17, %v3438_v56  ;;  %v796_v50 = vld [vmem:[%s5725_s22 + $0x1e8] sm:$0xff] }
 0x107   : > { %4729 = vmatprep.subr.bf16.mxu0 %v8761_v6  ;;  %8765 = vst [vmem:[#allocation58_spill] sm:$0xff] %v6657_v27  ;;  %8771 = vst [vmem:[#allocation65_spill] sm:$0xff] %v6668_v36  ;;  %v6670_v6 = vpack.c.bf16 %v3440_v34, %v3436_v19  ;;  %v8774_v27 = vld [vmem:[#allocation34_spill] sm:$0xff]  ;;  %v6689_v19 = vsub.f32 %v757_v13, %v3438_v56  ;;  %v6694_v34 = vsub.f32 %v765_v21, %v3442_v17  ;;  %v787_v21 = vld [vmem:[%s5725_s22 + $0x1a0] sm:$0xff] }
 0x108   : > { %4919 = vmatpush1.bf16.msra.mxu1 %v8766_v30  ;;  %8773 = vst [vmem:[#allocation69_spill] sm:$0xff] %v6672_v54  ;;  %v771_v30 = vld [vmem:[%s5725_s22 + $0x120] sm:$0xff]  ;;  %8775 = vst [vmem:[#allocation70_spill] sm:$0xff] %v6677_v41  ;;  %v6679_v2 = vsub.f32 %v755_v31, %v2583_v52  ;;  %v6683_v36 = vpack.c.bf16 %v2587_v32, %v2583_v52  ;;  %v2595_v54 = vand.u32 4294901760, %v779_v48  ;;  %v790_v52 = vld [vmem:[%s5725_s22 + $0x1b8] sm:$0xff]  ;;  %v3450_v56 = vand.u32 4294901760, %v781_v55 }
 0x109   : > { %4921 = vmatprep.subr.bf16.mxu1 %v8769_v59  ;;  %8772 = vst [vmem:[#allocation67_spill] sm:$0xff] %v6670_v6  ;;  %v3444_v59 = vand.u32 4294901760, %v774_v24  ;;  %v6685_v6 = vsub.f32 %v763_v57, %v2587_v32  ;;  %8779 = vst [vmem:[#allocation13_spill] sm:$0xff] %v6687_v37  ;;  %v8781_v31 = vld [vmem:[#allocation33_spill] sm:$0xff]  ;;  %v2591_v41 = vand.u32 4294901760, %v771_v30  ;;  %v6702_v13 = vsub.f32 %v772_v62, %v2589_v1 }
 0x10a   : > { %4731 = vmatpush1.bf16.msra.mxu0 %v8770_v23  ;;  %8776 = vst [vmem:[#allocation72_spill] sm:$0xff] %v6679_v2  ;;  %v3448_v23 = vand.u32 4294901760, %v782_v51  ;;  %8777 = vst [vmem:[#allocation73_spill] sm:$0xff] %v6683_v36  ;;  %v6696_v2 = vpack.c.bf16 %v2593_v43, %v2589_v1  ;;  %v798_v36 = vld [vmem:[%s5725_s22 + $0x1f8] sm:$0xff]  ;;  %v6704_v57 = vsub.f32 %v780_v4, %v2593_v43  ;;  %v3446_v32 = vand.u32 4294901760, %v773_v33  ;;  %v795_v17 = vld [vmem:[%s5725_s22 + $0x1e0] sm:$0xff] }
 0x10b   : > { %4733 = vmatprep.subr.bf16.mxu0 %v8774_v27  ;;  %8778 = vst [vmem:[#allocation9_spill] sm:$0xff] %v6685_v6  ;;  %8780 = vst [vmem:[#allocation15_spill] sm:$0xff] %v6689_v19  ;;  %v788_v27 = vld [vmem:[%s5725_s22 + $0x1a8] sm:$0xff]  ;;  %v6711_v37 = vsub.f32 %v774_v24, %v3444_v59  ;;  %v6715_v62 = vsub.f32 %v771_v30, %v2591_v41  ;;  %v3452_v4 = vand.u32 4294901760, %v790_v52  ;;  %v3456_v1 = vand.u32 4294901760, %v798_v36  ;;  %v789_v43 = vld [vmem:[%s5725_s22 + $0x1b0] sm:$0xff] }
 0x10c   : > { %4923 = vmatpush1.bf16.msra.mxu1 %v8781_v31  ;;  %8782 = vst [vmem:[#allocation18_spill] sm:$0xff] %v6694_v34  ;;  %8783 = vst [vmem:[#allocation17_spill] sm:$0xff] %v6696_v2  ;;  %v6709_v31 = vpack.c.bf16 %v3448_v23, %v3444_v59  ;;  %v6713_v2 = vsub.f32 %v782_v51, %v3448_v23  ;;  %v6723_v24 = vsub.f32 %v779_v48, %v2595_v54  ;;  %v804_v51 = vld [vmem:[%s5725_s22 + $0x228] sm:$0xff] }
 0x10d   : > { %4925 = vmatprep.subr.bf16.mxu1 %v6504_v38  ;;  %8784 = vst [vmem:[#allocation19_spill] sm:$0xff] %v6702_v13  ;;  %8785 = vst [vmem:[#allocation20_spill] sm:$0xff] %v6704_v57  ;;  %v2597_v38 = vand.u32 4294901760, %v788_v27  ;;  %v797_v57 = vld [vmem:[%s5725_s22 + $0x1f0] sm:$0xff]  ;;  %v2599_v59 = vand.u32 4294901760, %v787_v21  ;;  %v812_v23 = vld [vmem:[%s5725_s22 + $0x268] sm:$0xff]  ;;  %v6729_v30 = vpack.c.bf16 %v3450_v56, %v3446_v32 }
 0x10e   : > { %4735 = vmatpush1.bf16.msra.mxu0 %v6510_v53  ;;  %8786 = vst [vmem:[#allocation22_spill] sm:$0xff] %v6709_v31  ;;  %8787 = vst [vmem:[#allocation21_spill] sm:$0xff] %v6711_v37  ;;  %v2601_v53 = vand.u32 4294901760, %v796_v50  ;;  %v6721_v31 = vpack.c.bf16 %v2595_v54, %v2591_v41  ;;  %v2603_v37 = vand.u32 4294901760, %v795_v17  ;;  %v806_v41 = vld [vmem:[%s5725_s22 + $0x238] sm:$0xff] }
 0x10f   : > { %4737 = vmatprep.subr.bf16.mxu0 %v8710_v61  ;;  %8788 = vst [vmem:[#allocation23_spill] sm:$0xff] %v6713_v2  ;;  %8789 = vst [vmem:[#allocation24_spill] sm:$0xff] %v6715_v62  ;;  %v8790_v61 = vld [vmem:[#allocation74_spill] sm:$0xff]  ;;  %v6731_v62 = vsub.f32 %v773_v33, %v3446_v32  ;;  %v6740_v54 = vsub.f32 %v788_v27, %v2597_v38  ;;  %v2605_v32 = vand.u32 4294901760, %v804_v51 }
 0x110   : > { %4927 = vmatpush1.bf16.msra.mxu1 %v6518_v42  ;;  %8791 = vst [vmem:[#allocation26_spill] sm:$0xff] %v6721_v31  ;;  %8792 = vst [vmem:[#allocation25_spill] sm:$0xff] %v6723_v24  ;;  %v6733_v42 = vsub.f32 %v781_v55, %v3450_v56  ;;  %v6738_v48 = vpack.c.bf16 %v2601_v53, %v2597_v38  ;;  %v6744_v33 = vsub.f32 %v796_v50, %v2601_v53  ;;  %v811_v31 = vld [vmem:[%s5725_s22 + $0x260] sm:$0xff]  ;;  %v805_v53 = vld [vmem:[%s5725_s22 + $0x230] sm:$0xff] }
 0x111   : > { %1608 = vmatmul.mubr.f32.vlgmr.msra.gmra.mrb[0].mxu0 %v8790_v61  ;;  %4929 = vmatprep.subr.bf16.mxu1 %v8712_v3  ;;  %8793 = vst [vmem:[#allocation27_spill] sm:$0xff] %v6729_v30  ;;  %8794 = vst [vmem:[#allocation28_spill] sm:$0xff] %v6731_v62  ;;  %v3454_v3 = vand.u32 4294901760, %v789_v43  ;;  %v814_v30 = vld [vmem:[%s5725_s22 + $0x278] sm:$0xff]  ;;  %v6746_v55 = vpack.c.bf16 %v3456_v1, %v3452_v4  ;;  %v2609_v56 = vand.u32 4294901760, %v812_v23  ;;  %v3460_v50 = vand.u32 4294901760, %v806_v41 }
 0x112   : > { %4739 = vmatpush1.bf16.msra.mxu0 %v8713_v44  ;;  %8795 = vst [vmem:[#allocation32_spill] sm:$0xff] %v6733_v42  ;;  %1710 = vmatprep.mubr.f32.mxu0 %v8616_v18  ;;  %8796 = vst [vmem:[#allocation29_spill] sm:$0xff] %v6738_v48  ;;  %v3458_v44 = vand.u32 4294901760, %v797_v57  ;;  %v6752_v27 = vsub.f32 %v790_v52, %v3452_v4  ;;  %v6754_v38 = vsub.f32 %v798_v36, %v3456_v1  ;;  %v820_v36 = vld [vmem:[%s5725_s22 + $0x2a8] sm:$0xff] }
 0x113   : > { %4741 = vmatprep.subr.bf16.mxu0 %v8714_v29  ;;  %8797 = vst [vmem:[#allocation36_spill] sm:$0xff] %v6740_v54  ;;  %2463 = vmatmul.mubr.f32.vlgmr.msra.gmra.mrb[0].mxu1 %v8790_v61  ;;  %8798 = vst [vmem:[#allocation38_spill] sm:$0xff] %v6744_v33  ;;  %v803_v29 = vld [vmem:[%s5725_s22 + $0x220] sm:$0xff]  ;;  %v6756_v48 = vpack.c.bf16 %v2603_v37, %v2599_v59  ;;  %v813_v33 = vld [vmem:[%s5725_s22 + $0x270] sm:$0xff]  ;;  %v6766_v54 = vsub.f32 %v789_v43, %v3454_v3  ;;  %v3464_v52 = vand.u32 4294901760, %v814_v30 }
 0x114   : > { %8799 = vst [vmem:[#allocation44_spill] sm:$0xff] %v6746_v55  ;;  %4931 = vmatpush1.bf16.msra.mxu1 %v8715_v25  ;;  %2565 = vmatprep.mubr.f32.mxu1 %v8616_v18  ;;  %8800 = vst [vmem:[#allocation41_spill] sm:$0xff] %v6752_v27  ;;  %v6762_v55 = vsub.f32 %v787_v21, %v2599_v59  ;;  %v6764_v25 = vsub.f32 %v795_v17, %v2603_v37  ;;  %v828_v4 = vld [vmem:[%s5725_s22 + $0x2e8] sm:$0xff]  ;;  %v3462_v37 = vand.u32 4294901760, %v805_v53  ;;  %v822_v43 = vld [vmem:[%s5725_s22 + $0x2b8] sm:$0xff] }
 0x115   : > { %8801 = vst [vmem:[#allocation48_spill] sm:$0xff] %v6754_v38  ;;  %8802 = vst [vmem:[#allocation50_spill] sm:$0xff] %v6756_v48  ;;  %4933 = vmatprep.subr.bf16.mxu1 %v8716_v47  ;;  %v6771_v1 = vpack.c.bf16 %v3458_v44, %v3454_v3  ;;  %v6773_v47 = vsub.f32 %v797_v57, %v3458_v44  ;;  %v2611_v38 = vand.u32 4294901760, %v811_v31  ;;  %v3466_v17 = vand.u32 4294901760, %v813_v33  ;;  %v819_v44 = vld [vmem:[%s5725_s22 + $0x2a0] sm:$0xff] }
 0x116   : > { %4743 = vmatpush1.bf16.msra.mxu0 %v8717_v49  ;;  %8803 = vst [vmem:[#allocation56_spill] sm:$0xff] %v6762_v55  ;;  %8804 = vst [vmem:[#allocation10_spill] sm:$0xff] %v6764_v25  ;;  %v2607_v49 = vand.u32 4294901760, %v803_v29  ;;  %v6775_v21 = vpack.c.bf16 %v2609_v56, %v2605_v32  ;;  %v6777_v59 = vsub.f32 %v804_v51, %v2605_v32  ;;  %v2613_v57 = vand.u32 4294901760, %v820_v36 }
 0x117   : > { %8805 = vst [vmem:[#allocation11_spill] sm:$0xff] %v6766_v54  ;;  %4745 = vmatprep.subr.bf16.mxu0 %v8718_v10  ;;  %8806 = vst [vmem:[#allocation37_spill] sm:$0xff] %v6771_v1  ;;  %v830_v54 = vld [vmem:[%s5725_s22 + $0x2f8] sm:$0xff]  ;;  %v6782_v25 = vsub.f32 %v812_v23, %v2609_v56  ;;  %v6784_v10 = vsub.f32 %v806_v41, %v3460_v50  ;;  %v2617_v3 = vand.u32 4294901760, %v828_v4  ;;  %v3468_v56 = vand.u32 4294901760, %v822_v43 }
 0x118   : > { %8807 = vst [vmem:[#allocation52_spill] sm:$0xff] %v6773_v47  ;;  %8808 = vst [vmem:[#allocation51_spill] sm:$0xff] %v6775_v21  ;;  %4935 = vmatpush1.bf16.msra.mxu1 %v8719_v63  ;;  %v827_v47 = vld [vmem:[%s5725_s22 + $0x2e0] sm:$0xff]  ;;  %v6790_v51 = vpack.c.bf16 %v3464_v52, %v3460_v50  ;;  %v6792_v32 = vsub.f32 %v814_v30, %v3464_v52  ;;  %v6794_v63 = vsub.f32 %v803_v29, %v2607_v49  ;;  %v836_v52 = vld [vmem:[%s5725_s22 + $0x328] sm:$0xff] }
 0x119   : > { %8809 = vst [vmem:[#allocation54_spill] sm:$0xff] %v6777_v59  ;;  %8810 = vst [vmem:[#allocation55_spill] sm:$0xff] %v6782_v25  ;;  %4937 = vmatprep.subr.bf16.mxu1 %v8720_v7  ;;  %v6797_v23 = vpack.c.bf16 %v2611_v38, %v2607_v49  ;;  %v6799_v41 = vsub.f32 %v811_v31, %v2611_v38  ;;  %v3472_v7 = vand.u32 4294901760, %v830_v54  ;;  %v821_v25 = vld [vmem:[%s5725_s22 + $0x2b0] sm:$0xff]  ;;  %v2615_v30 = vand.u32 4294901760, %v819_v44 }
 0x11a   : > { %4747 = vmatpush1.bf16.msra.mxu0 %v8721_v12  ;;  %8811 = vst [vmem:[#allocation12_spill] sm:$0xff] %v6790_v51  ;;  %v829_v12 = vld [vmem:[%s5725_s22 + $0x2f0] sm:$0xff]  ;;  %v6803_v59 = vpack.c.bf16 %v3466_v17, %v3462_v37  ;;  %v6805_v50 = vsub.f32 %v805_v53, %v3462_v37  ;;  %v2619_v29 = vand.u32 4294901760, %v827_v47  ;;  %v6810_v31 = vsub.f32 %v813_v33, %v3466_v17  ;;  %v846_v53 = vld [vmem:[%s5725_s22 + $0x378] sm:$0xff]  ;;  %v835_v37 = vld [vmem:[%s5725_s22 + $0x320] sm:$0xff] }
 0x11b   : > { %4749 = vmatprep.subr.bf16.mxu0 %v8722_v15  ;;  %8812 = vst [vmem:[#allocation57_spill] sm:$0xff] %v6797_v23  ;;  %v844_v15 = vld [vmem:[%s5725_s22 + $0x368] sm:$0xff]  ;;  %v6812_v38 = vpack.c.bf16 %v2617_v3, %v2613_v57  ;;  %v6814_v49 = vsub.f32 %v820_v36, %v2613_v57  ;;  %v6816_v55 = vsub.f32 %v828_v4, %v2617_v3  ;;  %v3470_v23 = vand.u32 4294901760, %v821_v25  ;;  %v837_v33 = vld [vmem:[%s5725_s22 + $0x330] sm:$0xff] }
 0x11c   : > { %8813 = vst [vmem:[#allocation14_spill] sm:$0xff] %v6803_v59  ;;  %4939 = vmatpush1.bf16.msra.mxu1 %v8723_v35  ;;  %v838_v59 = vld [vmem:[%s5725_s22 + $0x338] sm:$0xff]  ;;  %v6823_v27 = vsub.f32 %v822_v43, %v3468_v56  ;;  %v3474_v51 = vand.u32 4294901760, %v829_v12  ;;  %v843_v35 = vld [vmem:[%s5725_s22 + $0x360] sm:$0xff]  ;;  %v845_v17 = vld [vmem:[%s5725_s22 + $0x370] sm:$0xff]  ;;  %v6829_v36 = vpack.c.bf16 %v3472_v7, %v3468_v56  ;;  %v6831_v4 = vsub.f32 %v830_v54, %v3472_v7 }
 0x11d   : > { %8814 = vst [vmem:[#allocation16_spill] sm:$0xff] %v6812_v38  ;;  %8815 = vst [vmem:[#allocation34_spill] sm:$0xff] %v6814_v49  ;;  %4941 = vmatprep.subr.bf16.mxu1 %v8724_v45  ;;  %v2621_v57 = vand.u32 4294901760, %v836_v52  ;;  %v2625_v3 = vand.u32 4294901760, %v844_v15  ;;  %v6835_v45 = vsub.f32 %v819_v44, %v2615_v30  ;;  %v3480_v43 = vand.u32 4294901760, %v846_v53  ;;  %v4368_v49 = vld [vmem:[%s8171_s2] sm:$0xff] }
 0x11e   : > { %8816 = vst [vmem:[#allocation33_spill] sm:$0xff] %v6816_v55  ;;  %4751 = vmatpush1.bf16.msra.mxu0 %v8725_v9  ;;  %8817 = vst [vmem:[#allocation78_spill] sm:$0xff] %v6823_v27  ;;  %v6833_v55 = vpack.c.bf16 %v2619_v29, %v2615_v30  ;;  %v3476_v9 = vand.u32 4294901760, %v838_v59  ;;  %v5588_v27 = vmov 0   ;;  %v2627_v54 = vand.u32 4294901760, %v843_v35 }
 0x11f   : > { %4753 = vmatprep.subr.bf16.mxu0 %v8726_v5  ;;  %8818 = vst [vmem:[#allocation79_spill] sm:$0xff] %v6829_v36  ;;  %8820 = vst [vmem:[#allocation81_spill] sm:$0xff] %v6835_v45  ;;  %5452 = vset.pattern.permute.xlu0 %v5588_v27  ;;  %v2623_v5 = vand.u32 4294901760, %v835_v37  ;;  %v3478_v56 = vand.u32 4294901760, %v837_v33  ;;  %v3482_v7 = vand.u32 4294901760, %v845_v17  ;;  %v6843_v44 = vsub.f32 %v827_v47, %v2619_v29  ;;  %v860_v45 = vld [vmem:[%s5725_s22 + $0x3e8] sm:$0xff] }
 0x120   : > { %8819 = vst [vmem:[#allocation80_spill] sm:$0xff] %v6833_v55  ;;  %4943 = vmatpush1.bf16.msra.mxu1 %v8727_v8  ;;  %v6845_v30 = vpack.c.bf16 %v3474_v51, %v3470_v23  ;;  %v6847_v27 = vsub.f32 %v821_v25, %v3470_v23  ;;  %v6850_v55 = vsub.f32 %v829_v12, %v3474_v51 }
 0x121   : > { %4945 = vmatprep.subr.bf16.mxu1 %v8728_v26  ;;  %8821 = vst [vmem:[#allocation82_spill] sm:$0xff] %v6843_v44  ;;  %v6852_v8 = vpack.c.bf16 %v2625_v3, %v2621_v57  ;;  %v6854_v36 = vsub.f32 %v836_v52, %v2621_v57  ;;  %v852_v26 = vld [vmem:[%s5725_s22 + $0x3a8] sm:$0xff]  ;;  %4370 = vperm.xlu0 %5452, %v4368_v49   ;;  %v854_v52 = vld [vmem:[%s5725_s22 + $0x3b8] sm:$0xff]  ;;  %v851_v49 = vld [vmem:[%s5725_s22 + $0x3a0] sm:$0xff]  ;;  %v2633_v57 = vand.u32 4294901760, %v860_v45 }
 0x122   : > { %4755 = vmatpush1.bf16.msra.mxu0 %v8729_v60  ;;  %8822 = vst [vmem:[#allocation83_spill] sm:$0xff] %v6845_v30  ;;  %8823 = vst [vmem:[#allocation84_spill] sm:$0xff] %v6847_v27  ;;  %v6858_v60 = vsub.f32 %v844_v15, %v2625_v3  ;;  %v6860_v47 = vpack.c.bf16 %v3480_v43, %v3476_v9  ;;  %v6862_v25 = vsub.f32 %v838_v59, %v3476_v9  ;;  %v862_v15 = vld [vmem:[%s5725_s22 + $0x3f8] sm:$0xff]  ;;  %v859_v3 = vld [vmem:[%s5725_s22 + $0x3e0] sm:$0xff] }
 0x123   : > { %4757 = vmatprep.subr.bf16.mxu0 %v8730_v39  ;;  %8824 = vst [vmem:[#allocation85_spill] sm:$0xff] %v6850_v55  ;;  %8825 = vst [vmem:[#allocation86_spill] sm:$0xff] %v6852_v8  ;;  %v6864_v39 = vsub.f32 %v846_v53, %v3480_v43  ;;  %v6867_v51 = vpack.c.bf16 %v2627_v54, %v2623_v5  ;;  %v6869_v23 = vsub.f32 %v835_v37, %v2623_v5  ;;  %v853_v37 = vld [vmem:[%s5725_s22 + $0x3b0] sm:$0xff]  ;;  %v8840_v9 = vld [vmem:[#allocation60_spill] sm:$0xff] }
 0x124   : > { %8826 = vst [vmem:[#allocation87_spill] sm:$0xff] %v6854_v36  ;;  %8827 = vst [vmem:[#allocation88_spill] sm:$0xff] %v6858_v60  ;;  %4947 = vmatpush1.bf16.msra.mxu1 %v8731_v14  ;;  %v6871_v12 = vsub.f32 %v843_v35, %v2627_v54  ;;  %v6873_v29 = vpack.c.bf16 %v3482_v7, %v3478_v56  ;;  %v6880_v59 = vsub.f32 %v837_v33, %v3478_v56  ;;  %v861_v35 = vld [vmem:[%s5725_s22 + $0x3f0] sm:$0xff]  ;;  %v8841_v43 = vld [vmem:[#allocation61_spill] sm:$0xff] }
 0x125   : > { %8828 = vst [vmem:[#allocation89_spill] sm:$0xff] %v6860_v47  ;;  %8829 = vst [vmem:[#allocation90_spill] sm:$0xff] %v6862_v25  ;;  %4949 = vmatprep.subr.bf16.mxu1 %v8732_v28  ;;  %v6882_v53 = vsub.f32 %v845_v17, %v3482_v7  ;;  %v2629_v14 = vand.u32 4294901760, %v852_v26  ;;  %v8836_v28 = vld [vmem:[#allocation42_spill] sm:$0xff]  ;;  %v3484_v33 = vand.u32 4294901760, %v854_v52  ;;  %v3488_v17 = vand.u32 4294901760, %v862_v15 }
 0x126   : > { %8830 = vst [vmem:[#allocation91_spill] sm:$0xff] %v6867_v51  ;;  %8831 = vst [vmem:[#allocation92_spill] sm:$0xff] %v6869_v23  ;;  %4759 = vmatpush1.bf16.msra.mxu0 %v8733_v58  ;;  %v2631_v56 = vand.u32 4294901760, %v851_v49  ;;  %v8838_v7 = vld [vmem:[#allocation53_spill] sm:$0xff]  ;;  %v3486_v51 = vand.u32 4294901760, %v853_v37  ;;  %v3490_v54 = vand.u32 4294901760, %v861_v35 }
 0x127   : > { %8832 = vst [vmem:[#allocation93_spill] sm:$0xff] %v6871_v12  ;;  %8833 = vst [vmem:[#allocation94_spill] sm:$0xff] %v6873_v29  ;;  %4761 = vmatprep.subr.bf16.mxu0 %v8734_v46  ;;  %v6892_v58 = vsub.f32 %v852_v26, %v2629_v14  ;;  %v2635_v29 = vand.u32 4294901760, %v859_v3  ;;  %v8839_v47 = vld [vmem:[#allocation45_spill] sm:$0xff]  ;;  %v6899_v5 = vpack.c.bf16 %v2633_v57, %v2629_v14  ;;  %v8846_v46 = vand.u32 4294901760, %v6629_v11 }
 0x128   : > { %8834 = vst [vmem:[#allocation95_spill] sm:$0xff] %v6880_v59  ;;  %8835 = vst [vmem:[#allocation96_spill] sm:$0xff] %v6882_v53  ;;  %4951 = vmatpush1.bf16.msra.mxu1 %v8838_v7  ;;  %v8844_v59 = vld [vmem:[#allocation63_spill] sm:$0xff]  ;;  %v8845_v7 = vand.u32 4294901760, %v6627_v40  ;;  %v6918_v53 = vpack.c.bf16 %v3488_v17, %v3484_v33  ;;  %v6922_v23 = vsub.f32 %v862_v15, %v3488_v17 }
 0x129   : > { %8837 = vst [vmem:[#allocation97_spill] sm:$0xff] %v6892_v58  ;;  %4953 = vmatprep.subr.bf16.mxu1 %v8840_v9  ;;  %8842 = vst [vmem:[#allocation53_spill] sm:$0xff] %v6899_v5  ;;  %v8843_v58 = vld [vmem:[#allocation58_spill] sm:$0xff]  ;;  %v2696_v30 = vsub.f32 %v6629_v11, %v8846_v46  ;;  %v8847_v9 = vand.u32 4294901760, %v6635_v22  ;;  %v6916_v5 = vsub.f32 %v860_v45, %v2633_v57  ;;  %v8853_v46 = vand.u32 4294901760, %v8839_v47  ;;  %v8864_v11 = vld [vmem:[#allocation69_spill] sm:$0xff] }
 0x12a   : > { %4763 = vmatpush1.bf16.msra.mxu0 %v8841_v43  ;;  %v2684_v12 = vsub.f32 %v6627_v40, %v8845_v7  ;;  %v8848_v43 = vand.u32 4294901760, %v8836_v28  ;;  %8849 = vst [vmem:[#allocation60_spill] sm:$0xff] %v6918_v53  ;;  %v8851_v7 = vld [vmem:[#allocation62_spill] sm:$0xff]  ;;  %v6925_v40 = vpack.c.bf16 %v2635_v29, %v2631_v56  ;;  %v6936_v15 = vsub.f32 %v851_v49, %v2631_v56  ;;  %v8866_v53 = vld [vmem:[#allocation71_spill] sm:$0xff] }
 0x12b   : > { %4765 = vmatprep.subr.bf16.mxu0 %v8844_v59  ;;  %v3539_v14 = vsub.f32 %v6635_v22, %v8847_v9  ;;  %v6920_v59 = vsub.f32 %v854_v52, %v3484_v33  ;;  %v2690_v9 = vsub.f32 %v8839_v47, %v8853_v46  ;;  %v8854_v22 = vand.u32 4294901760, %v6651_v16  ;;  %v8855_v57 = vld [vmem:[#allocation66_spill] sm:$0xff]  ;;  %v8856_v52 = vld [vmem:[#allocation68_spill] sm:$0xff]  ;;  %v8860_v47 = vld [vmem:[#allocation65_spill] sm:$0xff] }
 0x12c   : > { %v3551_v26 = vsub.f32 %v8836_v28, %v8848_v43  ;;  %4955 = vmatpush1.bf16.msra.mxu1 %v8851_v7  ;;  %8852 = vst [vmem:[#allocation63_spill] sm:$0xff] %v6925_v40  ;;  %8857 = vst [vmem:[#allocation62_spill] sm:$0xff] %v6936_v15  ;;  %v8858_v33 = vand.u32 4294901760, %v6655_v20  ;;  %v8859_v7 = vand.u32 4294901760, %v8843_v58  ;;  %v2685_v45 = vand.u32 4294901760, %v2684_v12 }
 0x12d   : > { %8850 = vst [vmem:[#allocation61_spill] sm:$0xff] %v6920_v59  ;;  %v2702_v43 = vsub.f32 %v6651_v16, %v8854_v22  ;;  %4957 = vmatprep.subr.bf16.mxu1 %v8855_v57  ;;  %v8861_v16 = vld [vmem:[#allocation30_spill] sm:$0xff]  ;;  %v2697_v57 = vand.u32 4294901760, %v2696_v30  ;;  %v3540_v28 = vand.u32 4294901760, %v3539_v14  ;;  %v6950_v49 = vsub.f32 %v859_v3, %v2635_v29  ;;  %v8869_v29 = vld [vmem:[#allocation39_spill] sm:$0xff] }
 0x12e   : > { %4767 = vmatpush1.bf16.msra.mxu0 %v8856_v52  ;;  %v6941_v17 = vsub.f32 %v6655_v20, %v8858_v33  ;;  %v6946_v46 = vsub.f32 %v8843_v58, %v8859_v7  ;;  %v3552_v52 = vand.u32 4294901760, %v3551_v26  ;;  %v6952_v56 = vpack.c.bf16 %v3490_v54, %v3486_v51  ;;  %v8865_v20 = vld [vmem:[#allocation70_spill] sm:$0xff]  ;;  %v8870_v3 = vld [vmem:[#allocation43_spill] sm:$0xff]  ;;  %v8878_v33 = vld [vmem:[#allocation20_spill] sm:$0xff] }
 0x12f   : > { %4961 = vmatprep.subr.bf16.mxu0 %v8861_v16  ;;  %8862 = vst [vmem:[#allocation66_spill] sm:$0xff] %v6950_v49  ;;  %v6958_v7 = vsub.f32 %v853_v37, %v3486_v51  ;;  %v2691_v22 = vand.u32 4294901760, %v2690_v9  ;;  %v2703_v16 = vand.u32 4294901760, %v2702_v43  ;;  %v8868_v30 = vand.u32 4294901760, %v6664_v0  ;;  %v8873_v37 = vld [vmem:[#allocation59_spill] sm:$0xff]  ;;  %v8883_v58 = vld [vmem:[#allocation17_spill] sm:$0xff] }
 0x130   : > { %8863 = vst [vmem:[#allocation68_spill] sm:$0xff] %v6952_v56  ;;  %4959 = vmatpush1.bf16.msra.mxu1 %v8866_v53  ;;  %v6965_v26 = vsub.f32 %v861_v35, %v3490_v54  ;;  %v3546_v14 = vand.u32 4294901760, %v6941_v17  ;;  %v3558_v53 = vand.u32 4294901760, %v6946_v46  ;;  %v8872_v40 = vand.u32 4294901760, %v8860_v47 }
 0x131   : > { %1712 = vmatmul.mubr.f32.vlgmr.msra.gmra.mrb[0].mxu0 %v8790_v61  ;;  %8867 = vst [vmem:[#allocation71_spill] sm:$0xff] %v6958_v7  ;;  %v2708_v12 = vsub.f32 %v6664_v0, %v8868_v30  ;;  %5153 = vmatprep.subr.bf16.mxu1 %v8869_v29  ;;  %v6974_v9 = vpack.c.bf16 %v2697_v57, %v2685_v45  ;;  %v8874_v30 = vld [vmem:[#allocation72_spill] sm:$0xff]  ;;  %v8875_v54 = vand.u32 4294901760, %v8864_v11  ;;  %v8880_v29 = vld [vmem:[#allocation73_spill] sm:$0xff] }
 0x132   : > { %4963 = vmatpush1.bf16.msra.mxu0 %v8870_v3  ;;  %8871 = vst [vmem:[#allocation98_spill] sm:$0xff] %v6965_v26  ;;  %v2720_v51 = vsub.f32 %v8860_v47, %v8872_v40  ;;  %2669 = vmatprep.mubr.f32.mxu0 %v8616_v18  ;;  %v6976_v43 = vpack.c.bf16 %v3552_v52, %v3540_v28  ;;  %v8876_v40 = vand.u32 4294901760, %v8865_v20  ;;  %v8877_v28 = vld [vmem:[#allocation47_spill] sm:$0xff]  ;;  %v8946_v47 = vand.u32 4294901760, %v6854_v36 }
 0x133   : > { %4965 = vmatprep.subr.bf16.mxu0 %v8873_v37  ;;  %2567 = vmatmul.mubr.f32.vlgmr.msra.gmra.mrb[0].mxu1 %v8790_v61  ;;  %v3563_v17 = vsub.f32 %v8864_v11, %v8875_v54  ;;  %v6991_v57 = vpack.c.bf16 %v2703_v16, %v2691_v22  ;;  %v2709_v52 = vand.u32 4294901760, %v2708_v12  ;;  %v8879_v54 = vld [vmem:[#allocation67_spill] sm:$0xff]  ;;  %v8882_v11 = vld [vmem:[#allocation24_spill] sm:$0xff]  ;;  %v8884_v16 = vand.u32 4294901760, %v8874_v30 }
 0x134   : > { %v3575_v46 = vsub.f32 %v8865_v20, %v8876_v40  ;;  %5155 = vmatpush1.bf16.msra.mxu1 %v8877_v28  ;;  %3524 = vmatprep.mubr.f32.mxu1 %v8616_v18  ;;  %v2721_v40 = vand.u32 4294901760, %v2720_v51  ;;  %v8881_v20 = vld [vmem:[#allocation21_spill] sm:$0xff]  ;;  %v8885_v12 = vand.u32 4294901760, %v6685_v6  ;;  %v8886_v28 = vand.u32 4294901760, %v6689_v19  ;;  %v8891_v37 = vld [vmem:[#allocation36_spill] sm:$0xff] }
 0x135   : > { %5157 = vmatprep.subr.bf16.mxu1 %v8879_v54  ;;  %v7004_v22 = vsub.f32 %v8874_v30, %v8884_v16  ;;  %v3564_v35 = vand.u32 4294901760, %v3563_v17  ;;  %v8888_v54 = vld [vmem:[#allocation13_spill] sm:$0xff]  ;;  %v8890_v17 = vand.u32 4294901760, %v8878_v33 }
 0x136   : > { %4967 = vmatpush1.bf16.msra.mxu0 %v8880_v29  ;;  %v7009_v3 = vsub.f32 %v6685_v6, %v8885_v12  ;;  %v3576_v45 = vand.u32 4294901760, %v3575_v46  ;;  %v8887_v29 = vand.u32 4294901760, %v6694_v34  ;;  %v8889_v12 = vand.u32 4294901760, %v6702_v13  ;;  %v8892_v6 = vld [vmem:[#allocation22_spill] sm:$0xff]  ;;  %v8919_v30 = vld [vmem:[#allocation81_spill] sm:$0xff] }
 0x137   : > { %4969 = vmatprep.subr.bf16.mxu0 %v8883_v58  ;;  %v7016_v58 = vsub.f32 %v6689_v19, %v8886_v28  ;;  %v7032_v46 = vsub.f32 %v8878_v33, %v8890_v17  ;;  %v8896_v17 = vand.u32 4294901760, %v8882_v11  ;;  %v8897_v19 = vld [vmem:[#allocation29_spill] sm:$0xff]  ;;  %v8898_v33 = vand.u32 4294901760, %v6723_v24 }
 0x138   : > { %v7021_v16 = vsub.f32 %v6694_v34, %v8887_v29  ;;  %5159 = vmatpush1.bf16.msra.mxu1 %v8888_v54  ;;  %v7027_v51 = vsub.f32 %v6702_v13, %v8889_v12  ;;  %v8893_v29 = vld [vmem:[#allocation26_spill] sm:$0xff]  ;;  %v8894_v54 = vand.u32 4294901760, %v8881_v20  ;;  %v8895_v12 = vand.u32 4294901760, %v6713_v2 }
 0x139   : > { %5161 = vmatprep.subr.bf16.mxu1 %v8892_v6  ;;  %v7051_v28 = vsub.f32 %v8882_v11, %v8896_v17  ;;  %v7054_v6 = vpack.c.bf16 %v3558_v53, %v3546_v14  ;;  %v8900_v53 = vld [vmem:[#allocation27_spill] sm:$0xff]  ;;  %v8907_v14 = vld [vmem:[#allocation57_spill] sm:$0xff]  ;;  %v8913_v17 = vand.u32 4294901760, %v6805_v50 }
 0x13a   : > { %4971 = vmatpush1.bf16.msra.mxu0 %v8893_v29  ;;  %v7041_v34 = vsub.f32 %v8881_v20, %v8894_v54  ;;  %v7046_v13 = vsub.f32 %v6713_v2, %v8895_v12  ;;  %v7056_v29 = vpack.c.bf16 %v2721_v40, %v2709_v52  ;;  %v7061_v54 = vsub.f32 %v6723_v24, %v8898_v33  ;;  %v8908_v52 = vld [vmem:[#allocation41_spill] sm:$0xff]  ;;  %v8922_v33 = vld [vmem:[#allocation56_spill] sm:$0xff] }
 0x13b   : > { %4973 = vmatprep.subr.bf16.mxu0 %v8897_v19  ;;  %v8899_v20 = vand.u32 4294901760, %v6731_v62  ;;  %v7068_v2 = vpack.c.bf16 %v3576_v45, %v3564_v35  ;;  %v8901_v40 = vand.u32 4294901760, %v6733_v42  ;;  %v8903_v45 = vld [vmem:[#allocation44_spill] sm:$0xff]  ;;  %v8910_v19 = vand.u32 4294901760, %v6794_v63 }
 0x13c   : > { %5163 = vmatpush1.bf16.msra.mxu1 %v8900_v53 }
 0x13d   : > { %v7066_v12 = vsub.f32 %v6731_v62, %v8899_v20  ;;  %v7079_v24 = vsub.f32 %v6733_v42, %v8901_v40  ;;  %v8902_v20 = vand.u32 4294901760, %v8891_v37  ;;  %5165 = vmatprep.subr.bf16.mxu1 %v8903_v45  ;;  %v8469_v45 = vand.u32 4294901760, %v6792_v32 }
 0x13e   : > { %4975 = vmatpush1.bf16.msra.mxu0 %v6756_v48  ;;  %v8906_v48 = vld [vmem:[#allocation12_spill] sm:$0xff]  ;;  %v8911_v40 = vand.u32 4294901760, %v6799_v41  ;;  %v8914_v62 = vand.u32 4294901760, %v6810_v31 }
 0x13f   : > { %v7084_v35 = vsub.f32 %v8891_v37, %v8902_v20  ;;  %4977 = vmatprep.subr.bf16.mxu0 %v6775_v21  ;;  %v8470_v20 = vand.u32 4294901760, %v6784_v10  ;;  %v8904_v21 = vld [vmem:[#allocation38_spill] sm:$0xff]  ;;  %v8909_v37 = vld [vmem:[#allocation48_spill] sm:$0xff] }
 0x140   : > { %5167 = vmatpush1.bf16.msra.mxu1 %v6771_v1  ;;  %v7119_v42 = vpack.c.bf16 %v8911_v40, %v8910_v19  ;;  %v8927_v40 = vand.u32 4294901760, %v6831_v4 }
 0x141   : > { %v7109_v53 = vpack.c.bf16 %v8469_v45, %v8470_v20  ;;  %5169 = vmatprep.subr.bf16.mxu1 %v8906_v48  ;;  %v7125_v45 = vpack.c.bf16 %v8914_v62, %v8913_v17  ;;  %v8916_v20 = vld [vmem:[#allocation34_spill] sm:$0xff]  ;;  %v8921_v17 = vand.u32 4294901760, %v8904_v21 }
 0x142   : > { %4979 = vmatpush1.bf16.msra.mxu0 %v8907_v14  ;;  %8912 = vst [vmem:[#allocation100_spill] sm:$0xff] %v7119_v42  ;;  %v8917_v14 = vld [vmem:[#allocation33_spill] sm:$0xff]  ;;  %v8918_v48 = vld [vmem:[#allocation78_spill] sm:$0xff]  ;;  %v8923_v1 = vand.u32 4294901760, %v8916_v20 }
 0x143   : > { %8905 = vst [vmem:[#allocation99_spill] sm:$0xff] %v7109_v53  ;;  %8915 = vst [vmem:[#allocation101_spill] sm:$0xff] %v7125_v45  ;;  %4981 = vmatprep.subr.bf16.mxu0 %v6812_v38  ;;  %v8920_v62 = vld [vmem:[#allocation14_spill] sm:$0xff]  ;;  %v7140_v53 = vsub.f32 %v8904_v21, %v8921_v17  ;;  %v8924_v11 = vand.u32 4294901760, %v8917_v14  ;;  %v8926_v19 = vand.u32 4294901760, %v8918_v48  ;;  %v8930_v38 = vld [vmem:[#allocation80_spill] sm:$0xff] }
 0x144   : > { %5171 = vmatpush1.bf16.msra.mxu1 %v8920_v62  ;;  %v8929_v62 = vld [vmem:[#allocation79_spill] sm:$0xff]  ;;  %v8931_v17 = vand.u32 4294901760, %v8908_v52  ;;  %v8932_v21 = vld [vmem:[#allocation10_spill] sm:$0xff] }
 0x145   : > { %v7147_v61 = vpack.c.bf16 %v8924_v11, %v8923_v1  ;;  %v7153_v42 = vpack.c.bf16 %v8927_v40, %v8926_v19  ;;  %5173 = vmatprep.subr.bf16.mxu1 %v8929_v62  ;;  %v8933_v11 = vand.u32 4294901760, %v8919_v30  ;;  %v8934_v1 = vand.u32 4294901760, %v6843_v44  ;;  %v8942_v44 = vld [vmem:[#allocation96_spill] sm:$0xff] }
 0x146   : > { %4983 = vmatpush1.bf16.msra.mxu0 %v8930_v38  ;;  %v7160_v45 = vsub.f32 %v8908_v52, %v8931_v17  ;;  %v8936_v19 = vand.u32 4294901760, %v6847_v27  ;;  %v8937_v40 = vand.u32 4294901760, %v6850_v55  ;;  %v8939_v52 = vld [vmem:[#allocation92_spill] sm:$0xff]  ;;  %v8947_v62 = vand.u32 4294901760, %v6858_v60  ;;  %v8952_v55 = vld [vmem:[#allocation89_spill] sm:$0xff] }
 0x147   : > { %8925 = vst [vmem:[#allocation34_spill] sm:$0xff] %v7147_v61  ;;  %8928 = vst [vmem:[#allocation33_spill] sm:$0xff] %v7153_v42  ;;  %v7167_v61 = vpack.c.bf16 %v8934_v1, %v8933_v11  ;;  %4985 = vmatprep.subr.bf16.mxu0 %v6852_v8  ;;  %v8940_v11 = vld [vmem:[#allocation93_spill] sm:$0xff]  ;;  %v8949_v1 = vand.u32 4294901760, %v6862_v25  ;;  %v8950_v27 = vand.u32 4294901760, %v6864_v39  ;;  %v8955_v36 = vand.u32 4294901760, %v8939_v52 }
 0x148   : > { %v7173_v42 = vpack.c.bf16 %v8937_v40, %v8936_v19  ;;  %v8943_v19 = vld [vmem:[#allocation83_spill] sm:$0xff]  ;;  %v8944_v40 = vand.u32 4294901760, %v8909_v37  ;;  %v7193_v8 = vpack.c.bf16 %v8947_v62, %v8946_v47  ;;  %v8956_v60 = vand.u32 4294901760, %v8940_v11 }
 0x149   : > { %8935 = vst [vmem:[#allocation78_spill] sm:$0xff] %v7167_v61  ;;  %v8941_v61 = vld [vmem:[#allocation95_spill] sm:$0xff]  ;;  %5175 = vmatpush1.bf16.msra.mxu1 %v8943_v19  ;;  %v7199_v0 = vpack.c.bf16 %v8950_v27, %v8949_v1  ;;  %v8961_v1 = vld [vmem:[#allocation53_spill] sm:$0xff]  ;;  %v8967_v11 = vand.u32 4294901760, %v6916_v5 }
 0x14a   : > { %8938 = vst [vmem:[#allocation81_spill] sm:$0xff] %v7173_v42  ;;  %v3623_v38 = vsub.f32 %v8909_v37, %v8944_v40  ;;  %v8945_v42 = vld [vmem:[#allocation11_spill] sm:$0xff]  ;;  %8948 = vst [vmem:[#allocation92_spill] sm:$0xff] %v7193_v8  ;;  %5177 = vmatprep.subr.bf16.mxu1 %v8952_v55  ;;  %v2769_v40 = vand.u32 4294901760, %v7140_v53  ;;  %v8954_v37 = vld [vmem:[#allocation52_spill] sm:$0xff]  ;;  %v7209_v47 = vpack.c.bf16 %v8956_v60, %v8955_v36  ;;  %v8958_v62 = vand.u32 4294901760, %v8941_v61 }
 0x14b   : > { %8951 = vst [vmem:[#allocation95_spill] sm:$0xff] %v7199_v0  ;;  %v8953_v19 = vld [vmem:[#allocation91_spill] sm:$0xff]  ;;  %v8959_v8 = vand.u32 4294901760, %v8942_v44  ;;  %v8962_v0 = vld [vmem:[#allocation97_spill] sm:$0xff]  ;;  %v8965_v53 = vand.u32 4294901760, %v8932_v21  ;;  %v8969_v60 = vand.u32 4294901760, %v6920_v59 }
 0x14c   : > { %4987 = vmatpush1.bf16.msra.mxu0 %v8953_v19  ;;  %8957 = vst [vmem:[#allocation102_spill] sm:$0xff] %v7209_v47  ;;  %v8966_v55 = vand.u32 4294901760, %v8962_v0  ;;  %v8970_v47 = vand.u32 4294901760, %v6922_v23  ;;  %v8976_v44 = vand.u32 4294901760, %v6936_v15 }
 0x14d   : > { %v7215_v27 = vpack.c.bf16 %v8959_v8, %v8958_v62  ;;  %4989 = vmatprep.subr.bf16.mxu0 %v8961_v1  ;;  %v8963_v8 = vld [vmem:[#allocation94_spill] sm:$0xff]  ;;  %v8964_v62 = vand.u32 4294901760, %v8922_v33  ;;  %v2774_v17 = vsub.f32 %v8932_v21, %v8965_v53  ;;  %v8973_v1 = vld [vmem:[#allocation63_spill] sm:$0xff] }
 0x14e   : > { %5179 = vmatpush1.bf16.msra.mxu1 %v8963_v8  ;;  %v7243_v36 = vpack.c.bf16 %v8970_v47, %v8969_v60  ;;  %v8972_v8 = vld [vmem:[#allocation60_spill] sm:$0xff]  ;;  %v8975_v21 = vld [vmem:[#allocation54_spill] sm:$0xff]  ;;  %v8980_v47 = vand.u32 4294901760, %v6965_v26 }
 0x14f   : > { %8960 = vst [vmem:[#allocation103_spill] sm:$0xff] %v7215_v27  ;;  %v2762_v19 = vsub.f32 %v8922_v33, %v8964_v62  ;;  %v7237_v27 = vpack.c.bf16 %v8967_v11, %v8966_v55  ;;  %5181 = vmatprep.subr.bf16.mxu1 %v8972_v8  ;;  %v8974_v62 = vand.u32 4294901760, %v8945_v42  ;;  %v8977_v55 = vand.u32 4294901760, %v6950_v49 }
 0x150   : > { %8971 = vst [vmem:[#allocation104_spill] sm:$0xff] %v7243_v36  ;;  %4991 = vmatpush1.bf16.msra.mxu0 %v8973_v1  ;;  %v8982_v36 = vand.u32 4294901760, %v7004_v22  ;;  %v8984_v33 = vand.u32 4294901760, %v7016_v58  ;;  %v8985_v8 = vand.u32 4294901760, %v7021_v16  ;;  %v8990_v22 = vand.u32 4294901760, %v7041_v34 }
 0x151   : > { %8968 = vst [vmem:[#allocation97_spill] sm:$0xff] %v7237_v27  ;;  %v3617_v53 = vsub.f32 %v8945_v42, %v8974_v62  ;;  %v7255_v11 = vpack.c.bf16 %v8977_v55, %v8976_v44  ;;  %v8979_v27 = vand.u32 4294901760, %v6958_v7  ;;  %4993 = vmatprep.subr.bf16.mxu0 %v6974_v9  ;;  %v8983_v62 = vand.u32 4294901760, %v7009_v3 }
 0x152   : > { %v5190_v42 = vpack.c.bf16 %v8985_v8, %v8984_v33  ;;  %v8986_v44 = vand.u32 4294901760, %v8954_v37  ;;  %v8989_v9 = vand.u32 4294901760, %v7032_v46  ;;  %v8991_v3 = vand.u32 4294901760, %v7046_v13  ;;  %5183 = vmatpush1.bf16.msra.mxu1 %v6952_v56  ;;  %v8992_v33 = vld [vmem:[#allocation77_spill] sm:$0xff] }
 0x153   : > { %8978 = vst [vmem:[#allocation54_spill] sm:$0xff] %v7255_v11  ;;  %v7261_v60 = vpack.c.bf16 %v8980_v47, %v8979_v27  ;;  %v4998_v1 = vpack.c.bf16 %v8983_v62, %v8982_v36  ;;  %v8987_v11 = vld [vmem:[#allocation55_spill] sm:$0xff]  ;;  %v8988_v27 = vand.u32 4294901760, %v7027_v51  ;;  %v3612_v58 = vand.u32 4294901760, %v7160_v45  ;;  %2675 = vmatmul.mubr.f32.vlgmr.msra.gmra.mrb[2].mxu0 %v8992_v33  ;;  %5185 = vmatprep.subr.bf16.mxu1 %v6976_v43 }
 0x154   : > { %v3629_v55 = vsub.f32 %v8954_v37, %v8986_v44  ;;  %v8501_v26 = vand.u32 4294901760, %v8987_v11  ;;  %v5192_v36 = vpack.c.bf16 %v8991_v3, %v8990_v22  ;;  %v3624_v16 = vand.u32 4294901760, %v3623_v38  ;;  %4995 = vmatpush1.bf16.msra.mxu0 %v6991_v57  ;;  %2905 = vmatprep.mubr.f32.mxu0 %v8616_v18 }
 0x155   : > { %8981 = vst [vmem:[#allocation105_spill] sm:$0xff] %v7261_v60  ;;  %v5000_v47 = vpack.c.bf16 %v8989_v9, %v8988_v27  ;;  %v8993_v8 = vand.u32 4294901760, %v7051_v28  ;;  %v8994_v62 = vand.u32 4294901760, %v7061_v54  ;;  %v8995_v46 = vand.u32 4294901760, %v7066_v12  ;;  %4997 = vmatprep.subr.bf16.mxu0 %v7056_v29  ;;  %3530 = vmatmul.mubr.f32.vlgmr.msra.gmra.mrb[2].mxu1 %v8992_v33 }
 0x156   : > { %v8996_v44 = vand.u32 4294901760, %v7079_v24  ;;  %v8997_v13 = vand.u32 4294901760, %v7084_v35  ;;  %v2763_v38 = vand.u32 4294901760, %v2762_v19  ;;  %v2775_v45 = vand.u32 4294901760, %v2774_v17  ;;  %5187 = vmatpush1.bf16.msra.mxu1 %v7054_v6  ;;  %3760 = vmatprep.mubr.f32.mxu1 %v8616_v18 }
 0x157   : > { %v5002_v51 = vpack.c.bf16 %v8994_v62, %v8993_v8  ;;  %v3618_v9 = vand.u32 4294901760, %v3617_v53  ;;  %v8998_v28 = vand.u32 4294901760, %v8975_v21  ;;  %v3630_v12 = vand.u32 4294901760, %v3629_v55  ;;  %5189 = vmatprep.subr.bf16.mxu1 %v7068_v2 }
 0x158   : > { %v5194_v34 = vpack.c.bf16 %v8996_v44, %v8995_v46  ;;  %v5004_v27 = vpack.c.bf16 %v2769_v40, %v8997_v13  ;;  %v2792_v24 = vsub.f32 %v8987_v11, %v8501_v26  ;;  %v8999_v35 = vand.u32 4294901760, %v6784_v10  ;;  %4999 = vmatpush1.bf16.msra.mxu0 %v4998_v1 }
 0x159   : > { %v2780_v54 = vsub.f32 %v8975_v21, %v8998_v28  ;;  %v9000_v57 = vand.u32 4294901760, %v6792_v32  ;;  %v5196_v19 = vpack.c.bf16 %v3624_v16, %v3612_v58  ;;  %v9001_v29 = vand.u32 4294901760, %v6794_v63  ;;  %5001 = vmatprep.subr.bf16.mxu0 %v5000_v47 }
 0x15a   : > { %v3635_v43 = vsub.f32 %v6784_v10, %v8999_v35  ;;  %v9002_v53 = vand.u32 4294901760, %v6799_v41  ;;  %v9003_v22 = vand.u32 4294901760, %v6805_v50  ;;  %v9004_v8 = vand.u32 4294901760, %v6810_v31  ;;  %5191 = vmatpush1.bf16.msra.mxu1 %v5190_v42  ;;  %v9016_v42 = vld [vmem:[#allocation87_spill] sm:$0xff] }
 0x15b   : > { %v3647_v17 = vsub.f32 %v6792_v32, %v9000_v57  ;;  %v2786_v40 = vsub.f32 %v6794_v63, %v9001_v29  ;;  %v9005_v58 = vand.u32 4294901760, %v8916_v20  ;;  %v9006_v33 = vand.u32 4294901760, %v8917_v14  ;;  %5193 = vmatprep.subr.bf16.mxu1 %v5192_v36 }
 0x15c   : > { %v2798_v55 = vsub.f32 %v6799_v41, %v9002_v53  ;;  %v3641_v3 = vsub.f32 %v6805_v50, %v9003_v22  ;;  %v3653_v62 = vsub.f32 %v6810_v31, %v9004_v8  ;;  %v5006_v44 = vpack.c.bf16 %v2775_v45, %v2763_v38  ;;  %v9010_v38 = vld [vmem:[#allocation82_spill] sm:$0xff]  ;;  %5003 = vmatpush1.bf16.msra.mxu0 %v5002_v51 }
 0x15d   : > { %v2804_v16 = vsub.f32 %v8916_v20, %v9005_v58  ;;  %v2816_v46 = vsub.f32 %v8917_v14, %v9006_v33  ;;  %v2781_v13 = vand.u32 4294901760, %v2780_v54  ;;  %v9007_v6 = vand.u32 4294901760, %v8918_v48  ;;  %5005 = vmatprep.subr.bf16.mxu0 %v5004_v27 }
 0x15e   : > { %v9008_v35 = vand.u32 4294901760, %v6831_v4  ;;  %v5198_v29 = vpack.c.bf16 %v3630_v12, %v3618_v9  ;;  %v2793_v53 = vand.u32 4294901760, %v2792_v24  ;;  %v3636_v22 = vand.u32 4294901760, %v3635_v43  ;;  %v9012_v12 = vld [vmem:[#allocation84_spill] sm:$0xff]  ;;  %5195 = vmatpush1.bf16.msra.mxu1 %v5194_v34 }
 0x15f   : > { %v3659_v28 = vsub.f32 %v8918_v48, %v9007_v6  ;;  %v3648_v8 = vand.u32 4294901760, %v3647_v17  ;;  %v2787_v58 = vand.u32 4294901760, %v2786_v40  ;;  %v2799_v33 = vand.u32 4294901760, %v2798_v55  ;;  %v9014_v17 = vld [vmem:[#allocation85_spill] sm:$0xff]  ;;  %5197 = vmatprep.subr.bf16.mxu1 %v5196_v19 }
 0x160   : > { %v3671_v57 = vsub.f32 %v6831_v4, %v9008_v35  ;;  %v9009_v2 = vand.u32 4294901760, %v8919_v30  ;;  %v9011_v45 = vand.u32 4294901760, %v9010_v38  ;;  %v3642_v6 = vand.u32 4294901760, %v3641_v3  ;;  %5007 = vmatpush1.bf16.msra.mxu0 %v5006_v44 }
 0x161   : > { %v3654_v26 = vand.u32 4294901760, %v3653_v62  ;;  %v2805_v60 = vand.u32 4294901760, %v2804_v16  ;;  %v2817_v35 = vand.u32 4294901760, %v2816_v46  ;;  %v3660_v47 = vand.u32 4294901760, %v3659_v28  ;;  %v9018_v16 = vld [vmem:[#allocation88_spill] sm:$0xff] }
 0x162   : > { %v2810_v1 = vsub.f32 %v8919_v30, %v9009_v2  ;;  %v2822_v54 = vsub.f32 %v9010_v38, %v9011_v45  ;;  %v3672_v9 = vand.u32 4294901760, %v3671_v57  ;;  %v9013_v24 = vand.u32 4294901760, %v9012_v12  ;;  %5199 = vmatpush1.bf16.msra.mxu1 %v5198_v29 }
 0x163   : > { %v9015_v40 = vand.u32 4294901760, %v9014_v17  ;;  %v5008_v2 = vpack.c.bf16 %v2793_v53, %v2781_v13  ;;  %v5200_v45 = vpack.c.bf16 %v3648_v8, %v3636_v22  ;;  %v9017_v3 = vand.u32 4294901760, %v9016_v42 }
 0x164   : > { %v3665_v43 = vsub.f32 %v9012_v12, %v9013_v24  ;;  %v9019_v36 = vand.u32 4294901760, %v9018_v16  ;;  %v2811_v46 = vand.u32 4294901760, %v2810_v1  ;;  %v2823_v28 = vand.u32 4294901760, %v2822_v54 }
 0x165   : > { %v3677_v55 = vsub.f32 %v9014_v17, %v9015_v40  ;;  %v2828_v62 = vsub.f32 %v9016_v42, %v9017_v3  ;;  %v9020_v57 = vand.u32 4294901760, %v6862_v25  ;;  %v9021_v56 = vand.u32 4294901760, %v6864_v39  ;;  %v9023_v40 = vld [vmem:[#allocation93_spill] sm:$0xff]  ;;  %5009 = vmatprep.subr.bf16.mxu0 %v5008_v2  ;;  %5201 = vmatprep.subr.bf16.mxu1 %v5200_v45 }
 0x166   : > { %v2840_v51 = vsub.f32 %v9018_v16, %v9019_v36  ;;  %v5010_v13 = vpack.c.bf16 %v2799_v33, %v2787_v58  ;;  %v5202_v53 = vpack.c.bf16 %v3654_v26, %v3642_v6  ;;  %v9022_v22 = vand.u32 4294901760, %v8939_v52 }
 0x167   : > { %v3683_v24 = vsub.f32 %v6862_v25, %v9020_v57  ;;  %v3695_v27 = vsub.f32 %v6864_v39, %v9021_v56  ;;  %v9024_v3 = vand.u32 4294901760, %v9023_v40  ;;  %v5012_v54 = vpack.c.bf16 %v2817_v35, %v2805_v60 }
 0x168   : > { %v2834_v8 = vsub.f32 %v8939_v52, %v9022_v22  ;;  %v5204_v36 = vpack.c.bf16 %v3672_v9, %v3660_v47  ;;  %v3666_v57 = vand.u32 4294901760, %v3665_v43  ;;  %v3678_v25 = vand.u32 4294901760, %v3677_v55  ;;  %v9028_v47 = vld [vmem:[#allocation96_spill] sm:$0xff]  ;;  %5011 = vmatpush1.bf16.msra.mxu0 %v5010_v13  ;;  %5203 = vmatpush1.bf16.msra.mxu1 %v5202_v53 }
 0x169   : > { %v2846_v1 = vsub.f32 %v9023_v40, %v9024_v3  ;;  %v2829_v16 = vand.u32 4294901760, %v2828_v62  ;;  %v2841_v56 = vand.u32 4294901760, %v2840_v51  ;;  %v9025_v34 = vand.u32 4294901760, %v8962_v0  ;;  %5013 = vmatprep.subr.bf16.mxu0 %v5012_v54 }
 0x16a   : > { %v9026_v58 = vand.u32 4294901760, %v6916_v5  ;;  %v5014_v6 = vpack.c.bf16 %v2823_v28, %v2811_v46  ;;  %v3684_v22 = vand.u32 4294901760, %v3683_v24  ;;  %v3696_v3 = vand.u32 4294901760, %v3695_v27  ;;  %5205 = vmatprep.subr.bf16.mxu1 %v5204_v36 }
 0x16b   : > { %v2852_v26 = vsub.f32 %v8962_v0, %v9025_v34  ;;  %v9027_v19 = vand.u32 4294901760, %v8941_v61  ;;  %v2835_v44 = vand.u32 4294901760, %v2834_v8  ;;  %v2847_v35 = vand.u32 4294901760, %v2846_v1 }
 0x16c   : > { %v2864_v33 = vsub.f32 %v6916_v5, %v9026_v58  ;;  %v9029_v9 = vand.u32 4294901760, %v9028_v47  ;;  %v9030_v55 = vand.u32 4294901760, %v6920_v59  ;;  %v9031_v62 = vand.u32 4294901760, %v6922_v23  ;;  %5015 = vmatpush1.bf16.msra.mxu0 %v5014_v6  ;;  %v9039_v6 = vld [vmem:[#allocation40_spill] sm:$0xff] }
 0x16d   : > { %v3689_v60 = vsub.f32 %v8941_v61, %v9027_v19  ;;  %v9032_v46 = vand.u32 4294901760, %v6936_v15  ;;  %v9033_v28 = vand.u32 4294901760, %v6950_v49  ;;  %v5016_v27 = vpack.c.bf16 %v2841_v56, %v2829_v16 }
 0x16e   : > { %v3701_v43 = vsub.f32 %v9028_v47, %v9029_v9  ;;  %v3707_v2 = vsub.f32 %v6920_v59, %v9030_v55  ;;  %v3719_v51 = vsub.f32 %v6922_v23, %v9031_v62  ;;  %v2853_v8 = vand.u32 4294901760, %v2852_v26  ;;  %v9035_v62 = vld [vmem:[#allocation98_spill] sm:$0xff] }
 0x16f   : > { %v2858_v29 = vsub.f32 %v6936_v15, %v9032_v46  ;;  %v2870_v24 = vsub.f32 %v6950_v49, %v9033_v28  ;;  %v2865_v1 = vand.u32 4294901760, %v2864_v33  ;;  %v5206_v34 = vpack.c.bf16 %v3678_v25, %v3666_v57  ;;  %5017 = vmatprep.subr.bf16.mxu0 %v5016_v27  ;;  %v244_v49 = vld [vmem:[%s5725_s22 + $0x8] sm:$0xff] }
 0x170   : > { %v5208_v58 = vpack.c.bf16 %v3696_v3, %v3684_v22  ;;  %v3690_v45 = vand.u32 4294901760, %v3689_v60  ;;  %v5018_v13 = vpack.c.bf16 %v2847_v35, %v2835_v44  ;;  %v3702_v19 = vand.u32 4294901760, %v3701_v43  ;;  %v9037_v60 = vld [vmem:[#allocation31_spill] sm:$0xff]  ;;  %v9040_v43 = vld [vmem:[#allocation42_spill] sm:$0xff] }
 0x171   : > { %v9034_v9 = vand.u32 4294901760, %v6958_v7  ;;  %v9036_v46 = vand.u32 4294901760, %v9035_v62  ;;  %v3708_v54 = vand.u32 4294901760, %v3707_v2  ;;  %v3720_v16 = vand.u32 4294901760, %v3719_v51  ;;  %5207 = vmatpush1.bf16.msra.mxu1 %v5206_v34  ;;  %v9038_v44 = vld [vmem:[#allocation35_spill] sm:$0xff]  ;;  %v9041_v51 = vld [vmem:[#allocation45_spill] sm:$0xff] }
 0x172   : > { %v2859_v56 = vand.u32 4294901760, %v2858_v29  ;;  %v2871_v26 = vand.u32 4294901760, %v2870_v24  ;;  %v5020_v25 = vpack.c.bf16 %v2865_v1, %v2853_v8  ;;  %v5210_v53 = vpack.c.bf16 %v3702_v19, %v3690_v45  ;;  %5209 = vmatprep.subr.bf16.mxu1 %v5208_v58  ;;  %5019 = vmatpush1.bf16.msra.mxu0 %v5018_v13  ;;  %v9042_v29 = vld [vmem:[#allocation46_spill] sm:$0xff]  ;;  %v9044_v24 = vld [vmem:[#allocation65_spill] sm:$0xff] }
 0x173   : > { %v3713_v55 = vsub.f32 %v6958_v7, %v9034_v9  ;;  %v3725_v15 = vsub.f32 %v9035_v62, %v9036_v46  ;;  %v5212_v22 = vpack.c.bf16 %v3720_v16, %v3708_v54  ;;  %v5024_v35 = vpack.c.bf16 %v9038_v44, %v9037_v60  ;;  %v9045_v8 = vld [vmem:[#allocation74_spill] sm:$0xff]  ;;  %v9046_v1 = vld [vmem:[#allocation49_spill] sm:$0xff]  ;;  %v9050_v9 = vld [vmem:[#allocation72_spill] sm:$0xff] }
 0x174   : > { %v5022_v3 = vpack.c.bf16 %v2871_v26, %v2859_v56  ;;  %5021 = vmatprep.subr.bf16.mxu0 %v5020_v25  ;;  %v5216_v2 = vpack.c.bf16 %v9040_v43, %v9039_v6  ;;  %v5026_v28 = vpack.c.bf16 %v9042_v29, %v9041_v51  ;;  %v9047_v34 = vld [vmem:[#allocation58_spill] sm:$0xff]  ;;  %v9048_v45 = vld [vmem:[#allocation69_spill] sm:$0xff]  ;;  %v9052_v54 = vld [vmem:[#allocation15_spill] sm:$0xff] }
 0x175   : > { %v3714_v57 = vand.u32 4294901760, %v3713_v55  ;;  %v3726_v33 = vand.u32 4294901760, %v3725_v15  ;;  %5211 = vmatpush1.bf16.msra.mxu1 %v5210_v53  ;;  %v9043_v15 = vld [vmem:[#allocation64_spill] sm:$0xff]  ;;  %v5218_v58 = vpack.c.bf16 %v9047_v34, %v9046_v1  ;;  %v9049_v13 = vld [vmem:[#allocation70_spill] sm:$0xff]  ;;  %v9051_v55 = vld [vmem:[#allocation9_spill] sm:$0xff] }
 0x176   : > { %5213 = vmatprep.subr.bf16.mxu1 %v5212_v22  ;;  %5023 = vmatpush1.bf16.msra.mxu0 %v5022_v3  ;;  %v5028_v27 = vpack.c.bf16 %v9044_v24, %v9043_v15  ;;  %v5220_v19 = vpack.c.bf16 %v9049_v13, %v9048_v45  ;;  %v5030_v46 = vpack.c.bf16 %v9051_v55, %v9050_v9  ;;  %v9053_v16 = vld [vmem:[#allocation18_spill] sm:$0xff]  ;;  %v9054_v26 = vld [vmem:[#allocation19_spill] sm:$0xff]  ;;  %v9055_v25 = vld [vmem:[#allocation20_spill] sm:$0xff] }
 0x177   : > { %v5214_v36 = vpack.c.bf16 %v3726_v33, %v3714_v57  ;;  %5025 = vmatprep.subr.bf16.mxu0 %v5024_v35  ;;  %v5222_v56 = vpack.c.bf16 %v9053_v16, %v9052_v54  ;;  %v5032_v53 = vpack.c.bf16 %v9055_v25, %v9054_v26  ;;  %v9056_v57 = vld [vmem:[#allocation21_spill] sm:$0xff]  ;;  %v9057_v33 = vld [vmem:[#allocation23_spill] sm:$0xff]  ;;  %v9058_v3 = vld [vmem:[#allocation24_spill] sm:$0xff]  ;;  %v9078_v25 = vand.u32 4294901760, %v9041_v51 }
 0x178   : > { %v5224_v22 = vpack.c.bf16 %v9057_v33, %v9056_v57  ;;  %v9059_v35 = vld [vmem:[#allocation25_spill] sm:$0xff]  ;;  %v9060_v24 = vld [vmem:[#allocation28_spill] sm:$0xff]  ;;  %v9063_v55 = vld [vmem:[#allocation38_spill] sm:$0xff] }
 0x179   : > { %5215 = vmatpush1.bf16.msra.mxu1 %v5214_v36  ;;  %2907 = vmatmul.mubr.f32.vlgmr.msra.gmra.mrb[2].mxu0 %v9045_v8  ;;  %v5034_v36 = vpack.c.bf16 %v9059_v35, %v9058_v3  ;;  %v9061_v13 = vld [vmem:[#allocation32_spill] sm:$0xff]  ;;  %v9067_v54 = vld [vmem:[#allocation10_spill] sm:$0xff]  ;;  %v9072_v35 = vand.u32 4294901760, %v9037_v60  ;;  %v245_v57 = vld [vmem:[%s5725_s22 + $0x10] sm:$0xff] }
 0x17a   : > { %5217 = vmatprep.subr.bf16.mxu1 %v5216_v2  ;;  %5027 = vmatpush1.bf16.msra.mxu0 %v5026_v28  ;;  %v5226_v45 = vpack.c.bf16 %v9061_v13, %v9060_v24  ;;  %v9062_v15 = vld [vmem:[#allocation36_spill] sm:$0xff]  ;;  %v9064_v28 = vld [vmem:[#allocation41_spill] sm:$0xff] }
 0x17b   : > { %5029 = vmatprep.subr.bf16.mxu0 %v5028_v27  ;;  %v5036_v2 = vpack.c.bf16 %v9063_v55, %v9062_v15  ;;  %3041 = vmatprep.mubr.f32.mxu0 %v8616_v18  ;;  %v9065_v16 = vld [vmem:[#allocation48_spill] sm:$0xff]  ;;  %v9068_v27 = vld [vmem:[#allocation11_spill] sm:$0xff]  ;;  %v9076_v55 = vand.u32 4294901760, %v9040_v43 }
 0x17c   : > { %3762 = vmatmul.mubr.f32.vlgmr.msra.gmra.mrb[2].mxu1 %v9045_v8  ;;  %v9066_v26 = vld [vmem:[#allocation56_spill] sm:$0xff]  ;;  %v9079_v8 = vand.u32 4294901760, %v9042_v29 }
 0x17d   : > { %v5038_v33 = vpack.c.bf16 %v9067_v54, %v9066_v26  ;;  %5219 = vmatpush1.bf16.msra.mxu1 %v5218_v58  ;;  %3896 = vmatprep.mubr.f32.mxu1 %v8616_v18  ;;  %v9069_v15 = vld [vmem:[#allocation88_spill] sm:$0xff]  ;;  %v9073_v58 = vand.u32 4294901760, %v9038_v44  ;;  %v9081_v44 = vand.u32 4294901760, %v9046_v1  ;;  %v248_v1 = vld [vmem:[%s5725_s22 + $0x28] sm:$0xff] }
 0x17e   : > { %5221 = vmatprep.subr.bf16.mxu1 %v5220_v19  ;;  %5031 = vmatpush1.bf16.msra.mxu0 %v5030_v46  ;;  %v9070_v46 = vld [vmem:[#allocation90_spill] sm:$0xff]  ;;  %v243_v19 = vld [vmem:[%s5725_s22] sm:$0xff]  ;;  %v246_v60 = vld [vmem:[%s5725_s22 + $0x18] sm:$0xff] }
 0x17f   : > { %5033 = vmatprep.subr.bf16.mxu0 %v5032_v53  ;;  %v7474_v18 = vpack.c.bf16 %v9073_v58, %v9072_v35  ;;  %v9075_v53 = vand.u32 4294901760, %v9039_v6  ;;  %v9082_v6 = vand.u32 4294901760, %v9047_v34  ;;  %v9086_v35 = vld [vmem:[#allocation65_spill] sm:$0xff]  ;;  %v249_v34 = vld [vmem:[%s5725_s22 + $0x30] sm:$0xff] }
 0x180   : > { %v9087_v29 = vand.u32 4294901760, %v9086_v35 }
 0x181   : > { %5223 = vmatpush1.bf16.msra.mxu1 %v5222_v56  ;;  %9074 = vst [vmem:[#allocation55_spill] sm:$0xff] %v7474_v18  ;;  %v7480_v59 = vpack.c.bf16 %v9076_v55, %v9075_v53  ;;  %v7486_v56 = vpack.c.bf16 %v9079_v8, %v9078_v25  ;;  %v7495_v43 = vpack.c.bf16 %v9082_v6, %v9081_v44  ;;  %v9084_v55 = vld [vmem:[#allocation64_spill] sm:$0xff]  ;;  %v9089_v25 = vld [vmem:[#allocation69_spill] sm:$0xff]  ;;  %v9091_v53 = vld [vmem:[#allocation70_spill] sm:$0xff] }
 0x182   : > { %5225 = vmatprep.subr.bf16.mxu1 %v5224_v22  ;;  %5035 = vmatpush1.bf16.msra.mxu0 %v5034_v36  ;;  %v9085_v51 = vand.u32 4294901760, %v9084_v55  ;;  %v9090_v58 = vand.u32 4294901760, %v9089_v25  ;;  %v247_v22 = vld [vmem:[%s5725_s22 + $0x20] sm:$0xff]  ;;  %v9094_v36 = vand.u32 4294901760, %v9050_v9  ;;  %v9110_v9 = vld [vmem:[#allocation23_spill] sm:$0xff] }
 0x183   : > { %9077 = vst [vmem:[#allocation77_spill] sm:$0xff] %v7480_v59  ;;  %9080 = vst [vmem:[#allocation82_spill] sm:$0xff] %v7486_v56  ;;  %v9092_v56 = vand.u32 4294901760, %v9091_v53  ;;  %5037 = vmatprep.subr.bf16.mxu0 %v5036_v2  ;;  %v9095_v44 = vld [vmem:[#allocation9_spill] sm:$0xff]  ;;  %v9111_v7 = vand.u32 4294901760, %v9110_v9 }
 0x184   : > { %9083 = vst [vmem:[#allocation84_spill] sm:$0xff] %v7495_v43  ;;  %v7501_v8 = vpack.c.bf16 %v9087_v29, %v9085_v51  ;;  %v9096_v6 = vand.u32 4294901760, %v9095_v44  ;;  %v9098_v51 = vld [vmem:[#allocation15_spill] sm:$0xff]  ;;  %v9100_v29 = vld [vmem:[#allocation18_spill] sm:$0xff]  ;;  %v9108_v2 = vld [vmem:[#allocation21_spill] sm:$0xff] }
 0x185   : > { %v7507_v59 = vpack.c.bf16 %v9092_v56, %v9090_v58  ;;  %v9099_v35 = vand.u32 4294901760, %v9098_v51  ;;  %v9101_v25 = vand.u32 4294901760, %v9100_v29  ;;  %v9103_v56 = vld [vmem:[#allocation19_spill] sm:$0xff]  ;;  %v9109_v18 = vand.u32 4294901760, %v9108_v2  ;;  %v250_v44 = vld [vmem:[%s5725_s22 + $0x38] sm:$0xff]  ;;  %v252_v51 = vld [vmem:[%s5725_s22 + $0x48] sm:$0xff]  ;;  %5227 = vmatpush1.bf16.msra.mxu1 %v5226_v45 }
 0x186   : > { %9088 = vst [vmem:[#allocation85_spill] sm:$0xff] %v7501_v8  ;;  %v7516_v55 = vpack.c.bf16 %v9096_v6, %v9094_v36  ;;  %v9104_v58 = vand.u32 4294901760, %v9103_v56  ;;  %v251_v6 = vld [vmem:[%s5725_s22 + $0x40] sm:$0xff]  ;;  %v9120_v2 = vld [vmem:[#allocation36_spill] sm:$0xff]  ;;  %v7581_v45 = vmul.f32 %v244_v49, %v244_v49  ;;  %5039 = vmatpush1.bf16.msra.mxu0 %v5038_v33  ;;  %v9135_v49 = vpack.c.bf16 %v8987_v11, %v8975_v21  ;;  %v264_v33 = vld [vmem:[%s5725_s22 + $0xa8] sm:$0xff] }
 0x187   : > { %9093 = vst [vmem:[#allocation87_spill] sm:$0xff] %v7507_v59  ;;  %v7522_v53 = vpack.c.bf16 %v9101_v25, %v9099_v35  ;;  %v9105_v59 = vld [vmem:[#allocation20_spill] sm:$0xff]  ;;  %v7534_v36 = vpack.c.bf16 %v9111_v7, %v9109_v18  ;;  %v9113_v35 = vand.u32 4294901760, %v9058_v3  ;;  %v9114_v29 = vld [vmem:[#allocation25_spill] sm:$0xff]  ;;  %v9121_v9 = vand.u32 4294901760, %v9120_v2  ;;  %v9122_v18 = vld [vmem:[#allocation38_spill] sm:$0xff] }
 0x188   : > { %9097 = vst [vmem:[#allocation93_spill] sm:$0xff] %v7516_v55  ;;  %v9106_v43 = vand.u32 4294901760, %v9105_v59  ;;  %v9115_v25 = vand.u32 4294901760, %v9114_v29  ;;  %v9117_v59 = vand.u32 4294901760, %v9060_v24  ;;  %v9123_v7 = vand.u32 4294901760, %v9122_v18  ;;  %v253_v24 = vld [vmem:[%s5725_s22 + $0x50] sm:$0xff]  ;;  %5041 = vmatprep.subr.bf16.mxu0 %v9135_v49 }
 0x189   : > { %9102 = vst [vmem:[#allocation96_spill] sm:$0xff] %v7522_v53  ;;  %9112 = vst [vmem:[#allocation35_spill] sm:$0xff] %v7534_v36  ;;  %v9125_v53 = vand.u32 4294901760, %v9064_v28  ;;  %v9126_v3 = vand.u32 4294901760, %v9065_v16  ;;  %v254_v29 = vld [vmem:[%s5725_s22 + $0x58] sm:$0xff]  ;;  %v9131_v2 = vand.u32 4294901760, %v8975_v21  ;;  %v380_v21 = vmul.f32 %v252_v51, %v252_v51 }
 0x18a   : > { %v7528_v8 = vpack.c.bf16 %v9106_v43, %v9104_v58  ;;  %v7543_v56 = vpack.c.bf16 %v9115_v25, %v9113_v35  ;;  %v9118_v43 = vand.u32 4294901760, %v9061_v13  ;;  %v7555_v36 = vpack.c.bf16 %v9123_v7, %v9121_v9  ;;  %v255_v13 = vld [vmem:[%s5725_s22 + $0x60] sm:$0xff]  ;;  %v257_v7 = vld [vmem:[%s5725_s22 + $0x70] sm:$0xff] }
 0x18b   : > { %v7561_v35 = vpack.c.bf16 %v9126_v3, %v9125_v53  ;;  %v9128_v25 = vand.u32 4294901760, %v9066_v26  ;;  %v9132_v9 = vand.u32 4294901760, %v8987_v11  ;;  %v256_v53 = vld [vmem:[%s5725_s22 + $0x68] sm:$0xff]  ;;  %v258_v3 = vld [vmem:[%s5725_s22 + $0x78] sm:$0xff]  ;;  %v259_v26 = vld [vmem:[%s5725_s22 + $0x80] sm:$0xff]  ;;  %v381_v11 = vmul.f32 %v253_v24, %v253_v24 }
 0x18c   : > { %9107 = vst [vmem:[#allocation31_spill] sm:$0xff] %v7528_v8  ;;  %9116 = vst [vmem:[#allocation40_spill] sm:$0xff] %v7543_v56  ;;  %v7549_v58 = vpack.c.bf16 %v9118_v43, %v9117_v59  ;;  %v9129_v59 = vand.u32 4294901760, %v9067_v54  ;;  %v9134_v54 = vpack.c.bf16 %v9065_v16, %v9064_v28  ;;  %v262_v16 = vld [vmem:[%s5725_s22 + $0x98] sm:$0xff]  ;;  %v263_v28 = vld [vmem:[%s5725_s22 + $0xa0] sm:$0xff]  ;;  %v382_v49 = vmul.f32 %v254_v29, %v254_v29 }
 0x18d   : > { %9124 = vst [vmem:[#allocation45_spill] sm:$0xff] %v7555_v36  ;;  %9127 = vst [vmem:[#allocation46_spill] sm:$0xff] %v7561_v35  ;;  %v7576_v18 = vpack.c.bf16 %v9132_v9, %v9131_v2  ;;  %v371_v35 = vmul.f32 %v243_v19, %v243_v19  ;;  %v7589_v2 = vmul.f32 %v245_v57, %v245_v57 }
 0x18e   : > { %9119 = vst [vmem:[#allocation42_spill] sm:$0xff] %v7549_v58  ;;  %v7570_v43 = vpack.c.bf16 %v9129_v59, %v9128_v25  ;;  %5229 = vmatprep.subr.bf16.mxu1 %v9134_v54  ;;  %v260_v25 = vld [vmem:[%s5725_s22 + $0x88] sm:$0xff]  ;;  %v261_v59 = vld [vmem:[%s5725_s22 + $0x90] sm:$0xff]  ;;  %v7591_v9 = vmul.f32 %v246_v60, %v246_v60  ;;  %v7601_v19 = vmul.f32 %v248_v1, %v248_v1  ;;  %v267_v58 = vld [vmem:[%s5725_s22 + $0xc0] sm:$0xff] }
 0x18f   : > { %9133 = vst [vmem:[#allocation58_spill] sm:$0xff] %v7576_v18  ;;  %v7593_v18 = vmul.f32 %v247_v22, %v247_v22  ;;  %v7603_v54 = vmul.f32 %v249_v34, %v249_v34  ;;  %v7605_v57 = vmul.f32 %v250_v44, %v250_v44  ;;  %v379_v60 = vmul.f32 %v251_v6, %v251_v6  ;;  %v266_v22 = vld [vmem:[%s5725_s22 + $0xb8] sm:$0xff]  ;;  %v268_v34 = vld [vmem:[%s5725_s22 + $0xc8] sm:$0xff]  ;;  %v269_v44 = vld [vmem:[%s5725_s22 + $0xd0] sm:$0xff] }
 0x190   : > { %9130 = vst [vmem:[#allocation49_spill] sm:$0xff] %v7570_v43  ;;  %v265_v43 = vld [vmem:[%s5725_s22 + $0xb0] sm:$0xff]  ;;  %v7610_v36 = vmul.f32 %v255_v13, %v255_v13  ;;  %v9136_v1 = vpack.c.bf16 %v8954_v37, %v9068_v27  ;;  %v270_v6 = vld [vmem:[%s5725_s22 + $0xd8] sm:$0xff]  ;;  %v7618_v56 = vmul.f32 %v256_v53, %v256_v53  ;;  %v7620_v8 = vmul.f32 %v257_v7, %v257_v7  ;;  %v271_v13 = vld [vmem:[%s5725_s22 + $0xe0] sm:$0xff] }
 0x191   : > { %v7622_v55 = vmul.f32 %v258_v3, %v258_v3  ;;  %v387_v51 = vmul.f32 %v259_v26, %v259_v26  ;;  %v9137_v24 = vpack.c.bf16 %v6792_v32, %v6784_v10  ;;  %v9138_v29 = vpack.c.bf16 %v6799_v41, %v6794_v63  ;;  %v273_v53 = vld [vmem:[%s5725_s22 + $0xf0] sm:$0xff]  ;;  %v274_v10 = vld [vmem:[%s5725_s22 + $0xf8] sm:$0xff]  ;;  %v275_v32 = vld [vmem:[%s5725_s22 + $0x100] sm:$0xff] }
 0x192   : > { %5231 = vmatpush1.bf16.msra.mxu1 %v9136_v1  ;;  %v272_v1 = vld [vmem:[%s5725_s22 + $0xe8] sm:$0xff]  ;;  %v388_v37 = vmul.f32 %v260_v25, %v260_v25  ;;  %v389_v7 = vmul.f32 %v261_v59, %v261_v59  ;;  %v7633_v27 = vmul.f32 %v262_v16, %v262_v16  ;;  %v9139_v3 = vpack.c.bf16 %v8917_v14, %v8916_v20  ;;  %v277_v59 = vld [vmem:[%s5725_s22 + $0x110] sm:$0xff]  ;;  %v278_v16 = vld [vmem:[%s5725_s22 + $0x118] sm:$0xff] }
 0x193   : > { %5233 = vmatprep.subr.bf16.mxu1 %v9137_v24  ;;  %5043 = vmatpush1.bf16.msra.mxu0 %v9138_v29  ;;  %v7640_v63 = vmul.f32 %v263_v28, %v263_v28  ;;  %v7642_v41 = vmul.f32 %v264_v33, %v264_v33  ;;  %v7644_v26 = vmul.f32 %v265_v43, %v265_v43  ;;  %v276_v25 = vld [vmem:[%s5725_s22 + $0x108] sm:$0xff]  ;;  %v279_v43 = vld [vmem:[%s5725_s22 + $0x120] sm:$0xff] }
 0x194   : > { %5045 = vmatprep.subr.bf16.mxu0 %v9139_v3  ;;  %v7646_v24 = vmul.f32 %v266_v22, %v266_v22  ;;  %v395_v14 = vmul.f32 %v267_v58, %v267_v58  ;;  %v7651_v20 = vmul.f32 %v268_v34, %v268_v34  ;;  %v7653_v29 = vmul.f32 %v269_v44, %v269_v44  ;;  %v280_v33 = vld [vmem:[%s5725_s22 + $0x128] sm:$0xff]  ;;  %v281_v22 = vld [vmem:[%s5725_s22 + $0x130] sm:$0xff] }
 0x195   : > { %v7655_v3 = vmul.f32 %v270_v6, %v270_v6  ;;  %v9141_v28 = vpack.c.bf16 %v6810_v31, %v6805_v50  ;;  %v7663_v62 = vmul.f32 %v271_v13, %v271_v13  ;;  %v7667_v58 = vmul.f32 %v273_v53, %v273_v53  ;;  %v282_v31 = vld [vmem:[%s5725_s22 + $0x138] sm:$0xff]  ;;  %v283_v6 = vld [vmem:[%s5725_s22 + $0x140] sm:$0xff]  ;;  %v285_v53 = vld [vmem:[%s5725_s22 + $0x150] sm:$0xff] }
 0x196   : > { %9140 = vst [vmem:[#allocation72_spill] sm:$0xff] %v7646_v24  ;;  %v7665_v24 = vmul.f32 %v272_v1, %v272_v1  ;;  %v499_v34 = vadd.f32 %v379_v60, %v371_v35  ;;  %v9142_v44 = vpack.c.bf16 %v6831_v4, %v8918_v48  ;;  %v9143_v50 = vpack.c.bf16 %v9010_v38, %v8919_v30  ;;  %v284_v48 = vld [vmem:[%s5725_s22 + $0x148] sm:$0xff] }
 0x197   : > { %5235 = vmatpush1.bf16.msra.mxu1 %v9141_v28  ;;  %v7677_v28 = vmul.f32 %v274_v10, %v274_v10  ;;  %v7679_v13 = vmul.f32 %v275_v32, %v275_v32  ;;  %v520_v1 = vadd.f32 %v380_v21, %v7581_v45  ;;  %v9144_v35 = vpack.c.bf16 %v9069_v15, %v9016_v42  ;;  %v286_v10 = vld [vmem:[%s5725_s22 + $0x158] sm:$0xff] }
 0x198   : > { %5237 = vmatprep.subr.bf16.mxu1 %v9142_v44  ;;  %5047 = vmatpush1.bf16.msra.mxu0 %v9143_v50  ;;  %v7686_v4 = vmul.f32 %v276_v25, %v276_v25  ;;  %v7688_v60 = vmul.f32 %v277_v59, %v277_v59  ;;  %v7690_v30 = vmul.f32 %v278_v16, %v278_v16  ;;  %v287_v25 = vld [vmem:[%s5725_s22 + $0x160] sm:$0xff]  ;;  %v288_v59 = vld [vmem:[%s5725_s22 + $0x168] sm:$0xff] }
 0x199   : > { %5049 = vmatprep.subr.bf16.mxu0 %v9144_v35  ;;  %v541_v38 = vadd.f32 %v381_v11, %v7589_v2  ;;  %v7695_v32 = vmul.f32 %v279_v43, %v279_v43  ;;  %v7697_v45 = vmul.f32 %v280_v33, %v280_v33  ;;  %v7699_v21 = vmul.f32 %v281_v22, %v281_v22  ;;  %v9152_v35 = vld [vmem:[#allocation66_spill] sm:$0xff] }
 0x19a   : > { %v562_v42 = vadd.f32 %v382_v49, %v7591_v9  ;;  %v9145_v15 = vpack.c.bf16 %v9014_v17, %v9012_v12  ;;  %v7707_v2 = vmul.f32 %v282_v31, %v282_v31  ;;  %v7709_v11 = vmul.f32 %v283_v6, %v283_v6  ;;  %v289_v17 = vld [vmem:[%s5725_s22 + $0x170] sm:$0xff]  ;;  %v290_v49 = vld [vmem:[%s5725_s22 + $0x178] sm:$0xff] }
 0x19b   : > { %v500_v16 = vadd.f32 %v499_v34, %v387_v51  ;;  %v583_v43 = vadd.f32 %v7610_v36, %v7593_v18  ;;  %v9146_v9 = vpack.c.bf16 %v6864_v39, %v9070_v46  ;;  %v9147_v12 = vpack.c.bf16 %v9023_v40, %v8939_v52  ;;  %v291_v39 = vld [vmem:[%s5725_s22 + $0x180] sm:$0xff]  ;;  %v292_v34 = vld [vmem:[%s5725_s22 + $0x188] sm:$0xff] }
 0x19c   : > { %5239 = vmatpush1.bf16.msra.mxu1 %v9145_v15  ;;  %v7721_v33 = vmul.f32 %v284_v48, %v284_v48  ;;  %v521_v22 = vadd.f32 %v520_v1, %v388_v37  ;;  %v604_v51 = vadd.f32 %v7618_v56, %v7601_v19  ;;  %v9148_v36 = vpack.c.bf16 %v6916_v5, %v8962_v0  ;;  %v293_v37 = vld [vmem:[%s5725_s22 + $0x190] sm:$0xff]  ;;  %v294_v19 = vld [vmem:[%s5725_s22 + $0x198] sm:$0xff] }
 0x19d   : > { %5241 = vmatprep.subr.bf16.mxu1 %v9146_v9  ;;  %5051 = vmatpush1.bf16.msra.mxu0 %v9147_v12  ;;  %v7729_v46 = vmul.f32 %v285_v53, %v285_v53  ;;  %v7731_v18 = vmul.f32 %v286_v10, %v286_v10  ;;  %v542_v52 = vadd.f32 %v541_v38, %v389_v7  ;;  %v295_v7 = vld [vmem:[%s5725_s22 + $0x1a0] sm:$0xff]  ;;  %v298_v15 = vld [vmem:[%s5725_s22 + $0x1b8] sm:$0xff]  ;;  %v9158_v9 = vld [vmem:[#allocation71_spill] sm:$0xff] }
 0x19e   : > { %5053 = vmatprep.subr.bf16.mxu0 %v9148_v36  ;;  %v625_v40 = vadd.f32 %v7620_v8, %v7603_v54  ;;  %v7737_v44 = vmul.f32 %v287_v25, %v287_v25  ;;  %v7739_v50 = vmul.f32 %v288_v59, %v288_v59  ;;  %v563_v56 = vadd.f32 %v562_v42, %v7633_v27  ;;  %v9150_v27 = vld [vmem:[#allocation61_spill] sm:$0xff]  ;;  %v9162_v36 = vld [vmem:[#allocation43_spill] sm:$0xff] }
 0x19f   : > { %v646_v0 = vadd.f32 %v7622_v55, %v7605_v57  ;;  %v9149_v5 = vpack.c.bf16 %v9028_v47, %v8941_v61  ;;  %v7749_v8 = vmul.f32 %v289_v17, %v289_v17  ;;  %v7751_v54 = vmul.f32 %v290_v49, %v290_v49  ;;  %v9153_v55 = vld [vmem:[#allocation62_spill] sm:$0xff]  ;;  %v9160_v17 = vld [vmem:[#allocation75_spill] sm:$0xff] }
 0x1a0   : > { %v501_v31 = vadd.f32 %v500_v16, %v395_v14  ;;  %v584_v6 = vadd.f32 %v583_v43, %v7640_v63  ;;  %v9151_v1 = vpack.c.bf16 %v6922_v23, %v9150_v27  ;;  %v9154_v57 = vpack.c.bf16 %v9152_v35, %v9153_v55  ;;  %v296_v61 = vld [vmem:[%s5725_s22 + $0x1a8] sm:$0xff]  ;;  %v297_v63 = vld [vmem:[%s5725_s22 + $0x1b0] sm:$0xff] }
 0x1a1   : > { %5243 = vmatpush1.bf16.msra.mxu1 %v9149_v5  ;;  %v7761_v47 = vmul.f32 %v291_v39, %v291_v39  ;;  %v522_v48 = vadd.f32 %v521_v22, %v7651_v20  ;;  %v605_v38 = vadd.f32 %v604_v51, %v7642_v41  ;;  %v9155_v14 = vld [vmem:[#allocation30_spill] sm:$0xff]  ;;  %v7767_v53 = vmul.f32 %v292_v34, %v292_v34  ;;  %v9156_v41 = vld [vmem:[#allocation72_spill] sm:$0xff]  ;;  %v301_v39 = vld [vmem:[%s5725_s22 + $0x1d0] sm:$0xff] }
 0x1a2   : > { %5245 = vmatprep.subr.bf16.mxu1 %v9151_v1  ;;  %5055 = vmatpush1.bf16.msra.mxu0 %v9154_v57  ;;  %v7769_v23 = vmul.f32 %v293_v37, %v293_v37  ;;  %v543_v10 = vadd.f32 %v542_v52, %v7653_v29  ;;  %v626_v42 = vadd.f32 %v625_v40, %v7644_v26  ;;  %v9157_v43 = vld [vmem:[#allocation98_spill] sm:$0xff]  ;;  %v299_v29 = vld [vmem:[%s5725_s22 + $0x1c0] sm:$0xff]  ;;  %v9163_v37 = vld [vmem:[#allocation59_spill] sm:$0xff] }
 0x1a3   : > { %5057 = vmatprep.subr.bf16.mxu0 %v9155_v14  ;;  %v7774_v25 = vmul.f32 %v294_v19, %v294_v19  ;;  %v7776_v59 = vmul.f32 %v295_v7, %v295_v7  ;;  %v564_v20 = vadd.f32 %v563_v56, %v7655_v3  ;;  %v647_v16 = vadd.f32 %v646_v0, %v9156_v41  ;;  %v300_v49 = vld [vmem:[%s5725_s22 + $0x1c8] sm:$0xff]  ;;  %v9161_v3 = vld [vmem:[#allocation39_spill] sm:$0xff]  ;;  %v303_v19 = vld [vmem:[%s5725_s22 + $0x1e0] sm:$0xff] }
 0x1a4   : > { %v9159_v12 = vpack.c.bf16 %v9157_v43, %v9158_v9  ;;  %v7786_v22 = vmul.f32 %v296_v61, %v296_v61  ;;  %v502_v26 = vadd.f32 %v501_v31, %v7679_v13  ;;  %v585_v51 = vadd.f32 %v584_v6, %v7663_v62  ;;  %v302_v13 = vld [vmem:[%s5725_s22 + $0x1d8] sm:$0xff]  ;;  %v9165_v27 = vld [vmem:[#allocation47_spill] sm:$0xff]  ;;  %v308_v61 = vld [vmem:[%s5725_s22 + $0x208] sm:$0xff] }
 0x1a5   : > { %3044 = vmatmul.mubr.f32.vlgmr.msra.gmra.mrb[2].mxu0 %v9160_v17  ;;  %v7793_v52 = vmul.f32 %v297_v63, %v297_v63  ;;  %v523_v40 = vadd.f32 %v522_v48, %v7686_v4  ;;  %v606_v34 = vadd.f32 %v605_v38, %v7665_v24  ;;  %v9164_v56 = vmov 0.0   ;;  %v304_v4 = vld [vmem:[%s5725_s22 + $0x1e8] sm:$0xff]  ;;  %v9166_v57 = vld [vmem:[#allocation67_spill] sm:$0xff]  ;;  %v310_v41 = vld [vmem:[%s5725_s22 + $0x218] sm:$0xff] }
 0x1a6   : > { %5247 = vmatpush1.bf16.msra.mxu1 %v9159_v12  ;;  %5059 = vmatpush1.bf16.msra.mxu0 %v9162_v36  ;;  %v7800_v0 = vmul.f32 %v298_v15, %v298_v15  ;;  %v544_v62 = vadd.f32 %v543_v10, %v7688_v60  ;;  %v627_v5 = vadd.f32 %v626_v42, %v7667_v58  ;;  %v305_v60 = vld [vmem:[%s5725_s22 + $0x1f0] sm:$0xff]  ;;  %v306_v58 = vld [vmem:[%s5725_s22 + $0x1f8] sm:$0xff]  ;;  %v9168_v10 = vld [vmem:[#allocation17_spill] sm:$0xff] }
 0x1a7   : > { %5249 = vmatprep.subr.bf16.mxu1 %v9161_v3  ;;  %5061 = vmatprep.subr.bf16.mxu0 %v9163_v37  ;;  %v427_v24 = vmul.f32 %v299_v29, %v299_v29  ;;  %v7807_v7 = vmul.f32 %v300_v49, %v300_v49  ;;  %v565_v31 = vadd.f32 %v564_v20, %v7690_v30  ;;  %v9167_v30 = vld [vmem:[#allocation73_spill] sm:$0xff]  ;;  %v313_v29 = vld [vmem:[%s5725_s22 + $0x230] sm:$0xff] }
 0x1a8   : > { %3146 = vmatprep.mubr.f32.mxu0 %v9164_v56  ;;  %v648_v6 = vadd.f32 %v647_v16, %v7677_v28  ;;  %v7815_v1 = vmul.f32 %v301_v39, %v301_v39  ;;  %v503_v35 = vadd.f32 %v502_v26, %v7709_v11  ;;  %v586_v55 = vadd.f32 %v585_v51, %v7695_v32  ;;  %v307_v28 = vld [vmem:[%s5725_s22 + $0x200] sm:$0xff]  ;;  %v309_v11 = vld [vmem:[%s5725_s22 + $0x210] sm:$0xff]  ;;  %v9170_v51 = vld [vmem:[#allocation22_spill] sm:$0xff] }
 0x1a9   : > { %3899 = vmatmul.mubr.f32.vlgmr.msra.gmra.mrb[2].mxu1 %v9160_v17  ;;  %v7823_v48 = vmul.f32 %v302_v13, %v302_v13  ;;  %v524_v38 = vadd.f32 %v523_v40, %v7721_v33  ;;  %v607_v63 = vadd.f32 %v606_v34, %v7697_v45  ;;  %v7829_v42 = vmul.f32 %v303_v19, %v303_v19  ;;  %v311_v16 = vld [vmem:[%s5725_s22 + $0x220] sm:$0xff]  ;;  %v312_v17 = vld [vmem:[%s5725_s22 + $0x228] sm:$0xff] }
 0x1aa   : > { %5251 = vmatpush1.bf16.msra.mxu1 %v9165_v27  ;;  %4001 = vmatprep.mubr.f32.mxu1 %v9164_v56  ;;  %v7831_v32 = vmul.f32 %v304_v4, %v304_v4  ;;  %v545_v15 = vadd.f32 %v544_v62, %v7729_v46  ;;  %v628_v20 = vadd.f32 %v627_v5, %v7699_v21  ;;  %v9169_v12 = vld [vmem:[#allocation13_spill] sm:$0xff]  ;;  %v9171_v39 = vld [vmem:[#allocation26_spill] sm:$0xff] }
 0x1ab   : > { %5253 = vmatprep.subr.bf16.mxu1 %v9166_v57  ;;  %5063 = vmatpush1.bf16.msra.mxu0 %v9167_v30  ;;  %v7837_v43 = vmul.f32 %v305_v60, %v305_v60  ;;  %v7839_v33 = vmul.f32 %v306_v58, %v306_v58  ;;  %v566_v45 = vadd.f32 %v565_v31, %v7731_v18  ;;  %v314_v18 = vld [vmem:[%s5725_s22 + $0x238] sm:$0xff]  ;;  %v315_v40 = vld [vmem:[%s5725_s22 + $0x240] sm:$0xff]  ;;  %v316_v5 = vld [vmem:[%s5725_s22 + $0x248] sm:$0xff] }
 0x1ac   : > { %5065 = vmatprep.subr.bf16.mxu0 %v9168_v10  ;;  %v649_v9 = vadd.f32 %v648_v6, %v7707_v2  ;;  %v435_v46 = vmul.f32 %v307_v28, %v307_v28  ;;  %v436_v49 = vmul.f32 %v308_v61, %v308_v61  ;;  %v504_v21 = vadd.f32 %v503_v35, %v7761_v47  ;;  %v9172_v62 = vld [vmem:[#allocation29_spill] sm:$0xff]  ;;  %v317_v31 = vld [vmem:[%s5725_s22 + $0x250] sm:$0xff]  ;;  %v318_v6 = vld [vmem:[%s5725_s22 + $0x258] sm:$0xff] }
 0x1ad   : > { %v587_v26 = vadd.f32 %v586_v55, %v7737_v44  ;;  %v437_v2 = vmul.f32 %v309_v11, %v309_v11  ;;  %v525_v34 = vadd.f32 %v524_v38, %v7767_v53  ;;  %v608_v13 = vadd.f32 %v607_v63, %v7739_v50  ;;  %v9173_v35 = vld [vmem:[#allocation27_spill] sm:$0xff]  ;;  %v319_v55 = vld [vmem:[%s5725_s22 + $0x260] sm:$0xff]  ;;  %v320_v28 = vld [vmem:[%s5725_s22 + $0x268] sm:$0xff] }
 0x1ae   : > { %5255 = vmatpush1.bf16.msra.mxu1 %v9169_v12  ;;  %v438_v47 = vmul.f32 %v310_v41, %v310_v41  ;;  %v7856_v19 = vmul.f32 %v311_v16, %v311_v16  ;;  %v546_v44 = vadd.f32 %v545_v15, %v7769_v23  ;;  %v629_v4 = vadd.f32 %v628_v20, %v7749_v8  ;;  %v9174_v63 = vld [vmem:[#allocation44_spill] sm:$0xff]  ;;  %v9175_v11 = vld [vmem:[#allocation50_spill] sm:$0xff]  ;;  %v9176_v16 = vld [vmem:[#allocation51_spill] sm:$0xff] }
 0x1af   : > { %5257 = vmatprep.subr.bf16.mxu1 %v9170_v51  ;;  %5067 = vmatpush1.bf16.msra.mxu0 %v9171_v39  ;;  %v7862_v60 = vmul.f32 %v312_v17, %v312_v17  ;;  %v7864_v53 = vmul.f32 %v313_v29, %v313_v29  ;;  %v567_v50 = vadd.f32 %v566_v45, %v7774_v25  ;;  %v321_v25 = vld [vmem:[%s5725_s22 + $0x270] sm:$0xff]  ;;  %v322_v15 = vld [vmem:[%s5725_s22 + $0x278] sm:$0xff]  ;;  %v323_v45 = vld [vmem:[%s5725_s22 + $0x280] sm:$0xff] }
 0x1b0   : > { %5069 = vmatprep.subr.bf16.mxu0 %v9172_v62  ;;  %v650_v58 = vadd.f32 %v649_v9, %v7751_v54  ;;  %v7871_v23 = vmul.f32 %v314_v18, %v314_v18  ;;  %v443_v8 = vmul.f32 %v315_v40, %v315_v40  ;;  %v505_v61 = vadd.f32 %v504_v21, %v427_v24  ;;  %v324_v29 = vld [vmem:[%s5725_s22 + $0x288] sm:$0xff]  ;;  %v325_v21 = vld [vmem:[%s5725_s22 + $0x290] sm:$0xff]  ;;  %v9177_v40 = vld [vmem:[#allocation37_spill] sm:$0xff] }
 0x1b1   : > { %v588_v38 = vadd.f32 %v587_v26, %v7776_v59  ;;  %v444_v54 = vmul.f32 %v316_v5, %v316_v5  ;;  %v526_v20 = vadd.f32 %v525_v34, %v7807_v7  ;;  %v609_v41 = vadd.f32 %v608_v13, %v7786_v22  ;;  %v326_v34 = vld [vmem:[%s5725_s22 + $0x298] sm:$0xff]  ;;  %v327_v13 = vld [vmem:[%s5725_s22 + $0x2a0] sm:$0xff] }
 0x1b2   : > { %5259 = vmatpush1.bf16.msra.mxu1 %v9173_v35  ;;  %v445_v24 = vmul.f32 %v317_v31, %v317_v31  ;;  %v446_v9 = vmul.f32 %v318_v6, %v318_v6  ;;  %v547_v59 = vadd.f32 %v546_v44, %v7815_v1  ;;  %v630_v17 = vadd.f32 %v629_v4, %v7793_v52  ;;  %v9178_v4 = vld [vmem:[#allocation12_spill] sm:$0xff]  ;;  %v9179_v31 = vld [vmem:[#allocation57_spill] sm:$0xff] }
 0x1b3   : > { %5261 = vmatprep.subr.bf16.mxu1 %v9174_v63  ;;  %5071 = vmatpush1.bf16.msra.mxu0 %v9175_v11  ;;  %v447_v26 = vmul.f32 %v319_v55, %v319_v55  ;;  %v7886_v18 = vmul.f32 %v320_v28, %v320_v28  ;;  %v568_v7 = vadd.f32 %v567_v50, %v7823_v48  ;;  %v328_v48 = vld [vmem:[%s5725_s22 + $0x2a8] sm:$0xff]  ;;  %v9180_v55 = vld [vmem:[#allocation16_spill] sm:$0xff] }
 0x1b4   : > { %5073 = vmatprep.subr.bf16.mxu0 %v9176_v16  ;;  %v651_v22 = vadd.f32 %v650_v58, %v7800_v0  ;;  %v7893_v5 = vmul.f32 %v321_v25, %v321_v25  ;;  %v7895_v1 = vmul.f32 %v322_v15, %v322_v15  ;;  %v506_v52 = vadd.f32 %v505_v61, %v435_v46  ;;  %v329_v0 = vld [vmem:[%s5725_s22 + $0x2b0] sm:$0xff]  ;;  %v330_v28 = vld [vmem:[%s5725_s22 + $0x2b8] sm:$0xff]  ;;  %v332_v15 = vld [vmem:[%s5725_s22 + $0x2c8] sm:$0xff] }
 0x1b5   : > { %v589_v44 = vadd.f32 %v588_v38, %v7829_v42  ;;  %v451_v6 = vmul.f32 %v323_v45, %v323_v45  ;;  %v527_v50 = vadd.f32 %v526_v20, %v436_v49  ;;  %v610_v58 = vadd.f32 %v609_v41, %v7831_v32  ;;  %v331_v38 = vld [vmem:[%s5725_s22 + $0x2c0] sm:$0xff]  ;;  %v9181_v20 = vld [vmem:[#allocation14_spill] sm:$0xff]  ;;  %v333_v32 = vld [vmem:[%s5725_s22 + $0x2d0] sm:$0xff] }
 0x1b6   : > { %5263 = vmatpush1.bf16.msra.mxu1 %v9177_v40  ;;  %v452_v25 = vmul.f32 %v324_v29, %v324_v29  ;;  %v453_v46 = vmul.f32 %v325_v21, %v325_v21  ;;  %v548_v61 = vadd.f32 %v547_v59, %v437_v2  ;;  %v631_v42 = vadd.f32 %v630_v17, %v7837_v43  ;;  %v334_v41 = vld [vmem:[%s5725_s22 + $0x2d8] sm:$0xff]  ;;  %v9182_v59 = vld [vmem:[#allocation79_spill] sm:$0xff]  ;;  %v336_v21 = vld [vmem:[%s5725_s22 + $0x2e8] sm:$0xff] }
 0x1b7   : > { %5265 = vmatprep.subr.bf16.mxu1 %v9178_v4  ;;  %5075 = vmatpush1.bf16.msra.mxu0 %v9179_v31  ;;  %v454_v31 = vmul.f32 %v326_v34, %v326_v34  ;;  %v455_v4 = vmul.f32 %v327_v13, %v327_v13  ;;  %v569_v45 = vadd.f32 %v568_v7, %v438_v47  ;;  %v9183_v17 = vld [vmem:[#allocation80_spill] sm:$0xff]  ;;  %v335_v47 = vld [vmem:[%s5725_s22 + $0x2e0] sm:$0xff]  ;;  %v9184_v34 = vld [vmem:[#allocation86_spill] sm:$0xff] }
 0x1b8   : > { %5077 = vmatprep.subr.bf16.mxu0 %v9180_v55  ;;  %v652_v49 = vadd.f32 %v651_v22, %v7839_v33  ;;  %v456_v55 = vmul.f32 %v328_v48, %v328_v48  ;;  %v7912_v29 = vmul.f32 %v329_v0, %v329_v0  ;;  %v507_v2 = vadd.f32 %v506_v52, %v443_v8  ;;  %v337_v13 = vld [vmem:[%s5725_s22 + $0x2f0] sm:$0xff]  ;;  %v339_v0 = vld [vmem:[%s5725_s22 + $0x300] sm:$0xff] }
 0x1b9   : > { %v590_v43 = vadd.f32 %v589_v44, %v7856_v19  ;;  %v7919_v33 = vmul.f32 %v330_v28, %v330_v28  ;;  %v528_v7 = vadd.f32 %v527_v50, %v444_v54  ;;  %v611_v22 = vadd.f32 %v610_v58, %v7862_v60  ;;  %v338_v44 = vld [vmem:[%s5725_s22 + $0x2f8] sm:$0xff]  ;;  %v9185_v50 = vld [vmem:[#allocation83_spill] sm:$0xff]  ;;  %v340_v60 = vld [vmem:[%s5725_s22 + $0x308] sm:$0xff] }
 0x1ba   : > { %5267 = vmatpush1.bf16.msra.mxu1 %v9181_v20  ;;  %v459_v8 = vmul.f32 %v331_v38, %v331_v38  ;;  %v460_v52 = vmul.f32 %v332_v15, %v332_v15  ;;  %v549_v48 = vadd.f32 %v548_v61, %v445_v24  ;;  %v632_v19 = vadd.f32 %v631_v42, %v7864_v53  ;;  %v341_v58 = vld [vmem:[%s5725_s22 + $0x310] sm:$0xff]  ;;  %v9186_v61 = vld [vmem:[#allocation89_spill] sm:$0xff]  ;;  %v342_v15 = vld [vmem:[%s5725_s22 + $0x318] sm:$0xff] }
 0x1bb   : > { %5269 = vmatprep.subr.bf16.mxu1 %v9182_v59  ;;  %5079 = vmatpush1.bf16.msra.mxu0 %v9183_v17  ;;  %v461_v17 = vmul.f32 %v333_v32, %v333_v32  ;;  %v462_v28 = vmul.f32 %v334_v41, %v334_v41  ;;  %v570_v59 = vadd.f32 %v569_v45, %v446_v9  ;;  %v9187_v42 = vld [vmem:[#allocation91_spill] sm:$0xff]  ;;  %v343_v32 = vld [vmem:[%s5725_s22 + $0x320] sm:$0xff]  ;;  %v344_v41 = vld [vmem:[%s5725_s22 + $0x328] sm:$0xff] }
 0x1bc   : > { %5081 = vmatprep.subr.bf16.mxu0 %v9184_v34  ;;  %v653_v54 = vadd.f32 %v652_v49, %v7871_v23  ;;  %v463_v34 = vmul.f32 %v335_v47, %v335_v47  ;;  %v464_v38 = vmul.f32 %v336_v21, %v336_v21  ;;  %v508_v24 = vadd.f32 %v507_v2, %v451_v6  ;;  %v9188_v49 = vld [vmem:[#allocation53_spill] sm:$0xff]  ;;  %v345_v2 = vld [vmem:[%s5725_s22 + $0x330] sm:$0xff] }
 0x1bd   : > { %v591_v53 = vadd.f32 %v590_v43, %v447_v26  ;;  %v465_v9 = vmul.f32 %v337_v13, %v337_v13  ;;  %v529_v23 = vadd.f32 %v528_v7, %v452_v25  ;;  %v612_v45 = vadd.f32 %v611_v22, %v7886_v18  ;;  %v346_v43 = vld [vmem:[%s5725_s22 + $0x338] sm:$0xff]  ;;  %v9189_v7 = vld [vmem:[#allocation94_spill] sm:$0xff]  ;;  %v347_v18 = vld [vmem:[%s5725_s22 + $0x340] sm:$0xff] }
 0x1be   : > { %5271 = vmatpush1.bf16.msra.mxu1 %v9185_v50  ;;  %v466_v47 = vmul.f32 %v338_v44, %v338_v44  ;;  %v467_v21 = vmul.f32 %v339_v0, %v339_v0  ;;  %v550_v6 = vadd.f32 %v549_v48, %v453_v46  ;;  %v633_v26 = vadd.f32 %v632_v19, %v7893_v5  ;;  %v348_v22 = vld [vmem:[%s5725_s22 + $0x348] sm:$0xff]  ;;  %v9190_v48 = vld [vmem:[#allocation60_spill] sm:$0xff]  ;;  %v9191_v5 = vld [vmem:[#allocation63_spill] sm:$0xff] }
 0x1bf   : > { %5273 = vmatprep.subr.bf16.mxu1 %v9186_v61  ;;  %5083 = vmatpush1.bf16.msra.mxu0 %v9187_v42  ;;  %v468_v42 = vmul.f32 %v340_v60, %v340_v60  ;;  %v469_v61 = vmul.f32 %v341_v58, %v341_v58  ;;  %v571_v50 = vadd.f32 %v570_v59, %v454_v31  ;;  %v349_v19 = vld [vmem:[%s5725_s22 + $0x350] sm:$0xff] }
 0x1c0   : > { %5085 = vmatprep.subr.bf16.mxu0 %v9188_v49  ;;  %v654_v25 = vadd.f32 %v653_v54, %v7895_v1  ;;  %v470_v13 = vmul.f32 %v342_v15, %v342_v15  ;;  %v471_v44 = vmul.f32 %v343_v32, %v343_v32  ;;  %v509_v0 = vadd.f32 %v508_v24, %v459_v8  ;;  %v9192_v1 = vld [vmem:[#allocation55_spill] sm:$0xff]  ;;  %v350_v54 = vld [vmem:[%s5725_s22 + $0x358] sm:$0xff] }
 0x1c1   : > { %v592_v46 = vadd.f32 %v591_v53, %v455_v4  ;;  %v472_v60 = vmul.f32 %v344_v41, %v344_v41  ;;  %v530_v31 = vadd.f32 %v529_v23, %v460_v52  ;;  %v613_v59 = vadd.f32 %v612_v45, %v456_v55  ;;  %v351_v4 = vld [vmem:[%s5725_s22 + $0x360] sm:$0xff]  ;;  %v9193_v41 = vld [vmem:[#allocation68_spill] sm:$0xff]  ;;  %v352_v55 = vld [vmem:[%s5725_s22 + $0x368] sm:$0xff] }
 0x1c2   : > { %5275 = vmatpush1.bf16.msra.mxu1 %v9189_v7  ;;  %v473_v58 = vmul.f32 %v345_v2, %v345_v2  ;;  %v474_v7 = vmul.f32 %v346_v43, %v346_v43  ;;  %v551_v15 = vadd.f32 %v550_v6, %v461_v17  ;;  %v634_v8 = vadd.f32 %v633_v26, %v7912_v29  ;;  %v9194_v52 = vld [vmem:[#allocation76_spill] sm:$0xff]  ;;  %v353_v23 = vld [vmem:[%s5725_s22 + $0x370] sm:$0xff]  ;;  %v9195_v6 = vld [vmem:[#allocation77_spill] sm:$0xff] }
 0x1c3   : > { %5277 = vmatprep.subr.bf16.mxu1 %v9190_v48  ;;  %5087 = vmatpush1.bf16.msra.mxu0 %v9191_v5  ;;  %v475_v24 = vmul.f32 %v347_v18, %v347_v18  ;;  %v476_v53 = vmul.f32 %v348_v22, %v348_v22  ;;  %v572_v32 = vadd.f32 %v571_v50, %v462_v28  ;;  %v9196_v29 = vld [vmem:[#allocation82_spill] sm:$0xff]  ;;  %v355_v26 = vld [vmem:[%s5725_s22 + $0x380] sm:$0xff] }
 0x1c4   : > { %5089 = vmatprep.subr.bf16.mxu0 %v9192_v1  ;;  %v655_v5 = vadd.f32 %v654_v25, %v7919_v33  ;;  %v477_v45 = vmul.f32 %v349_v19, %v349_v19  ;;  %v510_v2 = vadd.f32 %v509_v0, %v467_v21  ;;  %v593_v17 = vadd.f32 %v592_v46, %v463_v34  ;;  %v9197_v43 = vld [vmem:[#allocation85_spill] sm:$0xff]  ;;  %v356_v25 = vld [vmem:[%s5725_s22 + $0x388] sm:$0xff]  ;;  %v354_v34 = vld [vmem:[%s5725_s22 + $0x378] sm:$0xff] }
 0x1c5   : > { %v478_v28 = vmul.f32 %v350_v54, %v350_v54  ;;  %v531_v50 = vadd.f32 %v530_v31, %v468_v42  ;;  %v614_v33 = vadd.f32 %v613_v59, %v464_v38  ;;  %v479_v18 = vmul.f32 %v351_v4, %v351_v4  ;;  %v357_v0 = vld [vmem:[%s5725_s22 + $0x390] sm:$0xff]  ;;  %v9198_v31 = vld [vmem:[#allocation84_spill] sm:$0xff]  ;;  %v359_v1 = vld [vmem:[%s5725_s22 + $0x3a0] sm:$0xff] }
 0x1c6   : > { %5279 = vmatpush1.bf16.msra.mxu1 %v9193_v41  ;;  %3150 = vmatmul.mubr.f32.vlgmr.msra.gmra.mrb[2].mxu0 %v9194_v52  ;;  %v552_v22 = vadd.f32 %v551_v15, %v469_v61  ;;  %v635_v21 = vadd.f32 %v634_v8, %v465_v9  ;;  %v480_v46 = vmul.f32 %v352_v55, %v352_v55  ;;  %v358_v59 = vld [vmem:[%s5725_s22 + $0x398] sm:$0xff]  ;;  %v9199_v15 = vld [vmem:[#allocation87_spill] sm:$0xff]  ;;  %v9200_v8 = vld [vmem:[#allocation93_spill] sm:$0xff] }
 0x1c7   : > { %5281 = vmatprep.subr.bf16.mxu1 %v9195_v6  ;;  %5091 = vmatpush1.bf16.msra.mxu0 %v9196_v29  ;;  %v481_v19 = vmul.f32 %v353_v23, %v353_v23  ;;  %v573_v42 = vadd.f32 %v572_v32, %v470_v13  ;;  %v656_v38 = vadd.f32 %v655_v5, %v466_v47  ;;  %v360_v4 = vld [vmem:[%s5725_s22 + $0x3a8] sm:$0xff]  ;;  %v9201_v32 = vld [vmem:[#allocation31_spill] sm:$0xff] }
 0x1c8   : > { %5093 = vmatprep.subr.bf16.mxu0 %v9197_v43  ;;  %3316 = vmatprep.mubr.f32.mxu0 %v9164_v56  ;;  %v483_v54 = vmul.f32 %v355_v26, %v355_v26  ;;  %v511_v61 = vadd.f32 %v510_v2, %v475_v24  ;;  %v594_v9 = vadd.f32 %v593_v17, %v471_v44  ;;  %v364_v55 = vld [vmem:[%s5725_s22 + $0x3c8] sm:$0xff]  ;;  %v361_v44 = vld [vmem:[%s5725_s22 + $0x3b0] sm:$0xff] }
 0x1c9   : > { %4005 = vmatmul.mubr.f32.vlgmr.msra.gmra.mrb[2].mxu1 %v9194_v52  ;;  %v363_v52 = vld [vmem:[%s5725_s22 + $0x3c0] sm:$0xff]  ;;  %v484_v13 = vmul.f32 %v356_v25, %v356_v25  ;;  %v532_v47 = vadd.f32 %v531_v50, %v476_v53  ;;  %v615_v5 = vadd.f32 %v614_v33, %v472_v60  ;;  %v482_v23 = vmul.f32 %v354_v34, %v354_v34  ;;  %v365_v2 = vld [vmem:[%s5725_s22 + $0x3d0] sm:$0xff]  ;;  %v9202_v25 = vld [vmem:[#allocation96_spill] sm:$0xff] }
 0x1ca   : > { %5283 = vmatpush1.bf16.msra.mxu1 %v9198_v31  ;;  %4171 = vmatprep.mubr.f32.mxu1 %v9164_v56  ;;  %v485_v6 = vmul.f32 %v357_v0, %v357_v0  ;;  %v553_v29 = vadd.f32 %v552_v22, %v477_v45  ;;  %v636_v24 = vadd.f32 %v635_v21, %v473_v58  ;;  %v362_v53 = vld [vmem:[%s5725_s22 + $0x3b8] sm:$0xff]  ;;  %v9203_v0 = vld [vmem:[#allocation35_spill] sm:$0xff]  ;;  %v367_v45 = vld [vmem:[%s5725_s22 + $0x3e0] sm:$0xff] }
 0x1cb   : > { %5285 = vmatprep.subr.bf16.mxu1 %v9199_v15  ;;  %5095 = vmatpush1.bf16.msra.mxu0 %v9200_v8  ;;  %v486_v17 = vmul.f32 %v358_v59, %v358_v59  ;;  %v487_v26 = vmul.f32 %v359_v1, %v359_v1  ;;  %v574_v43 = vadd.f32 %v573_v42, %v478_v28  ;;  %v366_v50 = vld [vmem:[%s5725_s22 + $0x3d8] sm:$0xff]  ;;  %v9205_v42 = vld [vmem:[#allocation45_spill] sm:$0xff] }
 0x1cc   : > { %5097 = vmatprep.subr.bf16.mxu0 %v9201_v32  ;;  %v657_v31 = vadd.f32 %v656_v38, %v474_v7  ;;  %v488_v60 = vmul.f32 %v360_v4, %v360_v4  ;;  %v491_v33 = vmul.f32 %v363_v52, %v363_v52  ;;  %v512_v15 = vadd.f32 %v511_v61, %v483_v54  ;;  %v9204_v58 = vld [vmem:[#allocation40_spill] sm:$0xff]  ;;  %v368_v7 = vld [vmem:[%s5725_s22 + $0x3e8] sm:$0xff]  ;;  %v369_v4 = vld [vmem:[%s5725_s22 + $0x3f0] sm:$0xff] }
 0x1cd   : > { %v595_v34 = vadd.f32 %v594_v9, %v479_v18  ;;  %v492_v22 = vmul.f32 %v364_v55, %v364_v55  ;;  %v533_v21 = vadd.f32 %v532_v47, %v484_v13  ;;  %v616_v28 = vadd.f32 %v615_v5, %v480_v46  ;;  %v9206_v9 = vld [vmem:[#allocation42_spill] sm:$0xff]  ;;  %v9207_v32 = vld [vmem:[#allocation11_spill] sm:$0xff]  ;;  %v9209_v55 = vld [vmem:[#allocation52_spill] sm:$0xff] }
 0x1ce   : > { %5287 = vmatpush1.bf16.msra.mxu1 %v9202_v25  ;;  %v489_v38 = vmul.f32 %v361_v44, %v361_v44  ;;  %v493_v59 = vmul.f32 %v365_v2, %v365_v2  ;;  %v554_v1 = vadd.f32 %v553_v29, %v485_v6  ;;  %v637_v8 = vadd.f32 %v636_v24, %v481_v19  ;;  %v370_v46 = vld [vmem:[%s5725_s22 + $0x3f8] sm:$0xff]  ;;  %v9211_v44 = vld [vmem:[#allocation46_spill] sm:$0xff]  ;;  %v9212_v6 = vld [vmem:[#allocation49_spill] sm:$0xff] }
 0x1cf   : > { %5289 = vmatprep.subr.bf16.mxu1 %v9203_v0  ;;  %5099 = vmatpush1.bf16.msra.mxu0 %v9204_v58  ;;  %v490_v52 = vmul.f32 %v362_v53, %v362_v53  ;;  %v494_v54 = vmul.f32 %v366_v50, %v366_v50  ;;  %v575_v18 = vadd.f32 %v574_v43, %v486_v17  ;;  %v9208_v25 = vand.u32 4294901760, %v9207_v32  ;;  %v9213_v2 = vld [vmem:[#allocation58_spill] sm:$0xff] }
 0x1d0   : > { %5101 = vmatprep.subr.bf16.mxu0 %v9205_v42  ;;  %v658_v61 = vadd.f32 %v657_v31, %v482_v23  ;;  %v9210_v0 = vand.u32 4294901760, %v9209_v55  ;;  %v495_v47 = vmul.f32 %v367_v45, %v367_v45  ;;  %v513_v5 = vadd.f32 %v512_v15, %v491_v33  ;;  %v9214_v33 = vld [vmem:[#allocation99_spill] sm:$0xff]  ;;  %v9221_v55 = vld [vmem:[#allocation81_spill] sm:$0xff] }
 0x1d1   : > { %v596_v58 = vadd.f32 %v595_v34, %v487_v26  ;;  %v496_v19 = vmul.f32 %v368_v7, %v368_v7  ;;  %v534_v29 = vadd.f32 %v533_v21, %v492_v22  ;;  %v617_v24 = vadd.f32 %v616_v28, %v488_v60  ;;  %v9215_v26 = vld [vmem:[#allocation100_spill] sm:$0xff]  ;;  %v9216_v7 = vld [vmem:[#allocation34_spill] sm:$0xff] }
 0x1d2   : > { %5291 = vmatpush1.bf16.msra.mxu1 %v9206_v9  ;;  %v5294_v13 = vpack.c.bf16 %v9210_v0, %v9208_v25  ;;  %v497_v23 = vmul.f32 %v369_v4, %v369_v4  ;;  %v555_v17 = vadd.f32 %v554_v1, %v493_v59  ;;  %v638_v43 = vadd.f32 %v637_v8, %v489_v38  ;;  %v9217_v59 = vld [vmem:[#allocation101_spill] sm:$0xff]  ;;  %v9219_v4 = vld [vmem:[#allocation78_spill] sm:$0xff] }
 0x1d3   : > { %5293 = vmatprep.subr.bf16.mxu1 %v9211_v44  ;;  %5103 = vmatpush1.bf16.msra.mxu0 %v9212_v6  ;;  %v498_v31 = vmul.f32 %v370_v46, %v370_v46  ;;  %v576_v53 = vadd.f32 %v575_v18, %v494_v54  ;;  %v659_v50 = vadd.f32 %v658_v61, %v490_v52  ;;  %v514_v42 = vrot.slane %v513_v5, 4  ;;  %v9218_v8 = vld [vmem:[#allocation33_spill] sm:$0xff]  ;;  %v9220_v18 = vld [vmem:[#allocation92_spill] sm:$0xff]  ;;  %v9222_v46 = vld [vmem:[#allocation95_spill] sm:$0xff] }
 0x1d4   : > { %5105 = vmatprep.subr.bf16.mxu0 %v9213_v2  ;;  %v597_v45 = vadd.f32 %v596_v58, %v495_v47  ;;  %v535_v15 = vrot.slane %v534_v29, 4  ;;  %v618_v34 = vadd.f32 %v617_v24, %v496_v19  ;;  %v556_v60 = vrot.slane %v555_v17, 4  ;;  %v9223_v47 = vld [vmem:[#allocation102_spill] sm:$0xff]  ;;  %v9224_v44 = vld [vmem:[#allocation97_spill] sm:$0xff]  ;;  %v9225_v2 = vld [vmem:[#allocation103_spill] sm:$0xff] }
 0x1d5   : > { %v639_v22 = vadd.f32 %v638_v43, %v497_v23  ;;  %v577_v21 = vrot.slane %v576_v53, 4  ;;  %v660_v28 = vadd.f32 %v659_v50, %v498_v31  ;;  %v515_v38 = vadd.f32 %v514_v42, %v513_v5  ;;  %v9226_v43 = vld [vmem:[#allocation104_spill] sm:$0xff]  ;;  %v9227_v31 = vld [vmem:[#allocation54_spill] sm:$0xff] }
 0x1d6   : > { %5295 = vmatpush1.bf16.msra.mxu1 %v5294_v13  ;;  %v598_v1 = vrot.slane %v597_v45, 4  ;;  %v536_v52 = vadd.f32 %v535_v15, %v534_v29  ;;  %v619_v54 = vrot.slane %v618_v34, 4  ;;  %v557_v61 = vadd.f32 %v556_v60, %v555_v17  ;;  %v9228_v15 = vld [vmem:[#allocation105_spill] sm:$0xff] }
 0x1d7   : > { %5297 = vmatprep.subr.bf16.mxu1 %v9214_v33  ;;  %5107 = vmatpush1.bf16.msra.mxu0 %v9215_v26  ;;  %v640_v9 = vrot.slane %v639_v22, 4  ;;  %v578_v32 = vadd.f32 %v577_v21, %v576_v53  ;;  %v661_v25 = vrot.slane %v660_v28, 4  ;;  %v516_v0 = vrot.slane %v515_v38, 2 }
 0x1d8   : > { %5109 = vmatprep.subr.bf16.mxu0 %v9216_v7  ;;  %v599_v13 = vadd.f32 %v598_v1, %v597_v45  ;;  %v537_v5 = vrot.slane %v536_v52, 2  ;;  %v620_v58 = vadd.f32 %v619_v54, %v618_v34  ;;  %v558_v6 = vrot.slane %v557_v61, 2  ;;  %v9229_v34 = vld [vmem:[#allocation74_spill] sm:$0xff] }
 0x1d9   : > { %v641_v19 = vadd.f32 %v640_v9, %v639_v22  ;;  %v579_v29 = vrot.slane %v578_v32, 2  ;;  %v662_v24 = vadd.f32 %v661_v25, %v660_v28  ;;  %v517_v23 = vadd.f32 %v516_v0, %v515_v38  ;;  %v9234_v9 = vld [vmem:[#allocation80_spill] sm:$0xff] }
 0x1da   : > { %5299 = vmatpush1.bf16.msra.mxu1 %v9217_v59  ;;  %v600_v17 = vrot.slane %v599_v13, 2  ;;  %v538_v53 = vadd.f32 %v537_v5, %v536_v52  ;;  %v621_v50 = vrot.slane %v620_v58, 2  ;;  %v559_v42 = vadd.f32 %v558_v6, %v557_v61  ;;  %v9237_v5 = vld [vmem:[#allocation89_spill] sm:$0xff]  ;;  %v9239_v6 = vld [vmem:[#allocation94_spill] sm:$0xff] }
 0x1db   : > { %5301 = vmatprep.subr.bf16.mxu1 %v9218_v8  ;;  %5111 = vmatpush1.bf16.msra.mxu0 %v9219_v4  ;;  %v642_v45 = vrot.slane %v641_v19, 2  ;;  %v580_v33 = vadd.f32 %v579_v29, %v578_v32  ;;  %v663_v26 = vrot.slane %v662_v24, 2  ;;  %v518_v7 = vrot.slane %v517_v23, 1  ;;  %v9235_v32 = vld [vmem:[#allocation86_spill] sm:$0xff] }
 0x1dc   : > { %5113 = vmatprep.subr.bf16.mxu0 %v9220_v18  ;;  %v601_v60 = vadd.f32 %v600_v17, %v599_v13  ;;  %v539_v22 = vrot.slane %v538_v53, 1  ;;  %v622_v21 = vadd.f32 %v621_v50, %v620_v58  ;;  %v9238_v58 = vld [vmem:[#allocation91_spill] sm:$0xff] }
 0x1dd   : > { %v643_v28 = vadd.f32 %v642_v45, %v641_v19  ;;  %v581_v59 = vrot.slane %v580_v33, 1  ;;  %v664_v38 = vadd.f32 %v663_v26, %v662_v24  ;;  %v519_v1 = vadd.f32 %v518_v7, %v517_v23 }
 0x1de   : > { %5303 = vmatpush1.bf16.msra.mxu1 %v9221_v55 }
 0x1df   : > { %5305 = vmatprep.subr.bf16.mxu1 %v9222_v46  ;;  %5115 = vmatpush1.bf16.msra.mxu0 %v9223_v47  ;;  %v644_v4 = vrot.slane %v643_v28, 1  ;;  %v582_v52 = vadd.f32 %v581_v59, %v580_v33  ;;  %v665_v54 = vrot.slane %v664_v38, 1  ;;  %5453 = vrsqrt.f32 %v519_v1  ;;  %v9236_v46 = vld [vmem:[#allocation83_spill] sm:$0xff] }
 0x1e0   : > { %5117 = vmatprep.subr.bf16.mxu0 %v9224_v44 }
 0x1e2   : > { %5307 = vmatpush1.bf16.msra.mxu1 %v9225_v2  ;;  %v9240_v2 = vld [vmem:[#allocation63_spill] sm:$0xff] }
 0x1e3   : > { %5309 = vmatprep.subr.bf16.mxu1 %v9226_v43  ;;  %5119 = vmatpush1.bf16.msra.mxu0 %v9227_v31 }
 0x1e4   : > { %5121 = vmatprep.subr.bf16.mxu0 %v9155_v14  ;;  %v560_v14 = vrot.slane %v559_v42, 1 }
 0x1e6   : > { %5311 = vmatpush1.bf16.msra.mxu1 %v9228_v15  ;;  %3318 = vmatmul.mubr.f32.vlgmr.msra.gmra.mrb[2].mxu0 %v9229_v34  ;;  %v561_v8 = vadd.f32 %v560_v14, %v559_v42 }
 0x1e7   : > { %5313 = vmatprep.subr.bf16.mxu1 %v9161_v3  ;;  %5123 = vmatpush1.bf16.msra.mxu0 %v9162_v36  ;;  %v602_v3 = vrot.slane %v601_v60, 1  ;;  %v540_v36 = vadd.f32 %v539_v22, %v538_v53 }
 0x1e8   : > { %5125 = vmatprep.subr.bf16.mxu0 %v9163_v37  ;;  %3420 = vmatprep.mubr.f32.mxu0 %v9164_v56  ;;  %v623_v37 = vrot.slane %v622_v21, 1 }
 0x1e9   : > { %4173 = vmatmul.mubr.f32.vlgmr.msra.gmra.mrb[2].mxu1 %v9229_v34  ;;  %v603_v18 = vadd.f32 %v602_v3, %v601_v60  ;;  %5455 = vrsqrt.f32 %v540_v36  ;;  %v8065_v60 = vstv %s4560_s10 }
 0x1ea   : > { %5315 = vmatpush1.bf16.msra.mxu1 %v9165_v27  ;;  %4275 = vmatprep.mubr.f32.mxu1 %v9164_v56  ;;  %v624_v56 = vadd.f32 %v623_v37, %v622_v21  ;;  %v645_v27 = vadd.f32 %v644_v4, %v643_v28  ;;  %5457 = vrsqrt.f32 %v561_v8  ;;  %v8075_v8 = vpop.permute.xlu0 %4370 }
 0x1eb   : > { %5317 = vmatprep.subr.bf16.mxu1 %v9166_v57  ;;  %5127 = vmatpush1.bf16.msra.mxu0 %v9167_v30  ;;  %v666_v57 = vadd.f32 %v665_v54, %v664_v38  ;;  %5459 = vrsqrt.f32 %v582_v52  ;;  %v9230_v30 = vld [vmem:[#allocation12_spill] sm:$0xff] }
 0x1ec   : > { %5129 = vmatprep.subr.bf16.mxu0 %v9168_v10  ;;  %5461 = vrsqrt.f32 %v603_v18  ;;  %v9231_v10 = vld [vmem:[#allocation57_spill] sm:$0xff] }
 0x1ed   : > { %5463 = vrsqrt.f32 %v624_v56 }
 0x1ee   : > { %5319 = vmatpush1.bf16.msra.mxu1 %v9169_v12  ;;  %5465 = vrsqrt.f32 %v645_v27  ;;  %v5454_v12 = vpop.eup %5453 }
 0x1ef   : > { %5321 = vmatprep.subr.bf16.mxu1 %v9170_v51  ;;  %5131 = vmatpush1.bf16.msra.mxu0 %v9171_v39  ;;  %5467 = vrsqrt.f32 %v666_v57  ;;  %v9232_v51 = vld [vmem:[#allocation16_spill] sm:$0xff] }
 0x1f0   : > { %5133 = vmatprep.subr.bf16.mxu0 %v9172_v62  ;;  %v5589_v62 = vmov 1966171168  }
 0x1f2   : > { %5323 = vmatpush1.bf16.msra.mxu1 %v9173_v35  ;;  %v688_v35 = vunpack.c.l.s4 %v5589_v62 }
 0x1f3   : > { %5325 = vmatprep.subr.bf16.mxu1 %v9174_v63  ;;  %5135 = vmatpush1.bf16.msra.mxu0 %v9175_v11  ;;  %v5456_v39 = vpop.eup %5455  ;;  %v690_v63 = vlaneseq }
 0x1f4   : > { %5137 = vmatprep.subr.bf16.mxu0 %v9176_v16  ;;  %v5458_v61 = vpop.eup %5457  ;;  %v9233_v16 = vld [vmem:[#allocation79_spill] sm:$0xff]  ;;  %v689_v55 = vunpack.c.0.s8 %v688_v35 }
 0x1f5   : > { %v5460_v11 = vpop.eup %5459  ;;  %v8039_v0 = vshrl.u32 %v690_v63, 7  ;;  %v8055_v33 = vand.u32 127, %v690_v63 }
 0x1f6   : > { %5327 = vmatpush1.bf16.msra.mxu1 %v9177_v40  ;;  %v5462_v40 = vpop.eup %5461  ;;  %v684_v19 = vcombine.low %v5458_v61, %v5460_v11 }
 0x1f7   : > { %5329 = vmatprep.subr.bf16.mxu1 %v9230_v30  ;;  %5139 = vmatpush1.bf16.msra.mxu0 %v9231_v10  ;;  %v5464_v25 = vpop.eup %5463  ;;  %v692_v44 = vsub.s32 %v689_v55, %v8039_v0  ;;  %v4295_v26 = vsub.s32 2, %v8039_v0  ;;  %v4299_v7 = vsub.s32 3, %v8039_v0  ;;  %v4353_v21 = vadd.s32 256, %v8055_v33 }
 0x1f8   : > { %5141 = vmatprep.subr.bf16.mxu0 %v9232_v51  ;;  %v5466_v13 = vpop.eup %5465  ;;  %v685_v29 = vcombine.low %v5462_v40, %v5464_v25  ;;  %v4354_v59 = vadd.s32 384, %v8055_v33  ;;  %v4360_v38 = vadd.s32 %v8065_v60, %v8055_v33 }
 0x1f9   : > { %v5468_v47 = vpop.eup %5467  ;;  %v700_v17 = vrot.slane %v684_v19, %v692_v44  ;;  %v4362_v18 = vadd.s32 %v8065_v60, %v4353_v21  ;;  %v4357_v19 = vadd.s32 768, %v8055_v33 }
 0x1fa   : > { %5331 = vmatpush1.bf16.msra.mxu1 %v9181_v20  ;;  %v683_v20 = vcombine.low %v5454_v12, %v5456_v39  ;;  %v686_v24 = vcombine.low %v5466_v13, %v5468_v47  ;;  %v4363_v30 = vadd.s32 %v8065_v60, %v4354_v59  ;;  %vm4372_vm0 = vcmp.eq.s32.totalorder %v4360_v38, %v8075_v8 }
 0x1fb   : > { %5333 = vmatprep.subr.bf16.mxu1 %v9233_v16  ;;  %5143 = vmatpush1.bf16.msra.mxu0 %v9234_v9  ;;  %vm4374_vm2 = vcmp.eq.s32.totalorder %v4362_v18, %v8075_v8  ;;  %v4303_v13 = vsub.s32 4, %v8039_v0  ;;  %v4355_v47 = vadd.s32 512, %v8055_v33 }
 0x1fc   : > { %5145 = vmatprep.subr.bf16.mxu0 %v9235_v32  ;;  %v693_v23 = vrot.slane %v683_v20, %v692_v44  ;;  %v714_v43 = vrot.slane %v686_v24, %v692_v44  ;;  %vm4375_vm3 = vcmp.eq.s32.totalorder %v4363_v30, %v8075_v8  ;;  %v4356_v20 = vadd.s32 640, %v8055_v33 }
 0x1fd   : > { %v4364_v24 = vadd.s32 %v8065_v60, %v4355_v47 }
 0x1fe   : > { %5335 = vmatpush1.bf16.msra.mxu1 %v9236_v46  ;;  %v715_v31 = vcombine.low %v693_v23, %v700_v17  ;;  %v4307_v46 = vsub.s32 5, %v8039_v0  ;;  %v4358_v23 = vadd.s32 896, %v8055_v33 }
 0x1ff   : > { %5337 = vmatprep.subr.bf16.mxu1 %v9237_v5  ;;  %5147 = vmatpush1.bf16.msra.mxu0 %v9238_v58  ;;  %v4311_v5 = vsub.s32 6, %v8039_v0  ;;  %vm4376_vm4 = vcmp.eq.s32.totalorder %v4364_v24, %v8075_v8 }
 0x200   : > { %5149 = vmatprep.subr.bf16.mxu0 %v9188_v49  ;;  %v707_v49 = vrot.slane %v685_v29, %v692_v44  ;;  %v723_v50 = vrot.slane %v715_v31, %v692_v44 }
 0x202   : > { %5339 = vmatpush1.bf16.msra.mxu1 %v9239_v6  ;;  %v716_v53 = vcombine.low %v707_v49, %v714_v43  ;;  %v4365_v43 = vadd.s32 %v8065_v60, %v4356_v20 }
 0x203   : > { %5341 = vmatprep.subr.bf16.mxu1 %v9190_v48  ;;  %5151 = vmatpush1.bf16.msra.mxu0 %v9240_v2  ;;  %v4287_v48 = vsub.s32 0, %v8039_v0 }
 0x204   : > { %v730_v42 = vrot.slane %v716_v53, %v692_v44  ;;  %v1713_v14 = vpop.f32.mrb[0].mxu0  ;;  %v4315_v44 = vsub.s32 7, %v8039_v0  ;;  %vm4377_vm5 = vcmp.eq.s32.totalorder %v4365_v43, %v8075_v8 }
 0x205   : > { %v1715_v3 = vpop.f32.mrb[1].mxu0 }
 0x206   : > { %5343 = vmatpush1.bf16.msra.mxu1 %v9193_v41  ;;  %3422 = vmatmul.mubr.f32.vlgmr.msra.gmra.mrb[2].mxu0 %v9229_v34  ;;  %v8052_v45 = vcombine.low %v723_v50, %v730_v42  ;;  %v4291_v41 = vsub.s32 1, %v8039_v0  ;;  %v2568_v54 = vpop.f32.mrb[0].mxu1  ;;  %v4366_v42 = vadd.s32 %v8065_v60, %v4357_v19 }
 0x207   : > { %v2570_v57 = vpop.f32.mrb[1].mxu1 }
 0x208   : > { %v4288_v15 = vrot.slane %v8052_v45, %v4287_v48  ;;  %v4292_v22 = vrot.slane %v8052_v45, %v4291_v41  ;;  %v4296_v28 = vrot.slane %v8052_v45, %v4295_v26  ;;  %v4300_v36 = vrot.slane %v8052_v45, %v4299_v7 }
 0x209   : > { %4277 = vmatmul.mubr.f32.vlgmr.msra.gmra.mrb[2].mxu1 %v9229_v34  ;;  %v4352_v34 = vadd.s32 128, %v8055_v33  ;;  %v4304_v58 = vrot.slane %v8052_v45, %v4303_v13  ;;  %v4308_v6 = vrot.slane %v8052_v45, %v4307_v46  ;;  %v4312_v2 = vrot.slane %v8052_v45, %v4311_v5 }
 0x20a   : > { %v4325_v1 = vmul.f32 %v4288_v15, %v1713_v14  ;;  %v4326_v4 = vmul.f32 %v4292_v22, %v1715_v3  ;;  %v4327_v56 = vmul.f32 %v4296_v28, %v2568_v54  ;;  %v4328_v12 = vmul.f32 %v4300_v36, %v2570_v57 }
 0x20b   : > { %v4361_v37 = vadd.s32 %v8065_v60, %v4352_v34  ;;  %v4316_v31 = vrot.slane %v8052_v45, %v4315_v44  ;;  %v4367_v15 = vadd.s32 %v8065_v60, %v4358_v23  ;;  %vm4378_vm6 = vcmp.eq.s32.totalorder %v4366_v42, %v8075_v8 }
 0x20c   : > { %v4552_v52 = vclamps-f32 %v4325_v1, 1.0  ;;  %v4553_v27 = vclamps-f32 %v4326_v4, 1.0  ;;  %v4554_v51 = vclamps-f32 %v4327_v56, 1.0  ;;  %v4555_v62 = vclamps-f32 %v4328_v12, 1.0 }
 0x20d   : > { %vm4373_vm1 = vcmp.eq.s32.totalorder %v4361_v37, %v8075_v8  ;;  %vm4379_vm7 = vcmp.eq.s32.totalorder %v4367_v15, %v8075_v8 }
 0x20e   : > { %v4561_v10 = vadd.f32 -0.35, %v4552_v52  ;;  %v4562_v39 = vadd.f32 -0.35, %v4553_v27  ;;  %v4563_v63 = vadd.f32 -0.35, %v4554_v51 }
 0x20f   : > { %v4564_v16 = vadd.f32 -0.35, %v4555_v62 }
 0x210   : > { %v4388_v35 = vsel %vm4372_vm0, %v4561_v10, %v4552_v52  ;;  %v4389_v61 = vsel %vm4373_vm1, %v4562_v39, %v4553_v27  ;;  %v4390_v40 = vsel %vm4374_vm2, %v4563_v63, %v4554_v51 }
 0x211   : > { %v4396_v11 = vmul.f32 30.0, %v4388_v35  ;;  %v4397_v9 = vmul.f32 30.0, %v4389_v61  ;;  %v4391_v32 = vsel %vm4375_vm3, %v4564_v16, %v4555_v62  ;;  %v4398_v25 = vmul.f32 30.0, %v4390_v40 }
 0x212   : > { %v4399_v55 = vmul.f32 30.0, %v4391_v32 }
 0x213   : > { %4404 = vst [vmem:[%s8084_s28] sm:$0xff] %v4396_v11  ;;  %4405 = vst [vmem:[%s8084_s28 + $0x8] sm:$0xff] %v4397_v9 }
 0x214   : > { %4406 = vst [vmem:[%s8084_s28 + $0x10] sm:$0xff] %v4398_v25  ;;  %4407 = vst [vmem:[%s8084_s28 + $0x18] sm:$0xff] %v4399_v55 }
 0x2d9   : > { %v3423_v29 = vpop.f32.mrb[2].mxu0 }
 0x2da   : > { %v4329_v17 = vmul.f32 %v4304_v58, %v3423_v29  ;;  %v3425_v49 = vpop.f32.mrb[3].mxu0 }
 0x2db   : > { %v4330_v53 = vmul.f32 %v4308_v6, %v3425_v49 }
 0x2dc   : > { %v4556_v50 = vclamps-f32 %v4329_v17, 1.0  ;;  %v4278_v0 = vpop.f32.mrb[2].mxu1 }
 0x2dd   : > { %v4331_v48 = vmul.f32 %v4312_v2, %v4278_v0  ;;  %v4557_v41 = vclamps-f32 %v4330_v53, 1.0  ;;  %v4280_v26 = vpop.f32.mrb[3].mxu1 }
 0x2de   : > { %v4565_v33 = vadd.f32 -0.35, %v4556_v50  ;;  %v4332_v7 = vmul.f32 %v4316_v31, %v4280_v26 }
 0x2df   : > { %v4558_v45 = vclamps-f32 %v4331_v48, 1.0  ;;  %v4566_v34 = vadd.f32 -0.35, %v4557_v41 }
 0x2e0   : > { %v4392_v22 = vsel %vm4376_vm4, %v4565_v33, %v4556_v50  ;;  %v4559_v21 = vclamps-f32 %v4332_v7, 1.0 }
 0x2e1   : > { %v4400_v14 = vmul.f32 30.0, %v4392_v22  ;;  %v4567_v28 = vadd.f32 -0.35, %v4558_v45  ;;  %v4393_v59 = vsel %vm4377_vm5, %v4566_v34, %v4557_v41 }
 0x2e2   : > { %v4401_v60 = vmul.f32 30.0, %v4393_v59  ;;  %v4568_v38 = vadd.f32 -0.35, %v4559_v21 }
 0x2e3   : > { %4408 = vst [vmem:[%s8084_s28 + $0x20] sm:$0xff] %v4400_v14  ;;  %v4394_v1 = vsel %vm4378_vm6, %v4567_v28, %v4558_v45 }
 0x2e4   : > { %v4402_v3 = vmul.f32 30.0, %v4394_v1  ;;  %4409 = vst [vmem:[%s8084_s28 + $0x28] sm:$0xff] %v4401_v60  ;;  %v4395_v36 = vsel %vm4379_vm7, %v4568_v38, %v4559_v21 }
 0x2e5   : > { %v4403_v37 = vmul.f32 30.0, %v4395_v36 }
 0x2e6   : > { %4410 = vst [vmem:[%s8084_s28 + $0x30] sm:$0xff] %v4402_v3 }
 0x2e7   : > { %4411 = vst [vmem:[%s8084_s28 + $0x38] sm:$0xff] %v4403_v37 }
 0x2e8   : > { %5512 = shalt.err (!%p5509_p3)
}
 0x2e9   : > { %s5513_s18 = scalar_lea.hbm %s8118_s5, 1024  ;;  %s5517_s6 = scalar_lea.hbm %s8172_s3, 2048 }
 0x2ea   : > { %p5514_p4 = scmp.ne.s32.totalorder %s8118_s5, %s5513_s18  ;;  %p5518_p12 = scmp.lt.u32.totalorder %s8118_s5, %s8172_s3 }
 0x2eb   : > { %p5519_p2 = scmp.lt.u32.totalorder %s5517_s6, %s5513_s18  ;;  %p5521_p8 = scmp.lt.u32.totalorder %s5513_s18, %s8118_s5 }
 0x2ec   : > { %p5515_p6 = pnand %p5514_p4, %p9241_p9 }
 0x2ed   : > { %p5520_p5 = por %p5519_p2, %p5518_p12 }
 0x2ee   : > { %p5516_p7 = pneg %p5515_p6 }
 0x2ef   : > { %p5522_p11 = por %p5521_p8, %p5520_p5 }
 0x2f1   : > { %p5523_p0 = pnand %p5522_p11, %p5516_p7 }
 0x2f3   : > { %5526 = shalt.err (!%p5523_p0)
}
 0x2f4   : > { %5386 = dma.vmem_to_hbm [thread:$0]  (%p9241_p9), %s8120_s29, 1024, %s8118_s5, %s4413_s7  }
 0x2f5 PF: > { %s4441_s10 = sand.u32 1, %s5561_s12   ;;  %p9242_p10 = scmp.ne.s32.totalorder %s8520_s27, 0 }
 0x2f6   : > { %p9243_p13 = scmp.ge.s32.totalorder %s5581_s17, 2  ;;  %s4442_s23 = scalar_lea.sflag [#allocation5], %s4441_s10 }
 0x2f8   : > { %p5393_p1 = pnand %p9243_p13, %p9242_p10 }
 0x2fa   : > { %5556 = dma.done.wait (!%p5393_p1), %s4442_s23, 1024  }
 0x2fb   : > { %5558 = vsyncadd (!%p5393_p1), %s4442_s23, 4294966272  ;;  %s19_s17 = sadd.s32 1, %s5581_s17   ;;  %s9244_s12 = smov %s5565_s13 }
 0x2fc   : > { %p16_p3 = scmp.ge.s32.totalorder %s19_s17, 4   ;;  %s9245_s13 = smov %s5569_s14 }
 0x2fd   : > { %s9246_s14 = smov %s5667_s26  ;;  %s9247_s15 = smov %s5577_s16 }
 0x2fe   : > { %s9248_s16 = smov %s9250_s20  ;;  %18 = sbr.rel (!%p16_p3) target bundleno = 6 (0x6), region = 87 }
 0x305   :  { %4447 = vsyncpa [#allocation4], 1 }
 0x306   :  { %4449 = vsyncpa [#allocation4 + $0x1], 1 }
 0x307   :  { %4450 = vsyncpa [#allocation5], 1 }
 0x308   :  { %4452 = vsyncpa [#allocation5 + $0x1], 1 }

</bundles_post_ra>
